<compile_context>
chip_gen: v6e
topology: v6e:2x2x1
jax: 0.10.0
libtpu: 0.0.40
codegen_flags: <defaults>
</compile_context>

<pallas_src>
import math

import jax
import jax.numpy as jnp
from jax.experimental import pallas as pl
from jax.experimental.pallas import tpu as pltpu

LATENT = 20
HID = 400
IN = 784
LAT_PAD = 128  # lane-dense latent slab width


# ----------------------------------------------------------------------------
# Pallas kernel: full VAE forward (encode -> reparameterize -> decode)
# ----------------------------------------------------------------------------
def vae_fwd_kernel(
    x_ref, eps_ref,
    w1_ref, b1_ref,
    w2x_ref, b2x_ref,
    w3p_ref, b3_ref,
    w4_ref, b4_ref,
    recon_ref, ml_ref,
):
    x = x_ref[...].astype(jnp.bfloat16)              # in-kernel cast (TB, 784)
    eps = eps_ref[...]                               # (TB, 128) f32, eps in lanes 20..39

    # ----- encode: h1 = relu(x @ W1 + b1) -----
    h1 = jnp.dot(x, w1_ref[...], preferred_element_type=jnp.float32) + b1_ref[...]
    h1 = jnp.maximum(h1, 0.0)                        # (TB, 400) f32

    # ----- fused latent heads: [mu | logvar | 0] in one 128-wide matmul -----
    ml = jnp.dot(h1.astype(jnp.bfloat16), w2x_ref[...],
                 preferred_element_type=jnp.float32) + b2x_ref[...]   # (TB, 128)
    ml_ref[...] = ml                                 # lane-dense (128) output slab

    # ----- reparameterize, kept 128 lanes wide -----
    # lanes 0..19: mu ; lanes 20..39: eps * exp(0.5*logvar) ; lanes 40..127: 0
    # Mask BEFORE the exp so exp(0.5*mu) never runs (no inf*0 -> NaN hazard).
    lane = jax.lax.broadcasted_iota(jnp.int32, ml.shape, 1)
    mu_only = jnp.where(lane < LATENT, ml, 0.0)
    std_arg = jnp.where((lane >= LATENT) & (lane < 2 * LATENT), ml, 0.0)
    z_slab = mu_only + eps * jnp.exp(0.5 * std_arg)  # exp on EUP; eps==0 outside 20..39

    # ----- decode -----
    # W3p rows 0..19 and 20..39 both hold W3, rest zero, so this equals
    # relu((mu + eps*std) @ W3 + b3) exactly.
    h3 = jnp.dot(z_slab.astype(jnp.bfloat16), w3p_ref[...],
                 preferred_element_type=jnp.float32) + b3_ref[...]
    h3 = jnp.maximum(h3, 0.0)                        # (TB, 400) f32

    logits = jnp.dot(h3.astype(jnp.bfloat16), w4_ref[...],
                     preferred_element_type=jnp.float32) + b4_ref[...]
    # sigmoid(x) == 0.5 * tanh(0.5 * x) + 0.5 : single EUP transcendental per
    # element; store as bf16 to halve the largest HBM write stream.
    recon_ref[...] = (0.5 * jnp.tanh(0.5 * logits) + 0.5).astype(recon_ref.dtype)


# ----------------------------------------------------------------------------
# Parameter packing: raw (in,out)/(1,out) f32 params -> kernel layout.
# Called ONCE at weight-load time (hoisted out of the per-forward path).
# ----------------------------------------------------------------------------
def pack_params(params):
    (w1, b1, w21, b21, w22, b22, w3, b3, w4, b4) = params

    # fused latent heads, padded to 128 lanes: cols 0..19 = W21, 20..39 = W22
    w2x = jnp.zeros((HID, LAT_PAD), jnp.float32)
    w2x = w2x.at[:, :LATENT].set(w21).at[:, LATENT:2 * LATENT].set(w22)
    b2x = jnp.zeros((1, LAT_PAD), jnp.float32)
    b2x = b2x.at[:, :LATENT].set(b21[0]).at[:, LATENT:2 * LATENT].set(b22[0])

    # decoder fc3 weight padded to 128 rows, W3 duplicated into rows 0..19
    # (mu lanes) and rows 20..39 (eps*std lanes); rows 40..127 zero.
    w3p = jnp.zeros((LAT_PAD, HID), jnp.float32)
    w3p = w3p.at[:LATENT, :].set(w3).at[LATENT:2 * LATENT, :].set(w3)

    bf = jnp.bfloat16
    return (w1.astype(bf), b1,
            w2x.astype(bf), b2x,
            w3p.astype(bf), b3,
            w4.astype(bf), b4)


# ----------------------------------------------------------------------------
# Batch-tile picker: multiple of 16 (bf16 sublane tile for the recon store);
# prefers an even grid so v7x's two TensorCores split the batch evenly.
# ----------------------------------------------------------------------------
def _round16(n):
    return ((n + 15) // 16) * 16


def _pick_tb(batch, tb):
    if batch <= 16:
        return batch                      # single full-extent block (divisibility waived)
    tb = max(16, min(tb, batch))
    tb = (tb // 16) * 16
    g = pl.cdiv(batch, tb)
    if g > 1 and g % 2 == 1:              # rebalance to an even number of grid steps
        tb_even = _round16(pl.cdiv(batch, g + 1))
        if tb_even >= 16 and pl.cdiv(batch, tb_even) % 2 == 0:
            tb = tb_even
    return tb


# ----------------------------------------------------------------------------
# Wrapper
# ----------------------------------------------------------------------------
def vae_forward(x, eps, packed_params, *, tb=256):
    """x: (B, 1, 28, 28) or (B, 784) f32;  eps: (B, 20) standard-normal noise;
    packed_params: output of pack_params (built once at weight-load time)."""
    B = x.shape[0]
    x_flat = x.reshape(B, IN)                        # == x.view(-1, 784), no copy/pad

    # eps placed in lanes 20..39 so it aligns with logvar inside the kernel.
    eps_slab = jnp.zeros((B, LAT_PAD), jnp.float32).at[:, LATENT:2 * LATENT].set(
        eps.astype(jnp.float32))

    tb_eff = _pick_tb(B, tb)
    grid = (pl.cdiv(B, tb_eff),)                     # ragged last block handled by Pallas

    resident = lambda shape: pl.BlockSpec(shape, lambda i: (0, 0))

    matmul_cols = IN * HID + HID * LAT_PAD + LAT_PAD * HID + HID * IN
    w_bytes = 2 * matmul_cols + 4 * (HID + LAT_PAD + HID + IN)
    cost = pl.CostEstimate(
        flops=2 * B * matmul_cols,
        transcendentals=B * (LAT_PAD + IN),          # exp on 128 lanes + tanh on 784
        bytes_accessed=w_bytes + B * (IN * 4 + LAT_PAD * 4 + IN * 2 + LAT_PAD * 4),
    )

    recon, ml = pl.pallas_call(
        vae_fwd_kernel,
        out_shape=(
            jax.ShapeDtypeStruct((B, IN), jnp.bfloat16),    # recon stored bf16
            jax.ShapeDtypeStruct((B, LAT_PAD), jnp.float32),
        ),
        grid=grid,
        in_specs=[
            pl.BlockSpec((tb_eff, IN), lambda i: (i, 0)),       # x (f32, cast in-kernel)
            pl.BlockSpec((tb_eff, LAT_PAD), lambda i: (i, 0)),  # eps slab
            resident((IN, HID)),              # w1
            resident((1, HID)),               # b1
            resident((HID, LAT_PAD)),         # w2x (fc21|fc22 fused, padded)
            resident((1, LAT_PAD)),           # b2x
            resident((LAT_PAD, HID)),         # w3 padded/duplicated
            resident((1, HID)),               # b3
            resident((HID, IN)),              # w4
            resident((1, IN)),                # b4
        ],
        out_specs=(
            pl.BlockSpec((tb_eff, IN), lambda i: (i, 0)),
            pl.BlockSpec((tb_eff, LAT_PAD), lambda i: (i, 0)),
        ),
        compiler_params=pltpu.CompilerParams(
            dimension_semantics=("parallel",),
        ),
        cost_estimate=cost,
    )(x_flat, eps_slab, *packed_params)

    mu = ml[:, :LATENT]
    logvar = ml[:, LATENT:2 * LATENT]
    return recon, mu, logvar                         # recon is bf16; caller may upcast


# ----------------------------------------------------------------------------
# Deterministic parameter init (mimics nn.Linear default: U(+-1/sqrt(in))).
# Weights stored as (in_features, out_features); biases as (1, out_features).
# ----------------------------------------------------------------------------
def init_params(key):
    sizes = [(IN, HID), (HID, LATENT), (HID, LATENT), (LATENT, HID), (HID, IN)]
    params = []
    for (fan_in, fan_out) in sizes:
        key, kw, kb = jax.random.split(key, 3)
        bound = 1.0 / math.sqrt(fan_in)
        w = jax.random.uniform(kw, (fan_in, fan_out), jnp.float32, -bound, bound)
        b = jax.random.uniform(kb, (1, fan_out), jnp.float32, -bound, bound)
        params.extend([w, b])
    return tuple(params)


# ----------------------------------------------------------------------------
# Pure-JAX f32 reference (matches the PyTorch module's forward)
# ----------------------------------------------------------------------------
def vae_forward_ref(x, eps, params):
    (w1, b1, w21, b21, w22, b22, w3, b3, w4, b4) = params
    xf = x.reshape(x.shape[0], IN).astype(jnp.float32)
    h1 = jax.nn.relu(xf @ w1 + b1)
    mu = h1 @ w21 + b21
    logvar = h1 @ w22 + b22
    z = mu + eps * jnp.exp(0.5 * logvar)
    h3 = jax.nn.relu(z @ w3 + b3)
    recon = jax.nn.sigmoid(h3 @ w4 + b4)
    return recon, mu, logvar


if __name__ == "__main__":
    key = jax.random.PRNGKey(0)
    k_params, k_x, k_eps = jax.random.split(key, 3)

    B = 80
    params = init_params(k_params)
    packed = pack_params(params)          # hoisted: packed once, reused per forward

    x = jax.random.uniform(k_x, (B, 1, 28, 28), jnp.float32)   # MNIST-like NCHW
    eps = jax.random.normal(k_eps, (B, LATENT), jnp.float32)   # randn_like(std)

    # tb=48 -> grid=(2,): even split across v7x's two TensorCores AND exercises
    # the ragged last block (rows 48..79 valid out of a 48-row tile).
    recon, mu, logvar = vae_forward(x, eps, packed, tb=48)
    jax.block_until_ready((recon, mu, logvar))

    # correctness check against f32 reference (bf16 MXU operands + bf16 recon
    # storage -> loose tolerance)
    r_ref, mu_ref, lv_ref = vae_forward_ref(x, eps, params)
    assert recon.shape == (B, IN) and recon.dtype == jnp.bfloat16
    assert mu.shape == (B, LATENT) and logvar.shape == (B, LATENT)
    assert jnp.allclose(recon.astype(jnp.float32), r_ref, atol=2e-2, rtol=2e-2)
    assert jnp.allclose(mu, mu_ref, atol=2e-2, rtol=2e-2)
    assert jnp.allclose(logvar, lv_ref, atol=2e-2, rtol=2e-2)

    print("KERNEL_OK")
</pallas_src>

<mosaic_0001>
module attributes {stable_mosaic.version = 11 : i64} {
  func.func @vae_fwd_kernel(%arg0: i32, %arg1: memref<48x784xf32, #tpu.memory_space<vmem>>, %arg2: memref<48x128xf32, #tpu.memory_space<vmem>>, %arg3: memref<784x400xbf16, #tpu.memory_space<vmem>>, %arg4: memref<1x400xf32, #tpu.memory_space<vmem>>, %arg5: memref<400x128xbf16, #tpu.memory_space<vmem>>, %arg6: memref<1x128xf32, #tpu.memory_space<vmem>>, %arg7: memref<128x400xbf16, #tpu.memory_space<vmem>>, %arg8: memref<1x400xf32, #tpu.memory_space<vmem>>, %arg9: memref<400x784xbf16, #tpu.memory_space<vmem>>, %arg10: memref<1x784xf32, #tpu.memory_space<vmem>>, %arg11: memref<48x784xbf16, #tpu.memory_space<vmem>>, %arg12: memref<48x128xf32, #tpu.memory_space<vmem>>) attributes {dimension_semantics = [#tpu.dimension_semantics<parallel>], iteration_bounds = array<i64: 2>, scalar_prefetch = 0 : i64, scratch_operands = 0 : i64, tpu.core_type = #tpu.core_type<tc>, window_params = [{transform_indices = @transform_0, window_bounds = array<i64: 48, 784>}, {transform_indices = @transform_1, window_bounds = array<i64: 48, 128>}, {pipeline_mode = #tpu.pipeline_mode<synchronous>, transform_indices = @transform_2, window_bounds = array<i64: 784, 400>}, {pipeline_mode = #tpu.pipeline_mode<synchronous>, transform_indices = @transform_3, window_bounds = array<i64: 1, 400>}, {pipeline_mode = #tpu.pipeline_mode<synchronous>, transform_indices = @transform_4, window_bounds = array<i64: 400, 128>}, {pipeline_mode = #tpu.pipeline_mode<synchronous>, transform_indices = @transform_5, window_bounds = array<i64: 1, 128>}, {pipeline_mode = #tpu.pipeline_mode<synchronous>, transform_indices = @transform_6, window_bounds = array<i64: 128, 400>}, {pipeline_mode = #tpu.pipeline_mode<synchronous>, transform_indices = @transform_7, window_bounds = array<i64: 1, 400>}, {pipeline_mode = #tpu.pipeline_mode<synchronous>, transform_indices = @transform_8, window_bounds = array<i64: 400, 784>}, {pipeline_mode = #tpu.pipeline_mode<synchronous>, transform_indices = @transform_9, window_bounds = array<i64: 1, 784>}, {transform_indices = @transform_10, window_bounds = array<i64: 48, 784>}, {transform_indices = @transform_11, window_bounds = array<i64: 48, 128>}]} {
    %c0 = arith.constant 0 : index
    %c0_0 = arith.constant 0 : index
    %0 = vector.load %arg1[%c0, %c0_0] : memref<48x784xf32, #tpu.memory_space<vmem>>, vector<48x784xf32>
    %1 = arith.truncf %0 : vector<48x784xf32> to vector<48x784xbf16>
    %c0_1 = arith.constant 0 : index
    %c0_2 = arith.constant 0 : index
    %2 = vector.load %arg2[%c0_1, %c0_2] : memref<48x128xf32, #tpu.memory_space<vmem>>, vector<48x128xf32>
    %c0_3 = arith.constant 0 : index
    %c0_4 = arith.constant 0 : index
    %3 = vector.load %arg3[%c0_3, %c0_4] : memref<784x400xbf16, #tpu.memory_space<vmem>>, vector<784x400xbf16>
    %cst = arith.constant dense<0.000000e+00> : vector<48x400xf32>
    %4 = tpu.matmul %1, %3, %cst {dimension_numbers = #tpu.dot_dimension_numbers<[1], [0], [0], [1], [0, 0, 1, 1], [], []>} : vector<48x784xbf16>, vector<784x400xbf16>, vector<48x400xf32> -> vector<48x400xf32>
    %c0_5 = arith.constant 0 : index
    %c0_6 = arith.constant 0 : index
    %5 = vector.load %arg4[%c0_5, %c0_6] : memref<1x400xf32, #tpu.memory_space<vmem>>, vector<1x400xf32>
    %6 = vector.broadcast %5 : vector<1x400xf32> to vector<48x400xf32>
    %7 = arith.addf %4, %6 : vector<48x400xf32>
    %cst_7 = arith.constant 0.000000e+00 : f32
    %8 = vector.broadcast %cst_7 : f32 to vector<48x400xf32>
    %9 = arith.maximumf %7, %8 : vector<48x400xf32>
    %10 = arith.truncf %9 : vector<48x400xf32> to vector<48x400xbf16>
    %c0_8 = arith.constant 0 : index
    %c0_9 = arith.constant 0 : index
    %11 = vector.load %arg5[%c0_8, %c0_9] : memref<400x128xbf16, #tpu.memory_space<vmem>>, vector<400x128xbf16>
    %cst_10 = arith.constant dense<0.000000e+00> : vector<48x128xf32>
    %12 = tpu.matmul %10, %11, %cst_10 {dimension_numbers = #tpu.dot_dimension_numbers<[1], [0], [0], [1], [0, 0, 1, 1], [], []>} : vector<48x400xbf16>, vector<400x128xbf16>, vector<48x128xf32> -> vector<48x128xf32>
    %c0_11 = arith.constant 0 : index
    %c0_12 = arith.constant 0 : index
    %13 = vector.load %arg6[%c0_11, %c0_12] : memref<1x128xf32, #tpu.memory_space<vmem>>, vector<1x128xf32>
    %14 = vector.broadcast %13 : vector<1x128xf32> to vector<48x128xf32>
    %15 = arith.addf %12, %14 : vector<48x128xf32>
    %c0_13 = arith.constant 0 : index
    %c0_14 = arith.constant 0 : index
    %16 = vector.load %arg12[%c0_13, %c0_14] : memref<48x128xf32, #tpu.memory_space<vmem>>, vector<48x128xf32>
    tpu.vector_store %arg12[%c0_13, %c0_14], %15 {strides = array<i32>} : memref<48x128xf32, #tpu.memory_space<vmem>>, vector<48x128xf32>,
    %17 = tpu.iota {dimensions = array<i32: 1>} : vector<48x128xi32>
    %c20_i32 = arith.constant 20 : i32
    %18 = vector.broadcast %c20_i32 : i32 to vector<48x128xi32>
    %19 = arith.cmpi slt, %17, %18 : vector<48x128xi32>
    %cst_15 = arith.constant 0.000000e+00 : f32
    %20 = vector.broadcast %cst_15 : f32 to vector<48x128xf32>
    %21 = arith.select %19, %15, %20 : vector<48x128xi1>, vector<48x128xf32>
    %c20_i32_16 = arith.constant 20 : i32
    %22 = vector.broadcast %c20_i32_16 : i32 to vector<48x128xi32>
    %23 = arith.cmpi sge, %17, %22 : vector<48x128xi32>
    %c40_i32 = arith.constant 40 : i32
    %24 = vector.broadcast %c40_i32 : i32 to vector<48x128xi32>
    %25 = arith.cmpi slt, %17, %24 : vector<48x128xi32>
    %26 = arith.andi %23, %25 : vector<48x128xi1>
    %cst_17 = arith.constant 0.000000e+00 : f32
    %27 = vector.broadcast %cst_17 : f32 to vector<48x128xf32>
    %28 = arith.select %26, %15, %27 : vector<48x128xi1>, vector<48x128xf32>
    %cst_18 = arith.constant 5.000000e-01 : f32
    %29 = vector.broadcast %cst_18 : f32 to vector<48x128xf32>
    %30 = arith.mulf %29, %28 : vector<48x128xf32>
    %31 = math.exp %30 : vector<48x128xf32>
    %32 = arith.mulf %2, %31 : vector<48x128xf32>
    %33 = arith.addf %21, %32 : vector<48x128xf32>
    %34 = arith.truncf %33 : vector<48x128xf32> to vector<48x128xbf16>
    %c0_19 = arith.constant 0 : index
    %c0_20 = arith.constant 0 : index
    %35 = vector.load %arg7[%c0_19, %c0_20] : memref<128x400xbf16, #tpu.memory_space<vmem>>, vector<128x400xbf16>
    %cst_21 = arith.constant dense<0.000000e+00> : vector<48x400xf32>
    %36 = tpu.matmul %34, %35, %cst_21 {dimension_numbers = #tpu.dot_dimension_numbers<[1], [0], [0], [1], [0, 0, 1, 1], [], []>} : vector<48x128xbf16>, vector<128x400xbf16>, vector<48x400xf32> -> vector<48x400xf32>
    %c0_22 = arith.constant 0 : index
    %c0_23 = arith.constant 0 : index
    %37 = vector.load %arg8[%c0_22, %c0_23] : memref<1x400xf32, #tpu.memory_space<vmem>>, vector<1x400xf32>
    %38 = vector.broadcast %37 : vector<1x400xf32> to vector<48x400xf32>
    %39 = arith.addf %36, %38 : vector<48x400xf32>
    %cst_24 = arith.constant 0.000000e+00 : f32
    %40 = vector.broadcast %cst_24 : f32 to vector<48x400xf32>
    %41 = arith.maximumf %39, %40 : vector<48x400xf32>
    %42 = arith.truncf %41 : vector<48x400xf32> to vector<48x400xbf16>
    %c0_25 = arith.constant 0 : index
    %c0_26 = arith.constant 0 : index
    %43 = vector.load %arg9[%c0_25, %c0_26] : memref<400x784xbf16, #tpu.memory_space<vmem>>, vector<400x784xbf16>
    %cst_27 = arith.constant dense<0.000000e+00> : vector<48x784xf32>
    %44 = tpu.matmul %42, %43, %cst_27 {dimension_numbers = #tpu.dot_dimension_numbers<[1], [0], [0], [1], [0, 0, 1, 1], [], []>} : vector<48x400xbf16>, vector<400x784xbf16>, vector<48x784xf32> -> vector<48x784xf32>
    %c0_28 = arith.constant 0 : index
    %c0_29 = arith.constant 0 : index
    %45 = vector.load %arg10[%c0_28, %c0_29] : memref<1x784xf32, #tpu.memory_space<vmem>>, vector<1x784xf32>
    %46 = vector.broadcast %45 : vector<1x784xf32> to vector<48x784xf32>
    %47 = arith.addf %44, %46 : vector<48x784xf32>
    %cst_30 = arith.constant 5.000000e-01 : f32
    %48 = vector.broadcast %cst_30 : f32 to vector<48x784xf32>
    %49 = arith.mulf %48, %47 : vector<48x784xf32>
    %50 = math.tanh %49 : vector<48x784xf32>
    %cst_31 = arith.constant 5.000000e-01 : f32
    %51 = vector.broadcast %cst_31 : f32 to vector<48x784xf32>
    %52 = arith.mulf %51, %50 : vector<48x784xf32>
    %cst_32 = arith.constant 5.000000e-01 : f32
    %53 = vector.broadcast %cst_32 : f32 to vector<48x784xf32>
    %54 = arith.addf %52, %53 : vector<48x784xf32>
    %55 = arith.truncf %54 : vector<48x784xf32> to vector<48x784xbf16>
    %c0_33 = arith.constant 0 : index
    %c0_34 = arith.constant 0 : index
    %56 = vector.load %arg11[%c0_33, %c0_34] : memref<48x784xbf16, #tpu.memory_space<vmem>>, vector<48x784xbf16>
    tpu.vector_store %arg11[%c0_33, %c0_34], %55 {strides = array<i32>} : memref<48x784xbf16, #tpu.memory_space<vmem>>, vector<48x784xbf16>,
    return
  }
  func.func @transform_0(%arg0: i32) -> (i32, i32) {
    %c0_i32 = arith.constant 0 : i32
    %c0_i32_0 = arith.constant 0 : i32
    return %arg0, %c0_i32 : i32, i32
  }
  func.func @transform_1(%arg0: i32) -> (i32, i32) {
    %c0_i32 = arith.constant 0 : i32
    %c0_i32_0 = arith.constant 0 : i32
    return %arg0, %c0_i32 : i32, i32
  }
  func.func @transform_2(%arg0: i32) -> (i32, i32) {
    %c0_i32 = arith.constant 0 : i32
    %c0_i32_0 = arith.constant 0 : i32
    %c0_i32_1 = arith.constant 0 : i32
    return %c0_i32, %c0_i32_0 : i32, i32
  }
  func.func @transform_3(%arg0: i32) -> (i32, i32) {
    %c0_i32 = arith.constant 0 : i32
    %c0_i32_0 = arith.constant 0 : i32
    %c0_i32_1 = arith.constant 0 : i32
    return %c0_i32, %c0_i32_0 : i32, i32
  }
  func.func @transform_4(%arg0: i32) -> (i32, i32) {
    %c0_i32 = arith.constant 0 : i32
    %c0_i32_0 = arith.constant 0 : i32
    %c0_i32_1 = arith.constant 0 : i32
    return %c0_i32, %c0_i32_0 : i32, i32
  }
  func.func @transform_5(%arg0: i32) -> (i32, i32) {
    %c0_i32 = arith.constant 0 : i32
    %c0_i32_0 = arith.constant 0 : i32
    %c0_i32_1 = arith.constant 0 : i32
    return %c0_i32, %c0_i32_0 : i32, i32
  }
  func.func @transform_6(%arg0: i32) -> (i32, i32) {
    %c0_i32 = arith.constant 0 : i32
    %c0_i32_0 = arith.constant 0 : i32
    %c0_i32_1 = arith.constant 0 : i32
    return %c0_i32, %c0_i32_0 : i32, i32
  }
  func.func @transform_7(%arg0: i32) -> (i32, i32) {
    %c0_i32 = arith.constant 0 : i32
    %c0_i32_0 = arith.constant 0 : i32
    %c0_i32_1 = arith.constant 0 : i32
    return %c0_i32, %c0_i32_0 : i32, i32
  }
  func.func @transform_8(%arg0: i32) -> (i32, i32) {
    %c0_i32 = arith.constant 0 : i32
    %c0_i32_0 = arith.constant 0 : i32
    %c0_i32_1 = arith.constant 0 : i32
    return %c0_i32, %c0_i32_0 : i32, i32
  }
  func.func @transform_9(%arg0: i32) -> (i32, i32) {
    %c0_i32 = arith.constant 0 : i32
    %c0_i32_0 = arith.constant 0 : i32
    %c0_i32_1 = arith.constant 0 : i32
    return %c0_i32, %c0_i32_0 : i32, i32
  }
  func.func @transform_10(%arg0: i32) -> (i32, i32) {
    %c0_i32 = arith.constant 0 : i32
    %c0_i32_0 = arith.constant 0 : i32
    return %arg0, %c0_i32 : i32, i32
  }
  func.func @transform_11(%arg0: i32) -> (i32, i32) {
    %c0_i32 = arith.constant 0 : i32
    %c0_i32_0 = arith.constant 0 : i32
    return %arg0, %c0_i32 : i32, i32
  }
}

</mosaic_0001>

<bundles_post_ra>
// kernel: tpu_custom_call.1
= control target key start
LH: loop header
LB: loop body
LE: loop exit
PB: predicated region body
PF: predicated region fallthrough
CT: control target
= control target key end

     0   :  { %s8743_s0 = inlined_call_operand.vmem [shape: f32[80,784], index: 0, kind: input, shape index: {}]   ;;  %s8744_s1 = inlined_call_operand.vmem [shape: f32[80,128], index: 1, kind: input, shape index: {}]   ;;  %s8745_s2 = inlined_call_operand.vmem [shape: bf16[784,400], index: 2, kind: input, shape index: {}]   ;;  %s8746_s3 = inlined_call_operand.vmem [shape: f32[1,400], index: 3, kind: input, shape index: {}]   ;;  %s8747_s4 = inlined_call_operand.vmem [shape: bf16[400,128], index: 4, kind: input, shape index: {}]   ;;  %s8748_s5 = inlined_call_operand.vmem [shape: f32[1,128], index: 5, kind: input, shape index: {}]   ;;  %s8749_s6 = inlined_call_operand.vmem [shape: bf16[128,400], index: 6, kind: input, shape index: {}]   ;;  %s8750_s7 = inlined_call_operand.vmem [shape: f32[1,400], index: 7, kind: input, shape index: {}]   ;;  %s8751_s8 = inlined_call_operand.vmem [shape: bf16[400,784], index: 8, kind: input, shape index: {}]   ;;  %s8752_s9 = inlined_call_operand.vmem [shape: f32[1,784], index: 9, kind: input, shape index: {}]   ;;  %s8753_s10 = inlined_call_operand.hbm [shape: bf16[80,784], index: 10, kind: output, shape index: {0}]   ;;  %s8754_s11 = inlined_call_operand.hbm [shape: f32[80,128], index: 11, kind: output, shape index: {1}]  }
   0x1   :  { %8760 = sst [smem:[#allocation12_spill]] %s8743_s0 }
   0x2   :  { %17 = vsyncpa [#allocation3], 0 }
   0x3   :  { %19 = vsyncpa [#allocation3 + $0x1], 0 }
   0x4   :  { %20 = vsyncpa [#allocation5], 0 }
   0x5   :  { %22 = vsyncpa [#allocation5 + $0x1], 0  ;;  %s6705_s17 = smov 0   ;;  %s6707_s18 = smov 0  }
   0x6   :  { %s6709_s19 = smov 0   ;;  %s6711_s20 = smov 0  }
   0x7 LB: > { %8761 = sst [smem:[#allocation8_spill]] %s6632_s19  ;;  %s6726_s21 = sadd.s32 4294967295, %s6636_s20   ;;  %s6636_s20 = sphi %s6711_s20, %s8774_s20   ;;  %s6632_s19 = sphi %s6709_s19, %s8776_s19   ;;  %s6628_s18 = sphi %s6707_s18, %s8778_s18   ;;  %s6624_s17 = sphi %s6705_s17, %s8777_s17  }
   0x8   : > { %s5178_s22 = sadd.s32 4294967294, %s6636_s20   ;;  %s6730_s23 = sadd.s32 1, %s6636_s20  }
   0x9   : > { %8762 = sst [smem:[#allocation9_spill]] %s6730_s23  ;;  %s255_s24 = sadd.s32 1, %s6632_s19 }
   0xa   : > { %s252_s25 = ssub.s32 %s6636_s20, %s6730_s23  ;;  %p265_p0 = scmp.ne.s32.totalorder %s6632_s19, %s6628_s18 }
   0xb   : > { %p253_p1 = scmp.eq.s32.totalorder %s252_s25, 0  ;;  %p266_p2 = scmp.eq.s32.totalorder %s6726_s21, 1 }
   0xc   : > { %p271_p3 = scmp.ne.s32.totalorder %s6628_s18, %s6624_s17  ;;  %p272_p4 = scmp.eq.s32.totalorder %s5178_s22, 1 }
   0xd   : > { %s6741_s26 = scalar_select %p253_p1, %s6632_s19, %s255_s24  }
   0xe   : > { %p6743_p5 = por %p266_p2, %p265_p0  ;;  %p6747_p6 = por %p272_p4, %p271_p3 }
   0xf   : > { %8763 = sst [smem:[#allocation10_spill]] %s6741_s26  ;;  %p5181_p7 = scmp.ge.s32.totalorder %s6636_s20, 1 }
  0x10   : > { %s8765_s28 = scalar_select %p6747_p6, 1, 0 }
  0x11   : > { %p377_p8 = scmp.lt.s32.totalorder %s6636_s20, 3 }
  0x12   : > { %8766 = sst [smem:[#allocation11_spill]] %s8765_s28 }
  0x13   : > { %p378_p9 = pnand %p5181_p7, %p377_p8 }
  0x14   : > { %s6838_s16 = smul.u32 (!%p378_p9), 6, %s6726_s21  ;;  %s8767_s0 = sld [smem:[#allocation12_spill]] (!%p378_p9) }
  0x15   : > { %381 = sbr.rel (%p378_p9) target bundleno = 1336 (0x538), region = 60 }
  0x16   : > { %p443_p10 = scmp.lt.s32.totalorder (!%p378_p9), %s6838_s16, 9 }
  0x1a   : > { %v5833_v0 = vld [vmem:[%s8745_s2 + $0xe4] ss:$16 sps:$4 sm:$0xff]   ;;  %v5837_v2 = vld [vmem:[%s8745_s2 + $0xe0] ss:$16 sps:$4 sm:$0xff]   ;;  %s6866_s13 = scalar_select %p443_p10, %s6838_s16, 9  ;;  %vm1747_vm0 = vcmask 130048  }
  0x1b   : > { %v5835_v1 = vld [vmem:[%s8745_s2 + $0x2e4] ss:$16 sps:$4 sm:$0xff]   ;;  %1757 = vmatprep.subr.bf16.mxu0 %v5833_v0  ;;  %v5838_v3 = vld [vmem:[%s8745_s2 + $0x2e0] ss:$16 sps:$4 sm:$0xff]   ;;  %vm5001_vm5 = vcmask 125952  }
  0x1c   : > { %1820 = vmatprep.subr.bf16.mxu1 %v5835_v1  ;;  %v5839_v4 = vld [vmem:[%s8745_s2 + $0xc4] ss:$16 sps:$4 sm:$0xff]   ;;  %1758 = vmatpush1.bf16.msra.mxu0 %v5837_v2  ;;  %v5843_v6 = vld [vmem:[%s8745_s2 + $0xc0] ss:$16 sps:$4 sm:$0xff]   ;;  %s5783_s26 = smul.u32 56, %s6866_s13  ;;  %s5183_s15 = sshll.u32 %s6866_s13, 3 }
  0x1d   : > { %1821 = vmatpush1.bf16.msra.mxu1 %v5838_v3  ;;  %v5841_v5 = vld [vmem:[%s8745_s2 + $0x2c4] ss:$16 sps:$4 sm:$0xff]   ;;  %1759 = vmatprep.subr.bf16.mxu0 %v5839_v4  ;;  %v5844_v7 = vld [vmem:[%s8745_s2 + $0x2c0] ss:$16 sps:$4 sm:$0xff]   ;;  %s7833_s24 = scalar_lea.vmem %s8744_s1, %s5183_s15 }
  0x1e   : > { %1822 = vmatprep.subr.bf16.mxu1 %v5841_v5  ;;  %v5845_v8 = vld [vmem:[%s8745_s2 + $0xa4] ss:$16 sps:$4 sm:$0xff]   ;;  %v5849_v10 = vld [vmem:[%s8745_s2 + $0xa0] ss:$16 sps:$4 sm:$0xff]   ;;  %s6896_s28 = scalar_lea.vmem %s8767_s0, %s5783_s26  ;;  %s7766_s26 = sand.u32 1, %s6628_s18  }
  0x1f   : > { %v5847_v9 = vld [vmem:[%s8745_s2 + $0x2a4] ss:$16 sps:$4 sm:$0xff]   ;;  %v5850_v11 = vld [vmem:[%s8745_s2 + $0x2a0] ss:$16 sps:$4 sm:$0xff]   ;;  %v481_v46 = vld [vmem:[%s6896_s28 + $0x8] sm:$0xff]  ;;  %s5781_s13 = smul.u32 168, %s7766_s26 }
  0x20   : > { %1760 = vmatpush1.bf16.msra.mxu0 %v5843_v6  ;;  %v5851_v12 = vld [vmem:[%s8745_s2 + $0x84] ss:$16 sps:$4 sm:$0xff]   ;;  %v5855_v14 = vld [vmem:[%s8745_s2 + $0x80] ss:$16 sps:$4 sm:$0xff]   ;;  %v483_v48 = vld [vmem:[%s6896_s28 + $0x18] sm:$0xff]  ;;  %s8759_s29 = scalar_lea.sflag [#allocation3], %s7766_s26 }
  0x21   : > { %1823 = vmatpush1.bf16.msra.mxu1 %v5844_v7  ;;  %1761 = vmatprep.subr.bf16.mxu0 %v5845_v8  ;;  %v5853_v13 = vld [vmem:[%s8745_s2 + $0x284] ss:$16 sps:$4 sm:$0xff]   ;;  %v5856_v15 = vld [vmem:[%s8745_s2 + $0x280] ss:$16 sps:$4 sm:$0xff]   ;;  %v487_v7 = vld [vmem:[%s6896_s28 + $0x38] sm:$0xff]  ;;  %s8564_s25 = scalar_lea.vmem [#allocation2], %s5781_s13 }
  0x22   : > { %1824 = vmatprep.subr.bf16.mxu1 %v5847_v9  ;;  %v5857_v16 = vld [vmem:[%s8745_s2 + $0x64] ss:$16 sps:$4 sm:$0xff]   ;;  %v5861_v18 = vld [vmem:[%s8745_s2 + $0x60] ss:$16 sps:$4 sm:$0xff]   ;;  %v489_v9 = vld [vmem:[%s6896_s28 + $0x48] sm:$0xff] }
  0x23   : > { %v5859_v17 = vld [vmem:[%s8745_s2 + $0x264] ss:$16 sps:$4 sm:$0xff]   ;;  %v5862_v19 = vld [vmem:[%s8745_s2 + $0x260] ss:$16 sps:$4 sm:$0xff]  }
  0x24   : > { %1762 = vmatpush1.bf16.msra.mxu0 %v5849_v10  ;;  %v5863_v20 = vld [vmem:[%s8745_s2 + $0x44] ss:$16 sps:$4 sm:$0xff]   ;;  %v5867_v22 = vld [vmem:[%s8745_s2 + $0x40] ss:$16 sps:$4 sm:$0xff]  }
  0x25   : > { %1825 = vmatpush1.bf16.msra.mxu1 %v5850_v11  ;;  %1763 = vmatprep.subr.bf16.mxu0 %v5851_v12  ;;  %v5865_v21 = vld [vmem:[%s8745_s2 + $0x244] ss:$16 sps:$4 sm:$0xff]   ;;  %v5868_v23 = vld [vmem:[%s8745_s2 + $0x240] ss:$16 sps:$4 sm:$0xff]   ;;  %v495_v12 = vld [vmem:[%s6896_s28 + $0x78] sm:$0xff] }
  0x26   : > { %1826 = vmatprep.subr.bf16.mxu1 %v5853_v13  ;;  %v5869_v24 = vld [vmem:[%s8745_s2 + $0x24] ss:$16 sps:$4 sm:$0xff]   ;;  %v5873_v26 = vld [vmem:[%s8745_s2 + $0x20] ss:$16 sps:$4 sm:$0xff]  }
  0x27   : > { %v5871_v25 = vld [vmem:[%s8745_s2 + $0x224] ss:$16 sps:$4 sm:$0xff]   ;;  %v5874_v27 = vld [vmem:[%s8745_s2 + $0x220] ss:$16 sps:$4 sm:$0xff]  }
  0x28   : > { %1764 = vmatpush1.bf16.msra.mxu0 %v5855_v14  ;;  %v5875_v28 = vld [vmem:[%s8745_s2 + $0x4] ss:$16 sps:$4 sm:$0xff]   ;;  %v5879_v30 = vld [vmem:[%s8745_s2] ss:$16 sps:$4 sm:$0xff]   ;;  %v497_v14 = vld [vmem:[%s6896_s28 + $0x88] sm:$0xff] }
  0x29   : > { %1827 = vmatpush1.bf16.msra.mxu1 %v5856_v15  ;;  %1765 = vmatprep.subr.bf16.mxu0 %v5857_v16  ;;  %v5877_v29 = vld [vmem:[%s8745_s2 + $0x204] ss:$16 sps:$4 sm:$0xff]   ;;  %v5880_v31 = vld [vmem:[%s8745_s2 + $0x200] ss:$16 sps:$4 sm:$0xff]  }
  0x2a   : > { %1828 = vmatprep.subr.bf16.mxu1 %v5859_v17  ;;  %v5881_v32 = vld [vmem:[%s8745_s2 + $0x1e4] ss:$16 sps:$4 sm:$0xff]   ;;  %v5885_v34 = vld [vmem:[%s8745_s2 + $0x1e0] ss:$16 sps:$4 sm:$0xff]  }
  0x2b   : > { %v5883_v33 = vld [vmem:[%s8745_s2 + $0x3e4] ss:$16 sps:$4 sm:$0xff]   ;;  %v5886_v35 = vld [vmem:[%s8745_s2 + $0x3e0] ss:$16 sps:$4 sm:$0xff]  }
  0x2c   : > { %1766 = vmatpush1.bf16.msra.mxu0 %v5861_v18  ;;  %v5887_v36 = vld [vmem:[%s8745_s2 + $0x1c4] ss:$16 sps:$4 sm:$0xff]   ;;  %v5891_v38 = vld [vmem:[%s8745_s2 + $0x1c0] ss:$16 sps:$4 sm:$0xff]  }
  0x2d   : > { %1829 = vmatpush1.bf16.msra.mxu1 %v5862_v19  ;;  %1767 = vmatprep.subr.bf16.mxu0 %v5863_v20  ;;  %v5889_v37 = vld [vmem:[%s8745_s2 + $0x3c4] ss:$16 sps:$4 sm:$0xff]   ;;  %v5892_v39 = vld [vmem:[%s8745_s2 + $0x3c0] ss:$16 sps:$4 sm:$0xff]  }
  0x2e   : > { %1830 = vmatprep.subr.bf16.mxu1 %v5865_v21  ;;  %v5893_v40 = vld [vmem:[%s8745_s2 + $0x1a4] ss:$16 sps:$4 sm:$0xff]   ;;  %v5897_v42 = vld [vmem:[%s8745_s2 + $0x1a0] ss:$16 sps:$4 sm:$0xff]  }
  0x2f   : > { %v5895_v41 = vld [vmem:[%s8745_s2 + $0x3a4] ss:$16 sps:$4 sm:$0xff]   ;;  %v5898_v43 = vld [vmem:[%s8745_s2 + $0x3a0] ss:$16 sps:$4 sm:$0xff]  }
  0x30   : > { %1768 = vmatpush1.bf16.msra.mxu0 %v5867_v22  ;;  %v5899_v44 = vld [vmem:[%s8745_s2 + $0x184] ss:$16 sps:$4 sm:$0xff]   ;;  %v5903_v50 = vld [vmem:[%s8745_s2 + $0x180] ss:$16 sps:$4 sm:$0xff]  }
  0x31   : > { %1831 = vmatpush1.bf16.msra.mxu1 %v5868_v23  ;;  %1769 = vmatprep.subr.bf16.mxu0 %v5869_v24  ;;  %v5901_v45 = vld [vmem:[%s8745_s2 + $0x384] ss:$16 sps:$4 sm:$0xff]   ;;  %v5904_v51 = vld [vmem:[%s8745_s2 + $0x380] ss:$16 sps:$4 sm:$0xff]  }
  0x32   : > { %1832 = vmatprep.subr.bf16.mxu1 %v5871_v25  ;;  %v488_v47 = vld [vmem:[%s6896_s28 + $0x40] sm:$0xff]  ;;  %v490_v49 = vld [vmem:[%s6896_s28 + $0x50] sm:$0xff]  ;;  %v501_v25 = vld [vmem:[%s6896_s28 + $0xa8] sm:$0xff] }
  0x33   : > { %v5905_v52 = vld [vmem:[%s8745_s2 + $0x164] ss:$16 sps:$4 sm:$0xff]   ;;  %v6917_v53 = vpack.c.bf16 %v488_v47, %v481_v46  ;;  %v6919_v54 = vpack.c.bf16 %v490_v49, %v483_v48  ;;  %v5909_v56 = vld [vmem:[%s8745_s2 + $0x160] ss:$16 sps:$4 sm:$0xff]  }
  0x34   : > { %1770 = vmatpush1.bf16.msra.mxu0 %v5873_v26  ;;  %v5907_v55 = vld [vmem:[%s8745_s2 + $0x364] ss:$16 sps:$4 sm:$0xff]   ;;  %v5910_v57 = vld [vmem:[%s8745_s2 + $0x360] ss:$16 sps:$4 sm:$0xff]  }
  0x35   : > { %1833 = vmatpush1.bf16.msra.mxu1 %v5874_v27  ;;  %1771 = vmatprep.subr.bf16.mxu0 %v5875_v28  ;;  %v5911_v58 = vld [vmem:[%s8745_s2 + $0x144] ss:$16 sps:$4 sm:$0xff]   ;;  %v5915_v60 = vld [vmem:[%s8745_s2 + $0x140] ss:$16 sps:$4 sm:$0xff]   ;;  %v5952_v27 = vld [vmem:[%s8745_s2 + $0xec] ss:$16 sps:$4 sm:$0xff]  }
  0x36   : > { %1834 = vmatprep.subr.bf16.mxu1 %v5877_v29  ;;  %1789 = vmatprep.mubr.bf16.mxu0 %v6917_v53  ;;  %v5913_v59 = vld [vmem:[%s8745_s2 + $0x344] ss:$16 sps:$4 sm:$0xff]   ;;  %v5916_v61 = vld [vmem:[%s8745_s2 + $0x340] ss:$16 sps:$4 sm:$0xff]   ;;  %v503_v28 = vld [vmem:[%s6896_s28 + $0xb8] sm:$0xff] }
  0x37   : > { %1852 = vmatprep.mubr.bf16.mxu1 %v6919_v54  ;;  %v5917_v62 = vld [vmem:[%s8745_s2 + $0x124] ss:$16 sps:$4 sm:$0xff]   ;;  %v5921_v0 = vld [vmem:[%s8745_s2 + $0x120] ss:$16 sps:$4 sm:$0xff]  }
  0x38   : > { %1772 = vmatpush1.bf16.msra.mxu0 %v5879_v30  ;;  %v5919_v63 = vld [vmem:[%s8745_s2 + $0x324] ss:$16 sps:$4 sm:$0xff]   ;;  %v5922_v1 = vld [vmem:[%s8745_s2 + $0x320] ss:$16 sps:$4 sm:$0xff]   ;;  %v509_v30 = vld [vmem:[%s6896_s28 + $0xe8] sm:$0xff] }
  0x39   : > { %1835 = vmatpush1.bf16.msra.mxu1 %v5880_v31  ;;  %1773 = vmatprep.subr.bf16.mxu0 %v5881_v32  ;;  %v5923_v2 = vld [vmem:[%s8745_s2 + $0x104] ss:$16 sps:$4 sm:$0xff]   ;;  %v5927_v4 = vld [vmem:[%s8745_s2 + $0x100] ss:$16 sps:$4 sm:$0xff]   ;;  %v511_v32 = vld [vmem:[%s6896_s28 + $0xf8] sm:$0xff] }
  0x3a   : > { %1836 = vmatprep.subr.bf16.mxu1 %v5883_v33  ;;  %v5925_v3 = vld [vmem:[%s8745_s2 + $0x304] ss:$16 sps:$4 sm:$0xff]   ;;  %v5928_v5 = vld [vmem:[%s8745_s2 + $0x300] ss:$16 sps:$4 sm:$0xff]  }
  0x3b   : > { %v480_v6 = vld [vmem:[%s6896_s28] sm:$0xff]  ;;  %v482_v8 = vld [vmem:[%s6896_s28 + $0x10] sm:$0xff] }
  0x3c   : > { %1774 = vmatpush2.bf16.msra.mxu0 %v5885_v34  ;;  %v5931_v10 = vld [vmem:[%s8745_s2 + $0x4e4] ss:$16 sps:$4 sm:$0xff]   ;;  %v6981_v15 = vpack.c.bf16 %v487_v7, %v480_v6  ;;  %v6983_v16 = vpack.c.bf16 %v489_v9, %v482_v8  ;;  %v5929_v18 = vld [vmem:[%s8745_s2 + $0x4e0] ss:$16 sps:$4 sm:$0xff]   ;;  %v5962_v8 = vld [vmem:[%s8745_s2 + $0xa8] ss:$16 sps:$4 sm:$0xff]  }
  0x3d   : > { %1837 = vmatpush2.bf16.msra.mxu1 %v5886_v35  ;;  %1775 = vmatprep.subr.bf16.mxu0 %v5887_v36  ;;  %v5934_v11 = vld [vmem:[%s8745_s2 + $0x604] ss:$16 sps:$4 sm:$0xff]   ;;  %v5932_v19 = vld [vmem:[%s8745_s2 + $0x600] ss:$16 sps:$4 sm:$0xff]  }
  0x3e   : > { %1838 = vmatprep.subr.bf16.mxu1 %v5889_v37  ;;  %v502_v13 = vld [vmem:[%s6896_s28 + $0xb0] sm:$0xff]  ;;  %v504_v17 = vld [vmem:[%s6896_s28 + $0xc0] sm:$0xff] }
  0x3f   : > { %v5937_v20 = vld [vmem:[%s8745_s2 + $0x4c4] ss:$16 sps:$4 sm:$0xff]   ;;  %v6995_v21 = vpack.c.bf16 %v502_v13, %v495_v12  ;;  %v5935_v22 = vld [vmem:[%s8745_s2 + $0x4c0] ss:$16 sps:$4 sm:$0xff]   ;;  %v7000_v23 = vpack.c.bf16 %v504_v17, %v497_v14  ;;  %v5968_v12 = vld [vmem:[%s8745_s2 + $0x88] ss:$16 sps:$4 sm:$0xff]  }
  0x40   : > { %1776 = vmatpush2.bf16.msra.mxu0 %v5891_v38  ;;  %v494_v24 = vld [vmem:[%s6896_s28 + $0x70] sm:$0xff]  ;;  %v496_v26 = vld [vmem:[%s6896_s28 + $0x80] sm:$0xff]  ;;  %v521_v17 = vld [vmem:[%s6896_s28 + $0x148] sm:$0xff] }
  0x41   : > { %1839 = vmatpush2.bf16.msra.mxu1 %v5892_v39  ;;  %1777 = vmatprep.subr.bf16.mxu0 %v5893_v40  ;;  %v5940_v29 = vld [vmem:[%s8745_s2 + $0x4a4] ss:$16 sps:$4 sm:$0xff]   ;;  %v7020_v34 = vpack.c.bf16 %v501_v25, %v494_v24  ;;  %v7022_v35 = vpack.c.bf16 %v503_v28, %v496_v26  ;;  %v5938_v36 = vld [vmem:[%s8745_s2 + $0x4a0] ss:$16 sps:$4 sm:$0xff]   ;;  %v5982_v25 = vld [vmem:[%s8745_s2 + $0x4c] ss:$16 sps:$4 sm:$0xff]  }
  0x42   : > { %1840 = vmatprep.subr.bf16.mxu1 %v5895_v41  ;;  %v516_v31 = vld [vmem:[%s6896_s28 + $0x120] sm:$0xff]  ;;  %v518_v33 = vld [vmem:[%s6896_s28 + $0x130] sm:$0xff] }
  0x43   : > { %v7027_v37 = vpack.c.bf16 %v516_v31, %v509_v30  ;;  %v5943_v38 = vld [vmem:[%s8745_s2 + $0x484] ss:$16 sps:$4 sm:$0xff]   ;;  %v7032_v39 = vpack.c.bf16 %v518_v33, %v511_v32  ;;  %v5941_v40 = vld [vmem:[%s8745_s2 + $0x480] ss:$16 sps:$4 sm:$0xff]   ;;  %v5986_v31 = vld [vmem:[%s8745_s2 + $0x28] ss:$16 sps:$4 sm:$0xff]  }
  0x44   : > { %1778 = vmatpush2.bf16.msra.mxu0 %v5897_v42  ;;  %v508_v41 = vld [vmem:[%s6896_s28 + $0xe0] sm:$0xff]  ;;  %v515_v42 = vld [vmem:[%s6896_s28 + $0x118] sm:$0xff]  ;;  %v514_v14 = vld [vmem:[%s6896_s28 + $0x110] sm:$0xff] }
  0x45   : > { %1841 = vmatpush2.bf16.msra.mxu1 %v5898_v43  ;;  %1779 = vmatprep.subr.bf16.mxu0 %v5899_v44  ;;  %v510_v43 = vld [vmem:[%s6896_s28 + $0xf0] sm:$0xff]  ;;  %v517_v44 = vld [vmem:[%s6896_s28 + $0x128] sm:$0xff]  ;;  %v7048_v46 = vpack.c.bf16 %v515_v42, %v508_v41 }
  0x46   : > { %1842 = vmatprep.subr.bf16.mxu1 %v5901_v45  ;;  %v5946_v45 = vld [vmem:[%s8745_s2 + $0x464] ss:$16 sps:$4 sm:$0xff]   ;;  %v7050_v47 = vpack.c.bf16 %v517_v44, %v510_v43  ;;  %v5944_v48 = vld [vmem:[%s8745_s2 + $0x460] ss:$16 sps:$4 sm:$0xff]   ;;  %v5994_v33 = vld [vmem:[%s8745_s2 + $0xc] ss:$16 sps:$4 sm:$0xff]  }
  0x47   : > { %v5949_v49 = vld [vmem:[%s8745_s2 + $0x444] ss:$16 sps:$4 sm:$0xff]   ;;  %v5965_v9 = vld [vmem:[%s8745_s2 + $0x5e0] ss:$16 sps:$4 sm:$0xff]   ;;  %v5998_v42 = vld [vmem:[%s8745_s2 + $0x1e8] ss:$16 sps:$4 sm:$0xff]  }
  0x48   : > { %1780 = vmatpush2.bf16.msra.mxu0 %v5903_v50  ;;  %v5947_v50 = vld [vmem:[%s8745_s2 + $0x440] ss:$16 sps:$4 sm:$0xff]   ;;  %v5967_v6 = vld [vmem:[%s8745_s2 + $0x5e4] ss:$16 sps:$4 sm:$0xff]   ;;  %v6006_v44 = vld [vmem:[%s8745_s2 + $0x1cc] ss:$16 sps:$4 sm:$0xff]  }
  0x49   : > { %1843 = vmatpush2.bf16.msra.mxu1 %v5904_v51  ;;  %1781 = vmatprep.subr.bf16.mxu0 %v5905_v52  ;;  %v6638_v51 = vmov 0   ;;  %v486_v52 = vld [vmem:[%s6896_s28 + $0x30] sm:$0xff] }
  0x4a   : > { %1844 = vmatprep.subr.bf16.mxu1 %v5907_v55  ;;  %v493_v55 = vld [vmem:[%s6896_s28 + $0x68] sm:$0xff]  ;;  %v5971_v13 = vld [vmem:[%s8745_s2 + $0x5c0] ss:$16 sps:$4 sm:$0xff]   ;;  %v5985_v26 = vld [vmem:[%s8745_s2 + $0x584] ss:$16 sps:$4 sm:$0xff]  }
  0x4b   : > { %v5977_v24 = vld [vmem:[%s8745_s2 + $0x5a0] ss:$16 sps:$4 sm:$0xff]   ;;  %v5991_v30 = vld [vmem:[%s8745_s2 + $0x564] ss:$16 sps:$4 sm:$0xff]  }
  0x4c   : > { %1782 = vmatpush2.bf16.msra.mxu0 %v5909_v56  ;;  %v5955_v56 = vld [vmem:[%s8745_s2 + $0x424] ss:$16 sps:$4 sm:$0xff]   ;;  %v5983_v28 = vld [vmem:[%s8745_s2 + $0x580] ss:$16 sps:$4 sm:$0xff]  }
  0x4d   : > { %1845 = vmatpush2.bf16.msra.mxu1 %v5910_v57  ;;  %1783 = vmatprep.subr.bf16.mxu0 %v5911_v58  ;;  %v5950_v57 = vld [vmem:[%s8745_s2 + $0xe8] ss:$16 sps:$4 sm:$0xff]   ;;  %v7072_v58 = vpack.c.bf16 %v493_v55, %v486_v52  ;;  %v5989_v32 = vld [vmem:[%s8745_s2 + $0x560] ss:$16 sps:$4 sm:$0xff]   ;;  %v6003_v41 = vld [vmem:[%s8745_s2 + $0x524] ss:$16 sps:$4 sm:$0xff]  }
  0x4e   : > { %1846 = vmatprep.subr.bf16.mxu1 %v5913_v59  ;;  %v485_v59 = vld [vmem:[%s6896_s28 + $0x28] sm:$0xff]  ;;  %v6001_v43 = vld [vmem:[%s8745_s2 + $0x520] ss:$16 sps:$4 sm:$0xff]   ;;  %v491_v52 = vld [vmem:[%s6896_s28 + $0x58] sm:$0xff] }
  0x4f   : > { %v6012_v55 = vld [vmem:[%s8745_s2 + $0x1ac] ss:$16 sps:$4 sm:$0xff]  }
  0x50   : > { %1784 = vmatpush2.bf16.msra.mxu0 %v5915_v60  ;;  %v492_v60 = vld [vmem:[%s6896_s28 + $0x60] sm:$0xff] }
  0x51   : > { %1847 = vmatpush2.bf16.msra.mxu1 %v5916_v61  ;;  %1785 = vmatprep.subr.bf16.mxu0 %v5917_v62  ;;  %v5953_v61 = vld [vmem:[%s8745_s2 + $0x420] ss:$16 sps:$4 sm:$0xff]   ;;  %v7079_v62 = vpack.c.bf16 %v492_v60, %v485_v59 }
  0x52   : > { %1848 = vmatprep.subr.bf16.mxu1 %v5919_v63  ;;  %v5958_v63 = vld [vmem:[%s8745_s2 + $0xcc] ss:$16 sps:$4 sm:$0xff]   ;;  %v506_v60 = vld [vmem:[%s6896_s28 + $0xd0] sm:$0xff] }
  0x54   : > { %1786 = vmatpush2.bf16.msra.mxu0 %v5921_v0  ;;  %v5961_v0 = vld [vmem:[%s8745_s2 + $0x404] ss:$16 sps:$4 sm:$0xff]  }
  0x55   : > { %1849 = vmatpush2.bf16.msra.mxu1 %v5922_v1  ;;  %1787 = vmatprep.subr.bf16.mxu0 %v5923_v2  ;;  %v5956_v1 = vld [vmem:[%s8745_s2 + $0xc8] ss:$16 sps:$4 sm:$0xff]   ;;  %v5959_v2 = vld [vmem:[%s8745_s2 + $0x400] ss:$16 sps:$4 sm:$0xff]  }
  0x56   : > { %1850 = vmatprep.subr.bf16.mxu1 %v5925_v3  ;;  %v5964_v3 = vld [vmem:[%s8745_s2 + $0xac] ss:$16 sps:$4 sm:$0xff]  }
  0x58   : > { %1788 = vmatpush2.bf16.msra.mxu0 %v5927_v4  ;;  %v500_v4 = vld [vmem:[%s6896_s28 + $0xa0] sm:$0xff] }
  0x59   : > { %1851 = vmatpush2.bf16.msra.mxu1 %v5928_v5  ;;  %1883 = vmatprep.subr.bf16.mxu0 %v5931_v10  ;;  %v507_v5 = vld [vmem:[%s6896_s28 + $0xd8] sm:$0xff] }
  0x5a   : > { %1960 = vmatprep.subr.bf16.mxu1 %v5934_v11  ;;  %v7105_v7 = vpack.c.bf16 %v507_v5, %v500_v4  ;;  %v5970_v10 = vld [vmem:[%s8745_s2 + $0x8c] ss:$16 sps:$4 sm:$0xff]   ;;  %v5973_v11 = vld [vmem:[%s8745_s2 + $0x5c4] ss:$16 sps:$4 sm:$0xff]   ;;  %v6019_v4 = vld [vmem:[%s8745_s2 + $0x2c8] ss:$16 sps:$4 sm:$0xff]  }
  0x5b   : > { %1790 = vmatmul.mubr.bf16.vlgmr.msra.gmra.mxu0 %v6981_v15  ;;  %v498_v5 = vld [vmem:[%s6896_s28 + $0x90] sm:$0xff] }
  0x5c   : > { %1853 = vmatmul.mubr.bf16.vlgmr.msra.gmra.mxu1 %v6983_v16  ;;  %1884 = vmatpush1.bf16.msra.mxu0 %v5929_v18  ;;  %v5976_v18 = vld [vmem:[%s8745_s2 + $0x6c] ss:$16 sps:$4 sm:$0xff]  }
  0x5d   : > { %1961 = vmatpush1.bf16.msra.mxu1 %v5932_v19  ;;  %1885 = vmatprep.subr.bf16.mxu0 %v5937_v20  ;;  %v5979_v19 = vld [vmem:[%s8745_s2 + $0x5a4] ss:$16 sps:$4 sm:$0xff]   ;;  %v7136_v20 = vpack.c.bf16 %v521_v17, %v514_v14  ;;  %v6025_v14 = vld [vmem:[%s8745_s2 + $0x2a8] ss:$16 sps:$4 sm:$0xff]   ;;  %v6030_v17 = vld [vmem:[%s8745_s2 + $0x14c] ss:$16 sps:$4 sm:$0xff]  }
  0x5e   : > { %1799 = vmatprep.mubr.bf16.mxu0 %v6995_v21  ;;  %1862 = vmatprep.mubr.bf16.mxu1 %v7000_v23 }
  0x5f   : > { %2009 = vmatprep.subr.bf16.mxu1 %v5952_v27  ;;  %v5980_v27 = vld [vmem:[%s8745_s2 + $0x48] ss:$16 sps:$4 sm:$0xff]  }
  0x60   : > { %1886 = vmatpush1.bf16.msra.mxu0 %v5935_v22  ;;  %v5974_v22 = vld [vmem:[%s8745_s2 + $0x68] ss:$16 sps:$4 sm:$0xff]  }
  0x61   : > { %1887 = vmatprep.subr.bf16.mxu0 %v5940_v29  ;;  %v5988_v29 = vld [vmem:[%s8745_s2 + $0x2c] ss:$16 sps:$4 sm:$0xff]  }
  0x63   : > { %1800 = vmatmul.mubr.bf16.gmra.mxu0 %v7020_v34 }
  0x64   : > { %1863 = vmatmul.mubr.bf16.gmra.mxu1 %v7022_v35  ;;  %1888 = vmatpush1.bf16.msra.mxu0 %v5938_v36  ;;  %v5992_v36 = vld [vmem:[%s8745_s2 + $0x8] ss:$16 sps:$4 sm:$0xff]  }
  0x65   : > { %1809 = vmatprep.mubr.bf16.mxu0 %v7027_v37  ;;  %1889 = vmatprep.subr.bf16.mxu0 %v5943_v38  ;;  %v5995_v38 = vld [vmem:[%s8745_s2 + $0x540] ss:$16 sps:$4 sm:$0xff]  }
  0x66   : > { %1872 = vmatprep.mubr.bf16.mxu1 %v7032_v39 }
  0x68   : > { %1890 = vmatpush1.bf16.msra.mxu0 %v5941_v40  ;;  %v6000_v40 = vld [vmem:[%s8745_s2 + $0x1ec] ss:$16 sps:$4 sm:$0xff]  }
  0x69   : > { %1891 = vmatprep.subr.bf16.mxu0 %v5946_v45  ;;  %v6009_v45 = vld [vmem:[%s8745_s2 + $0x504] ss:$16 sps:$4 sm:$0xff]  }
  0x6b   : > { %1810 = vmatmul.mubr.bf16.gmra.mxu0 %v7048_v46 }
  0x6c   : > { %1873 = vmatmul.mubr.bf16.gmra.mxu1 %v7050_v47  ;;  %1892 = vmatpush1.bf16.msra.mxu0 %v5944_v48  ;;  %v6004_v48 = vld [vmem:[%s8745_s2 + $0x1c8] ss:$16 sps:$4 sm:$0xff]  }
  0x6d   : > { %1978 = vmatprep.mubr.bf16.mxu1 %v6638_v51  ;;  %1893 = vmatprep.subr.bf16.mxu0 %v5949_v49  ;;  %v6007_v49 = vld [vmem:[%s8745_s2 + $0x500] ss:$16 sps:$4 sm:$0xff]  }
  0x6e   : > { %1915 = vmatprep.mubr.bf16.mxu0 %v7079_v62 }
  0x70   : > { %1894 = vmatpush1.bf16.msra.mxu0 %v5947_v50  ;;  %v484_v50 = vld [vmem:[%s6896_s28 + $0x20] sm:$0xff] }
  0x71   : > { %1895 = vmatprep.subr.bf16.mxu0 %v5955_v56  ;;  %v6015_v56 = vld [vmem:[%s8745_s2 + $0x2ec] ss:$16 sps:$4 sm:$0xff]   ;;  %v7216_v59 = vpack.c.bf16 %v491_v52, %v484_v50  ;;  %v6058_v50 = vld [vmem:[%s8745_s2 + $0x4a8] ss:$16 sps:$4 sm:$0xff]  }
  0x72   : > { %v6066_v52 = vld [vmem:[%s8745_s2 + $0x48c] ss:$16 sps:$4 sm:$0xff]  }
  0x74   : > { %5380 = vmatmul.mubr.msk.bf16.vlgmr.msra.gmra.mxu1 %vm1747_vm0, %v7072_v58  ;;  %1896 = vmatpush1.bf16.msra.mxu0 %v5953_v61  ;;  %v6010_v61 = vld [vmem:[%s8745_s2 + $0x1a8] ss:$16 sps:$4 sm:$0xff]  }
  0x75   : > { %2010 = vmatpush1.bf16.msra.mxu1 %v5950_v57  ;;  %1897 = vmatprep.subr.bf16.mxu0 %v5961_v0  ;;  %v499_v57 = vld [vmem:[%s6896_s28 + $0x98] sm:$0xff] }
  0x76   : > { %2011 = vmatprep.subr.bf16.mxu1 %v5958_v63  ;;  %1988 = vmatprep.mubr.bf16.mxu1 %v6638_v51  ;;  %v6013_v63 = vld [vmem:[%s8745_s2 + $0x2e8] ss:$16 sps:$4 sm:$0xff]   ;;  %v6018_v0 = vld [vmem:[%s8745_s2 + $0x18c] ss:$16 sps:$4 sm:$0xff]  }
  0x78   : > { %1898 = vmatpush1.bf16.msra.mxu0 %v5959_v2  ;;  %v6016_v2 = vld [vmem:[%s8745_s2 + $0x188] ss:$16 sps:$4 sm:$0xff]  }
  0x79   : > { %2012 = vmatpush1.bf16.msra.mxu1 %v5956_v1  ;;  %1899 = vmatprep.subr.bf16.mxu0 %v5967_v6  ;;  %v6021_v1 = vld [vmem:[%s8745_s2 + $0x2cc] ss:$16 sps:$4 sm:$0xff]  }
  0x7a   : > { %2013 = vmatprep.subr.bf16.mxu1 %v5964_v3  ;;  %v7234_v3 = vpack.c.bf16 %v506_v60, %v499_v57  ;;  %v505_v6 = vld [vmem:[%s6896_s28 + $0xc8] sm:$0xff] }
  0x7b   : > { %v6072_v57 = vld [vmem:[%s8745_s2 + $0x46c] ss:$16 sps:$4 sm:$0xff]  }
  0x7c   : > { %5381 = vmatmul.mubr.msk.bf16.gmra.mxu1 %vm1747_vm0, %v7105_v7  ;;  %1900 = vmatpush2.bf16.msra.mxu0 %v5965_v9  ;;  %v6027_v9 = vld [vmem:[%s8745_s2 + $0x2ac] ss:$16 sps:$4 sm:$0xff]  }
  0x7d   : > { %2014 = vmatpush1.bf16.msra.mxu1 %v5962_v8  ;;  %1901 = vmatprep.subr.bf16.mxu0 %v5973_v11  ;;  %v6024_v8 = vld [vmem:[%s8745_s2 + $0x16c] ss:$16 sps:$4 sm:$0xff]   ;;  %v7250_v11 = vpack.c.bf16 %v505_v6, %v498_v5  ;;  %v6082_v5 = vld [vmem:[%s8745_s2 + $0x428] ss:$16 sps:$4 sm:$0xff]  }
  0x7e   : > { %2015 = vmatprep.subr.bf16.mxu1 %v5970_v10  ;;  %1998 = vmatprep.mubr.bf16.mxu1 %v6638_v51  ;;  %v513_v10 = vld [vmem:[%s6896_s28 + $0x108] sm:$0xff] }
  0x7f   : > { %v6075_v60 = vld [vmem:[%s8745_s2 + $0x3ac] ss:$16 sps:$4 sm:$0xff]   ;;  %v6085_v6 = vld [vmem:[%s8745_s2 + $0x368] ss:$16 sps:$4 sm:$0xff]  }
  0x80   : > { %1902 = vmatpush2.bf16.msra.mxu0 %v5971_v13  ;;  %v6022_v13 = vld [vmem:[%s8745_s2 + $0x168] ss:$16 sps:$4 sm:$0xff]  }
  0x81   : > { %2016 = vmatpush1.bf16.msra.mxu1 %v5968_v12  ;;  %1903 = vmatprep.subr.bf16.mxu0 %v5979_v19  ;;  %v520_v12 = vld [vmem:[%s6896_s28 + $0x140] sm:$0xff]  ;;  %v6028_v19 = vld [vmem:[%s8745_s2 + $0x148] ss:$16 sps:$4 sm:$0xff]  }
  0x82   : > { %2017 = vmatprep.subr.bf16.mxu1 %v5976_v18  ;;  %v6033_v18 = vld [vmem:[%s8745_s2 + $0x28c] ss:$16 sps:$4 sm:$0xff]  }
  0x84   : > { %5382 = vmatmul.mubr.msk.bf16.gmra.mxu1 %vm1747_vm0, %v7136_v20  ;;  %1904 = vmatpush2.bf16.msra.mxu0 %v5977_v24  ;;  %v6031_v24 = vld [vmem:[%s8745_s2 + $0x288] ss:$16 sps:$4 sm:$0xff]  }
  0x85   : > { %2018 = vmatpush1.bf16.msra.mxu1 %v5974_v22  ;;  %1905 = vmatprep.subr.bf16.mxu0 %v5985_v26  ;;  %v7268_v22 = vpack.c.bf16 %v520_v12, %v513_v10  ;;  %v519_v26 = vld [vmem:[%s6896_s28 + $0x138] sm:$0xff] }
  0x86   : > { %2019 = vmatprep.subr.bf16.mxu1 %v5982_v25  ;;  %2041 = vmatprep.mubr.bf16.mxu1 %v6917_v53  ;;  %v5997_v53 = vld [vmem:[%s8745_s2 + $0x544] ss:$16 sps:$4 sm:$0xff]   ;;  %v6096_v10 = vld [vmem:[%s8745_s2 + $0x5ec] ss:$16 sps:$4 sm:$0xff]  }
  0x87   : > { %v512_v25 = vld [vmem:[%s6896_s28 + $0x100] sm:$0xff]  ;;  %v6099_v12 = vld [vmem:[%s8745_s2 + $0x32c] ss:$16 sps:$4 sm:$0xff]   ;;  %s5782_s28 = smul.u32 48, %s7766_s26 }
  0x88   : > { %1906 = vmatpush2.bf16.msra.mxu0 %v5983_v28  ;;  %v6039_v28 = vld [vmem:[%s8745_s2 + $0x26c] ss:$16 sps:$4 sm:$0xff]  }
  0x89   : > { %2020 = vmatpush1.bf16.msra.mxu1 %v5980_v27  ;;  %1907 = vmatprep.subr.bf16.mxu0 %v5991_v30  ;;  %v6036_v27 = vld [vmem:[%s8745_s2 + $0x12c] ss:$16 sps:$4 sm:$0xff]   ;;  %v7286_v30 = vpack.c.bf16 %v519_v26, %v512_v25  ;;  %s7807_s14 = scalar_lea.vmem [#allocation4], %s5782_s28 }
  0x8a   : > { %2021 = vmatprep.subr.bf16.mxu1 %v5988_v29  ;;  %v6034_v29 = vld [vmem:[%s8745_s2 + $0x128] ss:$16 sps:$4 sm:$0xff]   ;;  %v6108_v25 = vld [vmem:[%s8745_s2 + $0x5ac] ss:$16 sps:$4 sm:$0xff]  }
  0x8b   : > { %v6111_v26 = vld [vmem:[%s8745_s2 + $0x60c] ss:$16 sps:$4 sm:$0xff]  }
  0x8c   : > { %1908 = vmatpush2.bf16.msra.mxu0 %v5989_v32  ;;  %v6042_v32 = vld [vmem:[%s8745_s2 + $0x10c] ss:$16 sps:$4 sm:$0xff]  }
  0x8d   : > { %2022 = vmatpush1.bf16.msra.mxu1 %v5986_v31  ;;  %1909 = vmatprep.subr.bf16.mxu0 %v5997_v53  ;;  %v6037_v31 = vld [vmem:[%s8745_s2 + $0x268] ss:$16 sps:$4 sm:$0xff]  }
  0x8e   : > { %2023 = vmatprep.subr.bf16.mxu1 %v5994_v33  ;;  %v6045_v33 = vld [vmem:[%s8745_s2 + $0x24c] ss:$16 sps:$4 sm:$0xff]   ;;  %v6040_v53 = vld [vmem:[%s8745_s2 + $0x108] ss:$16 sps:$4 sm:$0xff]  }
  0x90   : > { %1910 = vmatpush2.bf16.msra.mxu0 %v5995_v38  ;;  %v6048_v38 = vld [vmem:[%s8745_s2 + $0x4ec] ss:$16 sps:$4 sm:$0xff]  }
  0x91   : > { %2024 = vmatpush1.bf16.msra.mxu1 %v5992_v36  ;;  %1911 = vmatprep.subr.bf16.mxu0 %v6003_v41  ;;  %v6043_v36 = vld [vmem:[%s8745_s2 + $0x248] ss:$16 sps:$4 sm:$0xff]  }
  0x92   : > { %2025 = vmatprep.subr.bf16.mxu1 %v6000_v40  ;;  %v6051_v40 = vld [vmem:[%s8745_s2 + $0x22c] ss:$16 sps:$4 sm:$0xff]   ;;  %v6046_v41 = vld [vmem:[%s8745_s2 + $0x4e8] ss:$16 sps:$4 sm:$0xff]  }
  0x94   : > { %1912 = vmatpush2.bf16.msra.mxu0 %v6001_v43  ;;  %v6054_v43 = vld [vmem:[%s8745_s2 + $0x4cc] ss:$16 sps:$4 sm:$0xff]  }
  0x95   : > { %2026 = vmatpush2.bf16.msra.mxu1 %v5998_v42  ;;  %1913 = vmatprep.subr.bf16.mxu0 %v6009_v45  ;;  %v6049_v42 = vld [vmem:[%s8745_s2 + $0x228] ss:$16 sps:$4 sm:$0xff]  }
  0x96   : > { %2027 = vmatprep.subr.bf16.mxu1 %v6006_v44  ;;  %v6057_v44 = vld [vmem:[%s8745_s2 + $0x20c] ss:$16 sps:$4 sm:$0xff]   ;;  %v6052_v45 = vld [vmem:[%s8745_s2 + $0x4c8] ss:$16 sps:$4 sm:$0xff]  }
  0x98   : > { %1914 = vmatpush2.bf16.msra.mxu0 %v6007_v49  ;;  %v6063_v49 = vld [vmem:[%s8745_s2 + $0x3ec] ss:$16 sps:$4 sm:$0xff]  }
  0x99   : > { %2028 = vmatpush2.bf16.msra.mxu1 %v6004_v48  ;;  %2072 = vmatprep.subr.bf16.mxu0 %v6015_v56  ;;  %v6060_v48 = vld [vmem:[%s8745_s2 + $0x4ac] ss:$16 sps:$4 sm:$0xff]   ;;  %v6064_v56 = vld [vmem:[%s8745_s2 + $0x488] ss:$16 sps:$4 sm:$0xff]  }
  0x9a   : > { %2029 = vmatprep.subr.bf16.mxu1 %v6012_v55  ;;  %v6069_v55 = vld [vmem:[%s8745_s2 + $0x3cc] ss:$16 sps:$4 sm:$0xff]  }
  0x9b   : > { %1916 = vmatmul.mubr.bf16.vlgmr.msra.gmra.mxu0 %v7216_v59 }
  0x9c   : > { %2073 = vmatpush1.bf16.msra.mxu0 %v6013_v63  ;;  %1925 = vmatprep.mubr.bf16.mxu0 %v7234_v3  ;;  %v6073_v63 = vld [vmem:[%s8745_s2 + $0x3a8] ss:$16 sps:$4 sm:$0xff]  }
  0x9d   : > { %2030 = vmatpush2.bf16.msra.mxu1 %v6010_v61  ;;  %2074 = vmatprep.subr.bf16.mxu0 %v6021_v1  ;;  %v6070_v61 = vld [vmem:[%s8745_s2 + $0x468] ss:$16 sps:$4 sm:$0xff]  }
  0x9e   : > { %2031 = vmatprep.subr.bf16.mxu1 %v6018_v0  ;;  %v6078_v0 = vld [vmem:[%s8745_s2 + $0x44c] ss:$16 sps:$4 sm:$0xff]   ;;  %v6076_v1 = vld [vmem:[%s8745_s2 + $0x448] ss:$16 sps:$4 sm:$0xff]  }
  0xa0   : > { %2075 = vmatpush1.bf16.msra.mxu0 %v6019_v4  ;;  %v6087_v4 = vld [vmem:[%s8745_s2 + $0x36c] ss:$16 sps:$4 sm:$0xff]  }
  0xa1   : > { %2032 = vmatpush2.bf16.msra.mxu1 %v6016_v2  ;;  %2076 = vmatprep.subr.bf16.mxu0 %v6027_v9  ;;  %v6084_v2 = vld [vmem:[%s8745_s2 + $0x42c] ss:$16 sps:$4 sm:$0xff]   ;;  %v6088_v9 = vld [vmem:[%s8745_s2 + $0x408] ss:$16 sps:$4 sm:$0xff]  }
  0xa2   : > { %2033 = vmatprep.subr.bf16.mxu1 %v6024_v8  ;;  %v6090_v8 = vld [vmem:[%s8745_s2 + $0x40c] ss:$16 sps:$4 sm:$0xff]  }
  0xa3   : > { %1926 = vmatmul.mubr.bf16.gmra.mxu0 %v7250_v11 }
  0xa4   : > { %2077 = vmatpush1.bf16.msra.mxu0 %v6025_v14  ;;  %1935 = vmatprep.mubr.bf16.mxu0 %v7268_v22  ;;  %v6097_v14 = vld [vmem:[%s8745_s2 + $0x328] ss:$16 sps:$4 sm:$0xff]  }
  0xa5   : > { %2034 = vmatpush2.bf16.msra.mxu1 %v6022_v13  ;;  %2078 = vmatprep.subr.bf16.mxu0 %v6033_v18  ;;  %v6094_v13 = vld [vmem:[%s8745_s2 + $0x5e8] ss:$16 sps:$4 sm:$0xff]   ;;  %v6105_v18 = vld [vmem:[%s8745_s2 + $0x30c] ss:$16 sps:$4 sm:$0xff]  }
  0xa6   : > { %2035 = vmatprep.subr.bf16.mxu1 %v6030_v17  ;;  %v6102_v17 = vld [vmem:[%s8745_s2 + $0x5cc] ss:$16 sps:$4 sm:$0xff]  }
  0xa8   : > { %2079 = vmatpush1.bf16.msra.mxu0 %v6031_v24  ;;  %v6103_v24 = vld [vmem:[%s8745_s2 + $0x308] ss:$16 sps:$4 sm:$0xff]  }
  0xa9   : > { %2036 = vmatpush2.bf16.msra.mxu1 %v6028_v19  ;;  %2080 = vmatprep.subr.bf16.mxu0 %v6039_v28  ;;  %v6100_v19 = vld [vmem:[%s8745_s2 + $0x5c8] ss:$16 sps:$4 sm:$0xff]  }
  0xaa   : > { %2037 = vmatprep.subr.bf16.mxu1 %v6036_v27  ;;  %v6106_v27 = vld [vmem:[%s8745_s2 + $0x5a8] ss:$16 sps:$4 sm:$0xff]  }
  0xab   : > { %1936 = vmatmul.mubr.bf16.gmra.mxu0 %v7286_v30  ;;  %v6109_v28 = vld [vmem:[%s8745_s2 + $0x608] ss:$16 sps:$4 sm:$0xff]  }
  0xac   : > { %2081 = vmatpush1.bf16.msra.mxu0 %v6037_v31  ;;  %2104 = vmatprep.mubr.bf16.mxu0 %v6919_v54  ;;  %v6055_v54 = vld [vmem:[%s8745_s2 + $0x208] ss:$16 sps:$4 sm:$0xff]  }
  0xad   : > { %2038 = vmatpush2.bf16.msra.mxu1 %v6034_v29  ;;  %2082 = vmatprep.subr.bf16.mxu0 %v6045_v33  ;;  %v6114_v29 = vld [vmem:[%s8745_s2 + $0x58c] ss:$16 sps:$4 sm:$0xff]   ;;  %v6112_v31 = vld [vmem:[%s8745_s2 + $0x588] ss:$16 sps:$4 sm:$0xff]  }
  0xae   : > { %2039 = vmatprep.subr.bf16.mxu1 %v6042_v32  ;;  %v6127_v32 = vld [vmem:[%s8747_s4 + $0x78] sm:$0xff]  }
  0xaf   : > { %v6117_v33 = vld [vmem:[%s8745_s2 + $0x56c] ss:$16 sps:$4 sm:$0xff]  }
  0xb0   : > { %2083 = vmatpush1.bf16.msra.mxu0 %v6043_v36  ;;  %v6120_v36 = vld [vmem:[%s8745_s2 + $0x54c] ss:$16 sps:$4 sm:$0xff]  }
  0xb1   : > { %2040 = vmatpush2.bf16.msra.mxu1 %v6040_v53  ;;  %2084 = vmatprep.subr.bf16.mxu0 %v6051_v40  ;;  %v6115_v53 = vld [vmem:[%s8745_s2 + $0x568] ss:$16 sps:$4 sm:$0xff]   ;;  %v6126_v40 = vld [vmem:[%s8745_s2 + $0x50c] ss:$16 sps:$4 sm:$0xff]  }
  0xb2   : > { %2135 = vmatprep.subr.bf16.mxu1 %v6048_v38  ;;  %v6121_v38 = vld [vmem:[%s8745_s2 + $0x528] ss:$16 sps:$4 sm:$0xff]  }
  0xb4   : > { %2042 = vmatmul.mubr.bf16.vlgmr.msra.gmra.mxu1 %v6981_v15  ;;  %2085 = vmatpush1.bf16.msra.mxu0 %v6049_v42  ;;  %v6061_v15 = vld [vmem:[%s8745_s2 + $0x3e8] ss:$16 sps:$4 sm:$0xff]  }
  0xb5   : > { %2136 = vmatpush1.bf16.msra.mxu1 %v6046_v41  ;;  %2086 = vmatprep.subr.bf16.mxu0 %v6057_v44  ;;  %v6129_v41 = vld [vmem:[%s8747_s4 + $0x70] sm:$0xff]   ;;  %v6131_v42 = vld [vmem:[%s8747_s4 + $0x68] sm:$0xff]  }
  0xb6   : > { %2137 = vmatprep.subr.bf16.mxu1 %v6054_v43  ;;  %2051 = vmatprep.mubr.bf16.mxu1 %v6995_v21  ;;  %v6067_v21 = vld [vmem:[%s8745_s2 + $0x3c8] ss:$16 sps:$4 sm:$0xff]  }
  0xb7   : > { %v6135_v43 = vld [vmem:[%s8747_s4 + $0x58] sm:$0xff]   ;;  %v6139_v44 = vld [vmem:[%s8747_s4 + $0x48] sm:$0xff]  }
  0xb8   : > { %2087 = vmatpush1.bf16.msra.mxu0 %v6055_v54 }
  0xb9   : > { %2138 = vmatpush1.bf16.msra.mxu1 %v6052_v45  ;;  %2088 = vmatprep.subr.bf16.mxu0 %v6063_v49  ;;  %v6140_v45 = vld [vmem:[%s8747_s4 + $0x8] sm:$0xff]   ;;  %v6143_v49 = vld [vmem:[%s8747_s4 + $0xb8] sm:$0xff]  }
  0xba   : > { %2139 = vmatprep.subr.bf16.mxu1 %v6060_v48 }
  0xbc   : > { %2052 = vmatmul.mubr.bf16.gmra.mxu1 %v7020_v34  ;;  %2089 = vmatpush2.bf16.msra.mxu0 %v6061_v15  ;;  %v6081_v34 = vld [vmem:[%s8745_s2 + $0x38c] ss:$16 sps:$4 sm:$0xff]   ;;  %v6144_v15 = vld [vmem:[%s8747_s4 + $0xb0] sm:$0xff]  }
  0xbd   : > { %2140 = vmatpush1.bf16.msra.mxu1 %v6058_v50  ;;  %2090 = vmatprep.subr.bf16.mxu0 %v6069_v55  ;;  %v6145_v55 = vld [vmem:[%s8747_s4 + $0xa8] sm:$0xff]  }
  0xbe   : > { %2141 = vmatprep.subr.bf16.mxu1 %v6066_v52  ;;  %2061 = vmatprep.mubr.bf16.mxu1 %v7027_v37  ;;  %v6079_v37 = vld [vmem:[%s8745_s2 + $0x388] ss:$16 sps:$4 sm:$0xff]  }
  0xc0   : > { %2091 = vmatpush2.bf16.msra.mxu0 %v6067_v21  ;;  %v6146_v21 = vld [vmem:[%s8747_s4 + $0xa0] sm:$0xff]  }
  0xc1   : > { %2142 = vmatpush1.bf16.msra.mxu1 %v6064_v56  ;;  %2092 = vmatprep.subr.bf16.mxu0 %v6075_v60 }
  0xc2   : > { %2143 = vmatprep.subr.bf16.mxu1 %v6072_v57 }
  0xc4   : > { %2062 = vmatmul.mubr.bf16.gmra.mxu1 %v7048_v46  ;;  %2093 = vmatpush2.bf16.msra.mxu0 %v6073_v63  ;;  %v6093_v46 = vld [vmem:[%s8745_s2 + $0x34c] ss:$16 sps:$4 sm:$0xff]  }
  0xc5   : > { %2144 = vmatpush1.bf16.msra.mxu1 %v6070_v61  ;;  %2094 = vmatprep.subr.bf16.mxu0 %v6081_v34  ;;  %v6147_v61 = vld [vmem:[%s8747_s4 + $0x98] sm:$0xff]   ;;  %v6148_v34 = vld [vmem:[%s8747_s4 + $0x90] sm:$0xff]  }
  0xc6   : > { %2145 = vmatprep.subr.bf16.mxu1 %v6078_v0  ;;  %2167 = vmatprep.mubr.bf16.mxu1 %v7079_v62  ;;  %v6091_v62 = vld [vmem:[%s8745_s2 + $0x348] ss:$16 sps:$4 sm:$0xff]  }
  0xc8   : > { %2095 = vmatpush2.bf16.msra.mxu0 %v6079_v37 }
  0xc9   : > { %2146 = vmatpush1.bf16.msra.mxu1 %v6076_v1  ;;  %2096 = vmatprep.subr.bf16.mxu0 %v6087_v4 }
  0xca   : > { %2147 = vmatprep.subr.bf16.mxu1 %v6084_v2  ;;  %v6149_v2 = vld [vmem:[%s8747_s4 + $0x88] sm:$0xff]  }
  0xcc   : > { %2097 = vmatpush2.bf16.msra.mxu0 %v6085_v6  ;;  %v6150_v6 = vld [vmem:[%s8747_s4 + $0x80] sm:$0xff]  }
  0xcd   : > { %2148 = vmatpush1.bf16.msra.mxu1 %v6082_v5  ;;  %2098 = vmatprep.subr.bf16.mxu0 %v6093_v46 }
  0xce   : > { %2149 = vmatprep.subr.bf16.mxu1 %v6090_v8 }
  0xd0   : > { %2099 = vmatpush2.bf16.msra.mxu0 %v6091_v62 }
  0xd1   : > { %2150 = vmatpush1.bf16.msra.mxu1 %v6088_v9  ;;  %2100 = vmatprep.subr.bf16.mxu0 %v6099_v12  ;;  %v6151_v9 = vld [vmem:[%s8747_s4 + $0xc0] sm:$0xff]  }
  0xd2   : > { %2151 = vmatprep.subr.bf16.mxu1 %v6096_v10 }
  0xd4   : > { %2101 = vmatpush2.bf16.msra.mxu0 %v6097_v14  ;;  %v747_v14 = vlaneseq }
  0xd5   : > { %2152 = vmatpush2.bf16.msra.mxu1 %v6094_v13  ;;  %2102 = vmatprep.subr.bf16.mxu0 %v6105_v18 }
  0xd6   : > { %2153 = vmatprep.subr.bf16.mxu1 %v6102_v17 }
  0xd8   : > { %2103 = vmatpush2.bf16.msra.mxu0 %v6103_v24 }
  0xd9   : > { %2154 = vmatpush2.bf16.msra.mxu1 %v6100_v19  ;;  %2212 = vmatprep.subr.bf16.mxu0 %v6111_v26  ;;  %v7601_v19 = vshrl.u32 %v747_v14, 7 }
  0xda   : > { %2155 = vmatprep.subr.bf16.mxu1 %v6108_v25 }
  0xdb   : > { %2105 = vmatmul.mubr.bf16.vlgmr.msra.gmra.mxu0 %v6983_v16  ;;  %v6118_v16 = vld [vmem:[%s8745_s2 + $0x548] ss:$16 sps:$4 sm:$0xff]   ;;  %v7604_v26 = vsub.s32 1, %v7601_v19 }
  0xdc   : > { %2213 = vmatpush1.bf16.msra.mxu0 %v6109_v28  ;;  %2114 = vmatprep.mubr.bf16.mxu0 %v7000_v23  ;;  %v6123_v23 = vld [vmem:[%s8745_s2 + $0x52c] ss:$16 sps:$4 sm:$0xff]  }
  0xdd   : > { %2156 = vmatpush2.bf16.msra.mxu1 %v6106_v27  ;;  %5695 = vmatprep.subr.bf16.mxu0 %v6127_v32  ;;  %v7607_v27 = vsub.s32 0, %v7601_v19 }
  0xde   : > { %2157 = vmatprep.subr.bf16.mxu1 %v6114_v29 }
  0xe1   : > { %2158 = vmatpush2.bf16.msra.mxu1 %v6112_v31  ;;  %v7612_v31 = vld [vmem:[%s8746_s3] sm:$0xf] }
  0xe2   : > { %2159 = vmatprep.subr.bf16.mxu1 %v6117_v33  ;;  %v7616_v32 = vrot.slane %v7612_v31, %v7604_v26  ;;  %v750_v33 = vrot.slane %v7612_v31, %v7607_v27 }
  0xe3   : > { %2115 = vmatmul.mubr.bf16.gmra.mxu0 %v7022_v35  ;;  %v6124_v35 = vld [vmem:[%s8745_s2 + $0x508] ss:$16 sps:$4 sm:$0xff]  }
  0xe4   : > { %2124 = vmatprep.mubr.bf16.mxu0 %v7032_v39  ;;  %v6128_v39 = vld [vmem:[%s8747_s4 + $0x38] sm:$0xff]  }
  0xe5   : > { %2160 = vmatpush2.bf16.msra.mxu1 %v6115_v53 }
  0xe6   : > { %2161 = vmatprep.subr.bf16.mxu1 %v6120_v36 }
  0xe9   : > { %2162 = vmatpush2.bf16.msra.mxu1 %v6118_v16 }
  0xea   : > { %2163 = vmatprep.subr.bf16.mxu1 %v6123_v23 }
  0xeb   : > { %2125 = vmatmul.mubr.bf16.gmra.mxu0 %v7050_v47  ;;  %v6130_v47 = vld [vmem:[%s8747_s4 + $0x30] sm:$0xff]  }
  0xec   : > { %2230 = vmatprep.mubr.bf16.mxu0 %v6638_v51 }
  0xed   : > { %2164 = vmatpush2.bf16.msra.mxu1 %v6121_v38 }
  0xee   : > { %2165 = vmatprep.subr.bf16.mxu1 %v6126_v40 }
  0xf1   : > { %2166 = vmatpush2.bf16.msra.mxu1 %v6124_v35 }
  0xf2   : > { %2570 = vmatprep.subr.bf16.mxu1 %v6638_v51 }
  0xf3   : > { %5383 = vmatmul.mubr.msk.bf16.vlgmr.msra.gmra.mxu0 %vm1747_vm0, %v7072_v58  ;;  %v6133_v58 = vld [vmem:[%s8747_s4 + $0x60] sm:$0xff]  }
  0xf4   : > { %2168 = vmatmul.mubr.bf16.vlgmr.msra.gmra.mxu1 %v7216_v59  ;;  %2240 = vmatprep.mubr.bf16.mxu0 %v6638_v51  ;;  %v6132_v59 = vld [vmem:[%s8747_s4 + $0x28] sm:$0xff]  }
  0xf5   : > { %2177 = vmatprep.mubr.bf16.mxu1 %v7234_v3  ;;  %5696 = vmatpush3.bf16.msra.mxu0 %v6128_v39  ;;  %v6134_v3 = vld [vmem:[%s8747_s4 + $0x20] sm:$0xff]  }
  0xf6   : > { %5697 = vmatprep.subr.bf16.mxu0 %v6129_v41  ;;  %2571 = vmatpush1.bf16.msra.mxu1 %v6143_v49 }
  0xf7   : > { %2572 = vmatprep.subr.bf16.mxu1 %v6638_v51 }
  0xf9   : > { %5698 = vmatpush3.bf16.msra.mxu0 %v6130_v47 }
  0xfa   : > { %5699 = vmatprep.subr.bf16.mxu0 %v6131_v42  ;;  %2573 = vmatpush1.bf16.msra.mxu1 %v6144_v15 }
  0xfb   : > { %5384 = vmatmul.mubr.msk.bf16.gmra.mxu0 %vm1747_vm0, %v7105_v7  ;;  %v6137_v7 = vld [vmem:[%s8747_s4 + $0x50] sm:$0xff]   ;;  %2574 = vmatprep.subr.bf16.mxu1 %v6638_v51 }
  0xfc   : > { %2178 = vmatmul.mubr.bf16.gmra.mxu1 %v7250_v11  ;;  %2250 = vmatprep.mubr.bf16.mxu0 %v6638_v51  ;;  %v6136_v11 = vld [vmem:[%s8747_s4 + $0x18] sm:$0xff]  }
  0xfd   : > { %2187 = vmatprep.mubr.bf16.mxu1 %v7268_v22  ;;  %5700 = vmatpush3.bf16.msra.mxu0 %v6132_v59  ;;  %v6138_v22 = vld [vmem:[%s8747_s4 + $0x10] sm:$0xff]  }
  0xfe   : > { %5701 = vmatprep.subr.bf16.mxu0 %v6133_v58  ;;  %2575 = vmatpush1.bf16.msra.mxu1 %v6145_v55 }
  0xff   : > { %2576 = vmatprep.subr.bf16.mxu1 %v6638_v51 }
 0x101   : > { %5702 = vmatpush3.bf16.msra.mxu0 %v6134_v3 }
 0x102   : > { %5703 = vmatprep.subr.bf16.mxu0 %v6135_v43  ;;  %2577 = vmatpush1.bf16.msra.mxu1 %v6146_v21 }
 0x103   : > { %5385 = vmatmul.mubr.msk.bf16.gmra.mxu0 %vm1747_vm0, %v7136_v20  ;;  %v6142_v20 = vld [vmem:[%s8747_s4] sm:$0xff]   ;;  %2578 = vmatprep.subr.bf16.mxu1 %v6638_v51 }
 0x104   : > { %2188 = vmatmul.mubr.bf16.gmra.mxu1 %v7286_v30  ;;  %v6141_v30 = vld [vmem:[%s8747_s4 + $0x40] sm:$0xff]  }
 0x105   : > { %5704 = vmatpush3.bf16.msra.mxu0 %v6136_v11 }
 0x106   : > { %5705 = vmatprep.subr.bf16.mxu0 %v6137_v7  ;;  %2579 = vmatpush1.bf16.msra.mxu1 %v6147_v61 }
 0x107   : > { %2580 = vmatprep.subr.bf16.mxu1 %v6638_v51 }
 0x109   : > { %5706 = vmatpush3.bf16.msra.mxu0 %v6138_v22 }
 0x10a   : > { %5707 = vmatprep.subr.bf16.mxu0 %v6139_v44  ;;  %2581 = vmatpush1.bf16.msra.mxu1 %v6148_v34 }
 0x10b   : > { %2582 = vmatprep.subr.bf16.mxu1 %v6638_v51 }
 0x10d   : > { %5708 = vmatpush3.bf16.msra.mxu0 %v6140_v45 }
 0x10e   : > { %5709 = vmatprep.subr.bf16.mxu0 %v6141_v30  ;;  %2583 = vmatpush1.bf16.msra.mxu1 %v6149_v2 }
 0x10f   : > { %2584 = vmatprep.subr.bf16.mxu1 %v6638_v51 }
 0x111   : > { %5710 = vmatpush3.bf16.msra.mxu0 %v6142_v20 }
 0x112   : > { %2585 = vmatpush1.bf16.msra.mxu1 %v6150_v6 }
 0x113   : > { %2600 = vmatprep.subr.bf16.mxu1 %v6638_v51 }
 0x116   : > { %2601 = vmatpush2.bf16.msra.mxu1 %v6151_v9 }
 0x11b   : > { %v1791_v57 = vpop.f32.mrf.mxu0 }
 0x11c   : > { %v7541_v54 = vpop.f32.mrf.mxu1  ;;  %v1792_v38 = vadd.f32 %v1791_v57, %v750_v33 }
 0x11d   : > { %v1793_v63 = vpop.f32.mrf.mxu0 }
 0x11e   : > { %v7543_v48 = vpop.f32.mrf.mxu1  ;;  %v1794_v23 = vadd.f32 %v1793_v63, %v7616_v32  ;;  %v1855_v59 = vadd.f32 %v7541_v54, %v1792_v38 }
 0x11f   : > { %v1795_v1 = vpop.f32.mrf.mxu0 }
 0x120   : > { %v7548_v50 = vpop.f32.mrf.mxu1  ;;  %v1796_v35 = vadd.f32 %v1795_v1, %v750_v33  ;;  %v1857_v47 = vadd.f32 %v7543_v48, %v1794_v23 }
 0x121   : > { %v1797_v4 = vpop.f32.mrf.mxu0 }
 0x122   : > { %v7554_v52 = vpop.f32.mrf.mxu1  ;;  %v1798_v42 = vadd.f32 %v1797_v4, %v7616_v32  ;;  %v1859_v3 = vadd.f32 %v7548_v50, %v1796_v35 }
 0x123   : > { %v1801_v8 = vpop.f32.mrf.mxu0 }
 0x124   : > { %v7560_v56 = vpop.f32.mrf.mxu1  ;;  %v1861_v44 = vadd.f32 %v7554_v52, %v1798_v42  ;;  %v1802_v20 = vadd.f32 %v1801_v8, %v750_v33 }
 0x125   : > { %v1803_v62 = vpop.f32.mrf.mxu0 }
 0x126   : > { %v7566_v60 = vpop.f32.mrf.mxu1  ;;  %v1804_v45 = vadd.f32 %v1803_v62, %v7616_v32  ;;  %v1865_v1 = vadd.f32 %v7560_v56, %v1802_v20 }
 0x127   : > { %v1805_v12 = vpop.f32.mrf.mxu0 }
 0x128   : > { %v7572_v0 = vpop.f32.mrf.mxu1  ;;  %v1806_v15 = vadd.f32 %v1805_v12, %v750_v33  ;;  %v1867_v50 = vadd.f32 %v7566_v60, %v1804_v45 }
 0x129   : > { %v1807_v17 = vpop.f32.mrf.mxu0 }
 0x12a   : > { %v7578_v37 = vpop.f32.mrf.mxu1  ;;  %v1808_v63 = vadd.f32 %v1807_v17, %v7616_v32  ;;  %v1869_v4 = vadd.f32 %v7572_v0, %v1806_v15 }
 0x12b   : > { %v1811_v24 = vpop.f32.mrf.mxu0 }
 0x12c   : > { %v7584_v5 = vpop.f32.mrf.mxu1 }
 0x12d   : > { %v1813_v28 = vpop.f32.mrf.mxu0 }
 0x12e   : > { %v7590_v46 = vpop.f32.mrf.mxu1  ;;  %v1814_v60 = vadd.f32 %v1813_v28, %v7616_v32 }
 0x12f   : > { %v1815_v53 = vpop.f32.mrf.mxu0 }
 0x130   : > { %v7596_v10 = vpop.f32.mrf.mxu1  ;;  %v1816_v35 = vadd.f32 %v1815_v53, %v750_v33 }
 0x131   : > { %v1817_v40 = vpop.f32.mrf.mxu0 }
 0x132   : > { %v7598_v13 = vpop.f32.mrf.mxu1 }
 0x134   : > { %v1980_v18 = vpop.f32.mrf.mxu1 }
 0x136   : > { %v1982_v25 = vpop.f32.mrf.mxu1 }
 0x138   : > { %v1984_v29 = vpop.f32.mrf.mxu1 }
 0x13a   : > { %v1986_v36 = vpop.f32.mrf.mxu1 }
 0x13c   : > { %v1990_v16 = vpop.f32.mrf.mxu1 }
 0x13e   : > { %v1992_v41 = vpop.f32.mrf.mxu1 }
 0x140   : > { %v1994_v22 = vpop.f32.mrf.mxu1 }
 0x142   : > { %v1996_v61 = vpop.f32.mrf.mxu1 }
 0x15b   : > { %v1917_v39 = vpop.f32.mrf.mxu0 }
 0x15c   : > { %v1918_v11 = vadd.f32 %v1917_v39, %v1855_v59 }
 0x15d   : > { %v1919_v58 = vpop.f32.mrf.mxu0 }
 0x15e   : > { %v1920_v43 = vadd.f32 %v1919_v58, %v1857_v47  ;;  %v1981_v57 = vadd.f32 %v1980_v18, %v1918_v11 }
 0x15f   : > { %v1921_v7 = vpop.f32.mrf.mxu0 }
 0x160   : > { %v1922_v30 = vadd.f32 %v1921_v7, %v1859_v3  ;;  %v1983_v48 = vadd.f32 %v1982_v25, %v1920_v43  ;;  %v2261_v62 = vmax.f32 %v1981_v57, 0.0  ;;  %v2000_v25 = vpop.f32.mrf.mxu1  ;;  %v1877_v3 = vadd.f32 %v7590_v46, %v1814_v60 }
 0x161   : > { %v1923_v49 = vpop.f32.mrf.mxu0  ;;  %v1879_v7 = vadd.f32 %v7596_v10, %v1816_v35 }
 0x162   : > { %v1985_v55 = vadd.f32 %v1984_v29, %v1922_v30  ;;  %v1924_v21 = vadd.f32 %v1923_v49, %v1861_v44  ;;  %v2262_v6 = vmax.f32 %v1983_v48, 0.0  ;;  %v1871_v29 = vadd.f32 %v7578_v37, %v1808_v63  ;;  %v2002_v59 = vpop.f32.mrf.mxu1 }
 0x163   : > { %v1927_v54 = vpop.f32.mrf.mxu0  ;;  %v1818_v37 = vadd.f32 %v1817_v40, %v7616_v32 }
 0x164   : > { %v1987_v34 = vadd.f32 %v1986_v36, %v1924_v21  ;;  %v2265_v52 = vmax.f32 %v1985_v55, 0.0  ;;  %v1928_v12 = vadd.f32 %v1927_v54, %v1865_v1  ;;  %v1812_v36 = vadd.f32 %v1811_v24, %v750_v33  ;;  %v2004_v44 = vpop.f32.mrf.mxu1 }
 0x165   : > { %v1929_v2 = vpop.f32.mrf.mxu0  ;;  %v1881_v30 = vadd.f32 %v7598_v13, %v1818_v37 }
 0x166   : > { %v2266_v8 = vmax.f32 %v1987_v34, 0.0  ;;  %v1930_v9 = vadd.f32 %v1929_v2, %v1867_v50  ;;  %v2285_v38 = vpack.c.bf16 %v2265_v52, %v2261_v62  ;;  %v1991_v42 = vadd.f32 %v1990_v16, %v1928_v12  ;;  %v2006_v55 = vpop.f32.mrf.mxu1 }
 0x167   : > { %v1931_v18 = vpop.f32.mrf.mxu0  ;;  %v1875_v28 = vadd.f32 %v7584_v5, %v1812_v36 }
 0x168   : > { %v1932_v23 = vadd.f32 %v1931_v18, %v1869_v4  ;;  %v2286_v17 = vpack.c.bf16 %v2266_v8, %v2262_v6  ;;  %v1993_v39 = vadd.f32 %v1992_v41, %v1930_v9 }
 0x169   : > { %v1933_v56 = vpop.f32.mrf.mxu0 }
 0x16a   : > { %v1995_v47 = vadd.f32 %v1994_v22, %v1932_v23  ;;  %v1934_v0 = vadd.f32 %v1933_v56, %v1871_v29  ;;  %2545 = vmatprep.mubr.bf16.mxu0 %v2286_v17  ;;  %v2270_v33 = vmax.f32 %v1993_v39, 0.0  ;;  %v2269_v22 = vmax.f32 %v1991_v42, 0.0 }
 0x16b   : > { %v1937_v58 = vpop.f32.mrf.mxu0  ;;  %2546 = vmatmul.mubr.bf16.vlgmr.msra.gmra.mxu0 %v2285_v38  ;;  %v7640_v38 = vsub.s32 3, %v7601_v19  ;;  %v7643_v56 = vsub.s32 2, %v7601_v19 }
 0x16c   : > { %v1997_v43 = vadd.f32 %v1996_v61, %v1934_v0  ;;  %v2273_v11 = vmax.f32 %v1995_v47, 0.0  ;;  %v1938_v16 = vadd.f32 %v1937_v58, %v1875_v28 }
 0x16d   : > { %v1939_v24 = vpop.f32.mrf.mxu0  ;;  %v7653_v0 = vrot.slane %v7612_v31, %v7640_v38  ;;  %v7657_v42 = vrot.slane %v7612_v31, %v7643_v56 }
 0x16e   : > { %v2274_v53 = vmax.f32 %v1997_v43, 0.0  ;;  %v1940_v41 = vadd.f32 %v1939_v24, %v1877_v3  ;;  %v2289_v32 = vpack.c.bf16 %v2273_v11, %v2269_v22  ;;  %v2001_v48 = vadd.f32 %v2000_v25, %v1938_v16 }
 0x16f   : > { %v1941_v45 = vpop.f32.mrf.mxu0 }
 0x170   : > { %v1942_v20 = vadd.f32 %v1941_v45, %v1879_v7  ;;  %v2290_v46 = vpack.c.bf16 %v2274_v53, %v2270_v33  ;;  %v2003_v40 = vadd.f32 %v2002_v59, %v1940_v41  ;;  %v2277_v61 = vmax.f32 %v2001_v48, 0.0 }
 0x171   : > { %v1943_v49 = vpop.f32.mrf.mxu0 }
 0x172   : > { %v2005_v15 = vadd.f32 %v2004_v44, %v1942_v20  ;;  %v1944_v5 = vadd.f32 %v1943_v49, %v1881_v30  ;;  %2553 = vmatprep.mubr.bf16.mxu0 %v2290_v46  ;;  %v2278_v57 = vmax.f32 %v2003_v40, 0.0 }
 0x173   : > { %2554 = vmatmul.mubr.bf16.gmra.mxu0 %v2289_v32 }
 0x174   : > { %v2007_v10 = vadd.f32 %v2006_v55, %v1944_v5  ;;  %v2281_v21 = vmax.f32 %v2005_v15, 0.0  ;;  %v2043_v13 = vpop.f32.mrf.mxu1 }
 0x175   : > { %v2044_v43 = vadd.f32 %v2043_v13, %v7657_v42 }
 0x176   : > { %v2282_v54 = vmax.f32 %v2007_v10, 0.0  ;;  %v2293_v63 = vpack.c.bf16 %v2281_v21, %v2277_v61  ;;  %v2045_v34 = vpop.f32.mrf.mxu1 }
 0x177   : > { %v2046_v37 = vadd.f32 %v2045_v34, %v7653_v0 }
 0x178   : > { %v2294_v50 = vpack.c.bf16 %v2282_v54, %v2278_v57  ;;  %v2047_v1 = vpop.f32.mrf.mxu1 }
 0x179   : > { %v2048_v24 = vadd.f32 %v2047_v1, %v7657_v42 }
 0x17a   : > { %2561 = vmatprep.mubr.bf16.mxu0 %v2294_v50  ;;  %v2049_v52 = vpop.f32.mrf.mxu1 }
 0x17b   : > { %2562 = vmatmul.mubr.bf16.gmra.mxu0 %v2293_v63  ;;  %v2050_v31 = vadd.f32 %v2049_v52, %v7653_v0 }
 0x17c   : > { %2930 = vmatprep.mubr.bf16.mxu0 %v6638_v51  ;;  %v2053_v2 = vpop.f32.mrf.mxu1 }
 0x17d   : > { %v2054_v32 = vadd.f32 %v2053_v2, %v7657_v42 }
 0x17e   : > { %v2055_v4 = vpop.f32.mrf.mxu1 }
 0x17f   : > { %v2056_v20 = vadd.f32 %v2055_v4, %v7653_v0 }
 0x180   : > { %v2057_v9 = vpop.f32.mrf.mxu1 }
 0x181   : > { %v2058_v54 = vadd.f32 %v2057_v9, %v7657_v42 }
 0x182   : > { %v2059_v25 = vpop.f32.mrf.mxu1 }
 0x183   : > { %v2060_v63 = vadd.f32 %v2059_v25, %v7653_v0 }
 0x184   : > { %v2063_v29 = vpop.f32.mrf.mxu1 }
 0x186   : > { %v2065_v17 = vpop.f32.mrf.mxu1 }
 0x188   : > { %v7647_v39 = vpop.f32.mrf.mxu1 }
 0x18a   : > { %v7661_v58 = vpop.f32.mrf.mxu1 }
 0x19b   : > { %v2106_v6 = vpop.f32.mrf.mxu0 }
 0x19c   : > { %v2107_v33 = vadd.f32 %v2106_v6, %v2044_v43 }
 0x19d   : > { %v2108_v8 = vpop.f32.mrf.mxu0 }
 0x19e   : > { %v2109_v7 = vadd.f32 %v2108_v8, %v2046_v37 }
 0x19f   : > { %v2110_v62 = vpop.f32.mrf.mxu0 }
 0x1a0   : > { %v2111_v22 = vadd.f32 %v2110_v62, %v2048_v24  ;;  %v2064_v24 = vadd.f32 %v2063_v29, %v7657_v42  ;;  %v2070_v29 = vadd.f32 %v7661_v58, %v7653_v0 }
 0x1a1   : > { %v2112_v12 = vpop.f32.mrf.mxu0 }
 0x1a2   : > { %v2113_v46 = vadd.f32 %v2112_v12, %v2050_v31 }
 0x1a3   : > { %v2116_v18 = vpop.f32.mrf.mxu0 }
 0x1a4   : > { %v2117_v13 = vadd.f32 %v2116_v18, %v2054_v32 }
 0x1a5   : > { %v2118_v60 = vpop.f32.mrf.mxu0 }
 0x1a6   : > { %v2119_v61 = vadd.f32 %v2118_v60, %v2056_v20 }
 0x1a7   : > { %v2120_v23 = vpop.f32.mrf.mxu0 }
 0x1a8   : > { %v2121_v4 = vadd.f32 %v2120_v23, %v2058_v54 }
 0x1a9   : > { %v2122_v36 = vpop.f32.mrf.mxu0 }
 0x1ab   : > { %v7645_v35 = vpop.f32.mrf.mxu0 }
 0x1ad   : > { %v7649_v47 = vpop.f32.mrf.mxu0 }
 0x1af   : > { %v7659_v59 = vpop.f32.mrf.mxu0 }
 0x1b1   : > { %v7663_v3 = vpop.f32.mrf.mxu0 }
 0x1b3   : > { %v2232_v11 = vpop.f32.mrf.mxu0 }
 0x1b4   : > { %v2169_v28 = vpop.f32.mrf.mxu1 }
 0x1b5   : > { %v2234_v41 = vpop.f32.mrf.mxu0  ;;  %v2170_v16 = vadd.f32 %v2169_v28, %v2107_v33  ;;  %v2066_v28 = vadd.f32 %v2065_v17, %v7653_v0  ;;  %v2068_v17 = vadd.f32 %v7647_v39, %v7657_v42 }
 0x1b6   : > { %v2171_v53 = vpop.f32.mrf.mxu1 }
 0x1b7   : > { %v2172_v44 = vadd.f32 %v2171_v53, %v2109_v7  ;;  %v2236_v30 = vpop.f32.mrf.mxu0  ;;  %v2233_v10 = vadd.f32 %v2232_v11, %v2170_v16  ;;  %v2123_v11 = vadd.f32 %v2122_v36, %v2060_v63  ;;  %v2129_v36 = vadd.f32 %v7649_v47, %v2066_v28  ;;  %v6164_v28 = vld [vmem:[%s8749_s6 + $0xa0] ss:$16 sps:$4 sm:$0xff]  }
 0x1b8   : > { %v2173_v45 = vpop.f32.mrf.mxu1  ;;  %v2127_v16 = vadd.f32 %v7645_v35, %v2064_v24  ;;  %v2133_v47 = vadd.f32 %v7663_v3, %v2070_v29  ;;  %v6154_v3 = vld [vmem:[%s8749_s6 + $0xe4] ss:$16 sps:$4 sm:$0xff]   ;;  %v6170_v24 = vld [vmem:[%s8749_s6 + $0x80] ss:$16 sps:$4 sm:$0xff]   ;;  %v6191_v29 = vld [vmem:[%s8749_s6 + $0x28] ss:$16 sps:$4 sm:$0xff]  }
 0x1b9   : > { %v2174_v49 = vadd.f32 %v2173_v45, %v2111_v22  ;;  %v2238_v15 = vpop.f32.mrf.mxu0  ;;  %v2235_v5 = vadd.f32 %v2234_v41, %v2172_v44  ;;  %v2263_v62 = vmax.f32 %v2233_v10, 0.0  ;;  %2898 = vmatprep.subr.bf16.mxu0 %v6154_v3 }
 0x1ba   : > { %v2175_v40 = vpop.f32.mrf.mxu1 }
 0x1bb   : > { %v2237_v48 = vadd.f32 %v2236_v30, %v2174_v49  ;;  %v2176_v55 = vadd.f32 %v2175_v40, %v2113_v46  ;;  %v2242_v57 = vpop.f32.mrf.mxu0  ;;  %v2264_v2 = vmax.f32 %v2235_v5, 0.0  ;;  %v2131_v46 = vadd.f32 %v7659_v59, %v2068_v17  ;;  %v6190_v17 = vld [vmem:[%s8749_s6 + $0x24] ss:$16 sps:$4 sm:$0xff]  }
 0x1bc   : > { %v2179_v21 = vpop.f32.mrf.mxu1 }
 0x1bd   : > { %v2239_v50 = vadd.f32 %v2238_v15, %v2176_v55  ;;  %v2267_v34 = vmax.f32 %v2237_v48, 0.0  ;;  %v2244_v52 = vpop.f32.mrf.mxu0  ;;  %v2180_v12 = vadd.f32 %v2179_v21, %v2117_v13 }
 0x1be   : > { %v2181_v1 = vpop.f32.mrf.mxu1 }
 0x1bf   : > { %v2268_v6 = vmax.f32 %v2239_v50, 0.0  ;;  %v2182_v8 = vadd.f32 %v2181_v1, %v2119_v61  ;;  %v2246_v43 = vpop.f32.mrf.mxu0  ;;  %v2287_v25 = vpack.c.bf16 %v2267_v34, %v2263_v62  ;;  %v2243_v41 = vadd.f32 %v2242_v57, %v2180_v12  ;;  %v6158_v62 = vld [vmem:[%s8749_s6 + $0xc0] ss:$16 sps:$4 sm:$0xff]   ;;  %v6161_v12 = vld [vmem:[%s8749_s6 + $0xc8] ss:$16 sps:$4 sm:$0xff]  }
 0x1c0   : > { %v2183_v37 = vpop.f32.mrf.mxu1 }
 0x1c1   : > { %v2288_v9 = vpack.c.bf16 %v2268_v6, %v2264_v2  ;;  %v2184_v60 = vadd.f32 %v2183_v37, %v2121_v4  ;;  %v2248_v7 = vpop.f32.mrf.mxu0  ;;  %v2245_v33 = vadd.f32 %v2244_v52, %v2182_v8  ;;  %v2271_v15 = vmax.f32 %v2243_v41, 0.0  ;;  %v6157_v52 = vld [vmem:[%s8749_s6 + $0xec] ss:$16 sps:$4 sm:$0xff]   ;;  %v6152_v4 = vld [vmem:[%s8749_s6 + $0xe0] ss:$16 sps:$4 sm:$0xff]  }
 0x1c2   : > { %v2185_v18 = vpop.f32.mrf.mxu1  ;;  %v6155_v2 = vld [vmem:[%s8749_s6 + $0xe8] ss:$16 sps:$4 sm:$0xff]   ;;  %2961 = vmatprep.subr.bf16.mxu1 %v6157_v52  ;;  %2899 = vmatpush1.bf16.msra.mxu0 %v6152_v4  ;;  %v6160_v6 = vld [vmem:[%s8749_s6 + $0xc4] ss:$16 sps:$4 sm:$0xff]   ;;  %v6163_v8 = vld [vmem:[%s8749_s6 + $0xcc] ss:$16 sps:$4 sm:$0xff]  }
 0x1c3   : > { %v2186_v53 = vadd.f32 %v2185_v18, %v2123_v11  ;;  %v2247_v23 = vadd.f32 %v2246_v43, %v2184_v60  ;;  %5412 = vmatprep.mubr.msk.bf16.mxu1 %vm1747_vm0, %v2288_v9  ;;  %v2252_v22 = vpop.f32.mrf.mxu0  ;;  %v2272_v49 = vmax.f32 %v2245_v33, 0.0  ;;  %2900 = vmatprep.subr.bf16.mxu0 %v6160_v6  ;;  %v6166_v37 = vld [vmem:[%s8749_s6 + $0xa4] ss:$16 sps:$4 sm:$0xff]   ;;  %v6169_v43 = vld [vmem:[%s8749_s6 + $0xac] ss:$16 sps:$4 sm:$0xff]  }
 0x1c4   : > { %v2189_v31 = vpop.f32.mrf.mxu1  ;;  %2603 = vmatmul.mubr.bf16.vlgmr.msra.gmra.mxu1 %v2287_v25  ;;  %v6167_v11 = vld [vmem:[%s8749_s6 + $0xa8] ss:$16 sps:$4 sm:$0xff]   ;;  %v6172_v9 = vld [vmem:[%s8749_s6 + $0x84] ss:$16 sps:$4 sm:$0xff]   ;;  %v6175_v60 = vld [vmem:[%s8749_s6 + $0x8c] ss:$16 sps:$4 sm:$0xff]  }
 0x1c5   : > { %v2249_v44 = vadd.f32 %v2248_v7, %v2186_v53  ;;  %v2275_v45 = vmax.f32 %v2247_v23, 0.0  ;;  %v2254_v20 = vpop.f32.mrf.mxu0  ;;  %v2190_v5 = vadd.f32 %v2189_v31, %v2127_v16  ;;  %2962 = vmatpush1.bf16.msra.mxu1 %v6155_v2  ;;  %v6173_v25 = vld [vmem:[%s8749_s6 + $0x88] ss:$16 sps:$4 sm:$0xff]   ;;  %v6178_v18 = vld [vmem:[%s8749_s6 + $0x64] ss:$16 sps:$4 sm:$0xff]  }
 0x1c6   : > { %v2191_v30 = vpop.f32.mrf.mxu1  ;;  %2963 = vmatprep.subr.bf16.mxu1 %v6163_v8  ;;  %2901 = vmatpush1.bf16.msra.mxu0 %v6158_v62  ;;  %v6181_v7 = vld [vmem:[%s8749_s6 + $0x6c] ss:$16 sps:$4 sm:$0xff]   ;;  %v6176_v33 = vld [vmem:[%s8749_s6 + $0x60] ss:$16 sps:$4 sm:$0xff]   ;;  %v6179_v53 = vld [vmem:[%s8749_s6 + $0x68] ss:$16 sps:$4 sm:$0xff]  }
 0x1c7   : > { %v2276_v32 = vmax.f32 %v2249_v44, 0.0  ;;  %v2192_v40 = vadd.f32 %v2191_v30, %v2129_v36  ;;  %v2256_v39 = vpop.f32.mrf.mxu0  ;;  %v2291_v10 = vpack.c.bf16 %v2275_v45, %v2271_v15  ;;  %v2253_v59 = vadd.f32 %v2252_v22, %v2190_v5  ;;  %2902 = vmatprep.subr.bf16.mxu0 %v6166_v37  ;;  %v6184_v23 = vld [vmem:[%s8749_s6 + $0x44] ss:$16 sps:$4 sm:$0xff]   ;;  %v6187_v41 = vld [vmem:[%s8749_s6 + $0x4c] ss:$16 sps:$4 sm:$0xff]  }
 0x1c8   : > { %v2193_v48 = vpop.f32.mrf.mxu1  ;;  %v6182_v31 = vld [vmem:[%s8749_s6 + $0x40] ss:$16 sps:$4 sm:$0xff]   ;;  %v6185_v22 = vld [vmem:[%s8749_s6 + $0x48] ss:$16 sps:$4 sm:$0xff]   ;;  %v6193_v36 = vld [vmem:[%s8749_s6 + $0x2c] ss:$16 sps:$4 sm:$0xff]  }
 0x1c9   : > { %v2292_v42 = vpack.c.bf16 %v2276_v32, %v2272_v49  ;;  %v2194_v55 = vadd.f32 %v2193_v48, %v2131_v46  ;;  %v2258_v58 = vpop.f32.mrf.mxu0  ;;  %v2255_v35 = vadd.f32 %v2254_v20, %v2192_v40  ;;  %v2279_v13 = vmax.f32 %v2253_v59, 0.0  ;;  %2964 = vmatpush1.bf16.msra.mxu1 %v6161_v12  ;;  %v6188_v44 = vld [vmem:[%s8749_s6 + $0x20] ss:$16 sps:$4 sm:$0xff]   ;;  %v6196_v16 = vld [vmem:[%s8749_s6 + $0x4] ss:$16 sps:$4 sm:$0xff]  }
 0x1ca   : > { %v2195_v0 = vpop.f32.mrf.mxu1  ;;  %2965 = vmatprep.subr.bf16.mxu1 %v6169_v43  ;;  %2903 = vmatpush1.bf16.msra.mxu0 %v6164_v28  ;;  %v6199_v45 = vld [vmem:[%s8749_s6 + $0xc] ss:$16 sps:$4 sm:$0xff]   ;;  %v6194_v30 = vld [vmem:[%s8749_s6] ss:$16 sps:$4 sm:$0xff]   ;;  %v6197_v20 = vld [vmem:[%s8749_s6 + $0x8] ss:$16 sps:$4 sm:$0xff]  }
 0x1cb   : > { %v2196_v21 = vadd.f32 %v2195_v0, %v2133_v47  ;;  %v2257_v57 = vadd.f32 %v2256_v39, %v2194_v55  ;;  %5413 = vmatprep.mubr.msk.bf16.mxu1 %vm1747_vm0, %v2292_v42  ;;  %v2280_v50 = vmax.f32 %v2255_v35, 0.0  ;;  %2904 = vmatprep.subr.bf16.mxu0 %v6172_v9  ;;  %v6202_v46 = vld [vmem:[%s8751_s8 + $0x18c] ss:$28 sps:$4 sm:$0xff]   ;;  %v7793_v42 = vand.u32 127, %v747_v14  ;;  %v5386_v0 = vld [vmem:[%s8748_s5] ss:$0 sm:$0xff] }
 0x1cc   : > { %2611 = vmatmul.mubr.bf16.gmra.mxu1 %v2291_v10  ;;  %v6226_v49 = vld [vmem:[%s8751_s8 + $0x50c] ss:$28 sps:$4 sm:$0xff]  }
 0x1cd   : > { %v2259_v54 = vadd.f32 %v2258_v58, %v2196_v21  ;;  %v2283_v61 = vmax.f32 %v2257_v57, 0.0  ;;  %2966 = vmatpush1.bf16.msra.mxu1 %v6167_v11  ;;  %vm2642_vm1 = vcmp.ge.s32.totalorder %v7793_v42, 20  ;;  %vm2643_vm2 = vcmp.lt.s32.totalorder %v7793_v42, 40 }
 0x1ce   : > { %2967 = vmatprep.subr.bf16.mxu1 %v6175_v60  ;;  %2905 = vmatpush1.bf16.msra.mxu0 %v6170_v24  ;;  %vm7801_vm3 = vmand %vm2642_vm1, %vm2643_vm2  ;;  %vm2635_vm4 = vcmp.lt.s32.totalorder %v7793_v42, 20  ;;  %v6248_v42 = vld [vmem:[%s8751_s8 + $0x428] ss:$28 sps:$4 sm:$0xff]  }
 0x1cf   : > { %v2284_v63 = vmax.f32 %v2259_v54, 0.0  ;;  %v2295_v1 = vpack.c.bf16 %v2283_v61, %v2279_v13  ;;  %2906 = vmatprep.subr.bf16.mxu0 %v6178_v18 }
 0x1d1   : > { %v2296_v34 = vpack.c.bf16 %v2284_v63, %v2280_v50  ;;  %2968 = vmatpush1.bf16.msra.mxu1 %v6173_v25 }
 0x1d2   : > { %2969 = vmatprep.subr.bf16.mxu1 %v6181_v7  ;;  %2907 = vmatpush1.bf16.msra.mxu0 %v6176_v33 }
 0x1d3   : > { %5414 = vmatprep.mubr.msk.bf16.mxu1 %vm1747_vm0, %v2296_v34  ;;  %2908 = vmatprep.subr.bf16.mxu0 %v6184_v23 }
 0x1d4   : > { %2619 = vmatmul.mubr.bf16.gmra.mxu1 %v2295_v1 }
 0x1d5   : > { %2993 = vmatprep.mubr.bf16.mxu1 %v6638_v51  ;;  %2970 = vmatpush1.bf16.msra.mxu1 %v6179_v53 }
 0x1d6   : > { %2971 = vmatprep.subr.bf16.mxu1 %v6187_v41  ;;  %2909 = vmatpush1.bf16.msra.mxu0 %v6182_v31 }
 0x1d7   : > { %2910 = vmatprep.subr.bf16.mxu0 %v6190_v17 }
 0x1d9   : > { %2972 = vmatpush1.bf16.msra.mxu1 %v6185_v22 }
 0x1da   : > { %2973 = vmatprep.subr.bf16.mxu1 %v6193_v36  ;;  %2911 = vmatpush1.bf16.msra.mxu0 %v6188_v44 }
 0x1db   : > { %2912 = vmatprep.subr.bf16.mxu0 %v6196_v16 }
 0x1dd   : > { %2974 = vmatpush1.bf16.msra.mxu1 %v6191_v29 }
 0x1de   : > { %2975 = vmatprep.subr.bf16.mxu1 %v6199_v45  ;;  %2913 = vmatpush1.bf16.msra.mxu0 %v6194_v30 }
 0x1df   : > { %4206 = vmatprep.subr.bf16.mxu0 %v6202_v46 }
 0x1e1   : > { %2976 = vmatpush1.bf16.msra.mxu1 %v6197_v20 }
 0x1e2   : > { %4269 = vmatprep.subr.bf16.mxu1 %v6226_v49 }
 0x22b   : > { %v5711_v32 = vpop.f32.mrf.mxu0 }
 0x22d   : > { %v5712_v40 = vpop.f32.mrf.mxu0 }
 0x22e   : > { %v5713_v55 = vadd.f32 %v5712_v40, %v5711_v32  ;;  %v543_v32 = vld [vmem:[%s7833_s24] sm:$0xff] }
 0x22f   : > { %v5714_v15 = vpop.f32.mrf.mxu0 }
 0x230   : > { %v2548_v35 = vadd.f32 %v5713_v55, %v5386_v0 }
 0x231   : > { %v5715_v5 = vpop.f32.mrf.mxu0 }
 0x232   : > { %v5716_v58 = vadd.f32 %v5715_v5, %v5714_v15 }
 0x233   : > { %v5717_v48 = vpop.f32.mrf.mxu0 }
 0x234   : > { %v2551_v63 = vadd.f32 %v5716_v58, %v5386_v0 }
 0x235   : > { %v5718_v39 = vpop.f32.mrf.mxu0 }
 0x236   : > { %v5719_v61 = vadd.f32 %v5718_v39, %v5717_v48  ;;  %v544_v48 = vld [vmem:[%s7833_s24 + $0x8] sm:$0xff] }
 0x237   : > { %v5720_v47 = vpop.f32.mrf.mxu0 }
 0x238   : > { %v2556_v8 = vadd.f32 %v5719_v61, %v5386_v0  ;;  %v545_v61 = vld [vmem:[%s7833_s24 + $0x10] sm:$0xff] }
 0x239   : > { %v5721_v10 = vpop.f32.mrf.mxu0 }
 0x23a   : > { %v5722_v2 = vadd.f32 %v5721_v10, %v5720_v47 }
 0x23b   : > { %v5723_v21 = vpop.f32.mrf.mxu0 }
 0x23c   : > { %v2559_v24 = vadd.f32 %v5722_v2, %v5386_v0  ;;  %v6203_v2 = vld [vmem:[%s8751_s8 + $0x150] ss:$28 sps:$4 sm:$0xff]  }
 0x23d   : > { %v5724_v13 = vpop.f32.mrf.mxu0 }
 0x23e   : > { %v5725_v9 = vadd.f32 %v5724_v13, %v5723_v21  ;;  %v6224_v13 = vld [vmem:[%s8751_s8 + $0x508] ss:$28 sps:$4 sm:$0xff]  }
 0x23f   : > { %v5726_v62 = vpop.f32.mrf.mxu0 }
 0x240   : > { %v2564_v22 = vadd.f32 %v5725_v9, %v5386_v0 }
 0x241   : > { %v5727_v25 = vpop.f32.mrf.mxu0 }
 0x242   : > { %v5728_v41 = vadd.f32 %v5727_v25, %v5726_v62  ;;  %v6236_v25 = vld [vmem:[%s8751_s8 + $0x498] ss:$28 sps:$4 sm:$0xff]  }
 0x244   : > { %v2567_v30 = vadd.f32 %v5728_v41, %v5386_v0 }
 0x284   : > { %v2604_v57 = vpop.f32.mrf.mxu1 }
 0x285   : > { %v7805_v14 = vadd.f32 %v2604_v57, %v2548_v35 }
 0x286   : > { %v2606_v54 = vpop.f32.mrf.mxu1 }
 0x287   : > { %2627 = vst [vmem:[%s7807_s14] sm:$0xff] %v7805_v14  ;;  %v2645_v50 = vsel %vm7801_vm3, %v7805_v14, 0.0  ;;  %v2636_v35 = vsel %vm2635_vm4, %v7805_v14, 0.0  ;;  %v6205_v14 = vld [vmem:[%s8751_s8 + $0x154] ss:$28 sps:$4 sm:$0xff]  }
 0x288   : > { %v2651_v34 = vmul.f32 0.5, %v2645_v50  ;;  %v2607_v1 = vpop.f32.mrf.mxu1 }
 0x289   : > { %v2608_v3 = vadd.f32 %v2607_v1, %v2551_v63  ;;  %v6200_v63 = vld [vmem:[%s8751_s8 + $0x188] ss:$28 sps:$4 sm:$0xff]   ;;  %v6232_v1 = vld [vmem:[%s8751_s8 + $0x4d4] ss:$28 sps:$4 sm:$0xff]  }
 0x28a   : > { %v2657_v52 = vmul.f32 1.442695, %v2651_v34  ;;  %v2609_v4 = vpop.f32.mrf.mxu1  ;;  %v546_v34 = vld [vmem:[%s7833_s24 + $0x18] sm:$0xff] }
 0x28b   : > { %2628 = vst [vmem:[%s7807_s14 + $0x8] sm:$0xff] %v2608_v3  ;;  %v2646_v6 = vsel %vm7801_vm3, %v2608_v3, 0.0  ;;  %v2637_v21 = vsel %vm2635_vm4, %v2608_v3, 0.0 }
 0x28c   : > { %6450 = vpow2.f32 %v2657_v52  ;;  %v2652_v12 = vmul.f32 0.5, %v2646_v6  ;;  %v2612_v37 = vpop.f32.mrf.mxu1  ;;  %v6230_v6 = vld [vmem:[%s8751_s8 + $0x4d0] ss:$28 sps:$4 sm:$0xff]  }
 0x28d   : > { %v7817_v43 = vadd.f32 %v2612_v37, %v2556_v8  ;;  %v6238_v37 = vld [vmem:[%s8751_s8 + $0x49c] ss:$28 sps:$4 sm:$0xff]  }
 0x28e   : > { %v2659_v28 = vmul.f32 1.442695, %v2652_v12  ;;  %v2614_v11 = vpop.f32.mrf.mxu1  ;;  %v6208_v12 = vld [vmem:[%s8751_s8 + $0x11c] ss:$28 sps:$4 sm:$0xff]  }
 0x28f   : > { %2629 = vst [vmem:[%s7807_s14 + $0x10] sm:$0xff] %v7817_v43  ;;  %v2647_v60 = vsel %vm7801_vm3, %v7817_v43, 0.0  ;;  %v2638_v8 = vsel %vm2635_vm4, %v7817_v43, 0.0  ;;  %v6206_v43 = vld [vmem:[%s8751_s8 + $0x118] ss:$28 sps:$4 sm:$0xff]  }
 0x290   : > { %6452 = vpow2.f32 %v2659_v28  ;;  %v2653_v18 = vmul.f32 0.5, %v2647_v60  ;;  %v2615_v7 = vpop.f32.mrf.mxu1  ;;  %v547_v60 = vld [vmem:[%s7833_s24 + $0x20] sm:$0xff] }
 0x291   : > { %v2616_v33 = vadd.f32 %v2615_v7, %v2559_v24  ;;  %v6211_v7 = vld [vmem:[%s8751_s8 + $0xe4] ss:$28 sps:$4 sm:$0xff]  }
 0x292   : > { %v2661_v53 = vmul.f32 1.442695, %v2653_v18  ;;  %v2617_v23 = vpop.f32.mrf.mxu1  ;;  %v548_v18 = vld [vmem:[%s7833_s24 + $0x28] sm:$0xff]  ;;  %s5037_s24 = ssub.s32 (%p6743_p5), 10, %s6838_s16 }
 0x293   : > { %2630 = vst [vmem:[%s7807_s14 + $0x18] sm:$0xff] %v2616_v33  ;;  %v2648_v31 = vsel %vm7801_vm3, %v2616_v33, 0.0  ;;  %v2639_v62 = vsel %vm2635_vm4, %v2616_v33, 0.0  ;;  %v6244_v33 = vld [vmem:[%s8751_s8 + $0x464] ss:$28 sps:$4 sm:$0xff]   ;;  %p5038_p11 = scmp.lt.s32.totalorder (%p6743_p5), %s5037_s24, 6 }
 0x294   : > { %6454 = vpow2.f32 %v2661_v53  ;;  %v2654_v17 = vmul.f32 0.5, %v2648_v31  ;;  %v2620_v36 = vpop.f32.mrf.mxu1  ;;  %v6209_v31 = vld [vmem:[%s8751_s8 + $0xe0] ss:$28 sps:$4 sm:$0xff]  }
 0x295   : > { %v7828_v44 = vadd.f32 %v2620_v36, %v2564_v22  ;;  %v6242_v22 = vld [vmem:[%s8751_s8 + $0x460] ss:$28 sps:$4 sm:$0xff]  }
 0x296   : > { %v2663_v29 = vmul.f32 1.442695, %v2654_v17  ;;  %v2622_v16 = vpop.f32.mrf.mxu1 }
 0x297   : > { %2631 = vst [vmem:[%s7807_s14 + $0x20] sm:$0xff] %v7828_v44  ;;  %v2649_v45 = vsel %vm7801_vm3, %v7828_v44, 0.0  ;;  %v2640_v17 = vsel %vm2635_vm4, %v7828_v44, 0.0  ;;  %v6250_v16 = vld [vmem:[%s8751_s8 + $0x42c] ss:$28 sps:$4 sm:$0xff]  }
 0x298   : > { %6456 = vpow2.f32 %v2663_v29  ;;  %v2655_v20 = vmul.f32 0.5, %v2649_v45  ;;  %v2623_v46 = vpop.f32.mrf.mxu1  ;;  %v6214_v29 = vld [vmem:[%s8751_s8 + $0xac] ss:$28 sps:$4 sm:$0xff]  }
 0x299   : > { %v6451_v49 = vpop.eup %6450  ;;  %v7841_v40 = vadd.f32 %v2623_v46, %v2567_v30  ;;  %v6212_v44 = vld [vmem:[%s8751_s8 + $0xa8] ss:$28 sps:$4 sm:$0xff]   ;;  %v6217_v46 = vld [vmem:[%s8751_s8 + $0x74] ss:$28 sps:$4 sm:$0xff]  }
 0x29a   : > { %v2665_v15 = vmul.f32 1.442695, %v2655_v20  ;;  %v2625_v5 = vpop.f32.mrf.mxu1  ;;  %v2669_v47 = vmul.f32 %v6451_v49, %v543_v32  ;;  %v6256_v49 = vld [vmem:[%s8751_s8 + $0x3f4] ss:$28 sps:$4 sm:$0xff]  }
 0x29b   : > { %2632 = vst [vmem:[%s7807_s14 + $0x28] sm:$0xff] %v7841_v40  ;;  %v2650_v39 = vsel %vm7801_vm3, %v7841_v40, 0.0  ;;  %v2641_v36 = vsel %vm2635_vm4, %v7841_v40, 0.0  ;;  %v6215_v32 = vld [vmem:[%s8751_s8 + $0x70] ss:$28 sps:$4 sm:$0xff]  }
 0x29c   : > { %6458 = vpow2.f32 %v2665_v15  ;;  %v2656_v55 = vmul.f32 0.5, %v2650_v39  ;;  %v2675_v57 = vadd.f32 %v2669_v47, %v2636_v35  ;;  %v6254_v40 = vld [vmem:[%s8751_s8 + $0x3f0] ss:$28 sps:$4 sm:$0xff]   ;;  %v6220_v15 = vld [vmem:[%s8751_s8 + $0x3c] ss:$28 sps:$4 sm:$0xff]  }
 0x29d   : > { %v6453_v10 = vpop.eup %6452  ;;  %v6218_v5 = vld [vmem:[%s8751_s8 + $0x38] ss:$28 sps:$4 sm:$0xff]   ;;  %v6221_v39 = vld [vmem:[%s8751_s8] ss:$28 sps:$4 sm:$0xff]   ;;  %v6229_v47 = vld [vmem:[%s8751_s8 + $0x34c] ss:$28 sps:$4 sm:$0xff]  }
 0x29e   : > { %v2670_v0 = vmul.f32 %v6453_v10, %v544_v48  ;;  %v2667_v58 = vmul.f32 1.442695, %v2656_v55  ;;  %v6223_v48 = vld [vmem:[%s8751_s8 + $0x4] ss:$28 sps:$4 sm:$0xff]   ;;  %v6235_v10 = vld [vmem:[%s8751_s8 + $0x314] ss:$28 sps:$4 sm:$0xff]  }
 0x29f   : > { %v6227_v55 = vld [vmem:[%s8751_s8 + $0x348] ss:$28 sps:$4 sm:$0xff]   ;;  %v6239_v35 = vld [vmem:[%s8751_s8 + $0x2d8] ss:$28 sps:$4 sm:$0xff]  }
 0x2a0   : > { %v2676_v54 = vadd.f32 %v2670_v0, %v2637_v21  ;;  %6460 = vpow2.f32 %v2667_v58  ;;  %v6233_v0 = vld [vmem:[%s8751_s8 + $0x310] ss:$28 sps:$4 sm:$0xff]   ;;  %v6241_v58 = vld [vmem:[%s8751_s8 + $0x2dc] ss:$28 sps:$4 sm:$0xff]   ;;  %v6247_v21 = vld [vmem:[%s8751_s8 + $0x2a4] ss:$28 sps:$4 sm:$0xff]  }
 0x2a1   : > { %v6455_v59 = vpop.eup %6454 }
 0x2a2   : > { %v2681_v50 = vpack.c.bf16 %v2676_v54, %v2675_v57  ;;  %v2671_v3 = vmul.f32 %v6455_v59, %v545_v61  ;;  %v6245_v57 = vld [vmem:[%s8751_s8 + $0x2a0] ss:$28 sps:$4 sm:$0xff]   ;;  %v6253_v54 = vld [vmem:[%s8751_s8 + $0x26c] ss:$28 sps:$4 sm:$0xff]   ;;  %v6259_v61 = vld [vmem:[%s8751_s8 + $0x234] ss:$28 sps:$4 sm:$0xff]  }
 0x2a3   : > { %v6251_v59 = vld [vmem:[%s8751_s8 + $0x268] ss:$28 sps:$4 sm:$0xff]  }
 0x2a4   : > { %2931 = vmatmul.mubr.bf16.vlgmr.msra.gmra.mxu0 %v2681_v50  ;;  %2994 = vmatmul.mubr.bf16.vlgmr.msra.gmra.mxu1 %v2681_v50  ;;  %v2677_v28 = vadd.f32 %v2671_v3, %v2638_v8  ;;  %v6262_v50 = vld [vmem:[%s8751_s8 + $0x3bc] ss:$28 sps:$4 sm:$0xff]   ;;  %v6277_v8 = vld [vmem:[%s8751_s8 + $0x194] ss:$28 sps:$4 sm:$0xff]  }
 0x2a5   : > { %v6457_v52 = vpop.eup %6456  ;;  %2940 = vmatprep.mubr.bf16.mxu0 %v6638_v51  ;;  %3003 = vmatprep.mubr.bf16.mxu1 %v6638_v51  ;;  %v6266_v3 = vld [vmem:[%s8751_s8 + $0x380] ss:$28 sps:$4 sm:$0xff]  }
 0x2a6   : > { %v2672_v4 = vmul.f32 %v6457_v52, %v546_v34  ;;  %4207 = vmatpush1.bf16.msra.mxu0 %v6200_v63  ;;  %4270 = vmatpush1.bf16.msra.mxu1 %v6224_v13  ;;  %v6257_v63 = vld [vmem:[%s8751_s8 + $0x230] ss:$28 sps:$4 sm:$0xff]   ;;  %v6260_v13 = vld [vmem:[%s8751_s8 + $0x3b8] ss:$28 sps:$4 sm:$0xff]   ;;  %v6271_v52 = vld [vmem:[%s8751_s8 + $0x1c4] ss:$28 sps:$4 sm:$0xff]  }
 0x2a7   : > { %4208 = vmatprep.subr.bf16.mxu0 %v6205_v14  ;;  %4271 = vmatprep.subr.bf16.mxu1 %v6232_v1  ;;  %v6265_v34 = vld [vmem:[%s8751_s8 + $0x1fc] ss:$28 sps:$4 sm:$0xff]   ;;  %v6268_v14 = vld [vmem:[%s8751_s8 + $0x384] ss:$28 sps:$4 sm:$0xff]  }
 0x2a8   : > { %v2678_v11 = vadd.f32 %v2672_v4, %v2639_v62  ;;  %v6263_v1 = vld [vmem:[%s8751_s8 + $0x1f8] ss:$28 sps:$4 sm:$0xff]   ;;  %v6274_v4 = vld [vmem:[%s8751_s8 + $0x544] ss:$28 sps:$4 sm:$0xff]  }
 0x2a9   : > { %v6459_v9 = vpop.eup %6458  ;;  %v6280_v62 = vld [vmem:[%s8751_s8 + $0x514] ss:$28 sps:$4 sm:$0xff]  }
 0x2aa   : > { %v2682_v24 = vpack.c.bf16 %v2678_v11, %v2677_v28  ;;  %4209 = vmatpush1.bf16.msra.mxu0 %v6203_v2  ;;  %4272 = vmatpush1.bf16.msra.mxu1 %v6230_v6  ;;  %v2673_v53 = vmul.f32 %v6459_v9, %v547_v60  ;;  %v6269_v2 = vld [vmem:[%s8751_s8 + $0x1c0] ss:$28 sps:$4 sm:$0xff]  }
 0x2ab   : > { %4210 = vmatprep.subr.bf16.mxu0 %v6208_v12  ;;  %4273 = vmatprep.subr.bf16.mxu1 %v6238_v37  ;;  %v6272_v6 = vld [vmem:[%s8751_s8 + $0x540] ss:$28 sps:$4 sm:$0xff]  }
 0x2ac   : > { %2941 = vmatmul.mubr.bf16.gmra.mxu0 %v2682_v24  ;;  %3004 = vmatmul.mubr.bf16.gmra.mxu1 %v2682_v24  ;;  %v2679_v45 = vadd.f32 %v2673_v53, %v2640_v17  ;;  %v2716_v12 = vld [vmem:[%s8750_s7] sm:$0xf] }
 0x2ad   : > { %v6461_v23 = vpop.eup %6460  ;;  %2950 = vmatprep.mubr.bf16.mxu0 %v6638_v51  ;;  %3013 = vmatprep.mubr.bf16.mxu1 %v6638_v51  ;;  %v8028_v11 = vrot.slane %v2716_v12, %v7604_v26  ;;  %v8031_v9 = vrot.slane %v2716_v12, %v7640_v38  ;;  %v8034_v60 = vrot.slane %v2716_v12, %v7607_v27 }
 0x2ae   : > { %v2674_v41 = vmul.f32 %v6461_v23, %v548_v18  ;;  %4211 = vmatpush1.bf16.msra.mxu0 %v6206_v43  ;;  %4274 = vmatpush1.bf16.msra.mxu1 %v6236_v25  ;;  %v8037_v24 = vrot.slane %v2716_v12, %v7643_v56  ;;  %v6284_v12 = vld [vmem:[%s8751_s8 + $0x4d8] ss:$28 sps:$4 sm:$0xff]  }
 0x2af   : > { %4212 = vmatprep.subr.bf16.mxu0 %v6211_v7  ;;  %4275 = vmatprep.subr.bf16.mxu1 %v6244_v33 }
 0x2b0   : > { %v2680_v30 = vadd.f32 %v2674_v41, %v2641_v36 }
 0x2b2   : > { %v2683_v20 = vpack.c.bf16 %v2680_v30, %v2679_v45  ;;  %4213 = vmatpush1.bf16.msra.mxu0 %v6209_v31  ;;  %4276 = vmatpush1.bf16.msra.mxu1 %v6242_v22 }
 0x2b3   : > { %4214 = vmatprep.subr.bf16.mxu0 %v6214_v29  ;;  %4277 = vmatprep.subr.bf16.mxu1 %v6250_v16 }
 0x2b4   : > { %2951 = vmatmul.mubr.bf16.gmra.mxu0 %v2683_v20  ;;  %3014 = vmatmul.mubr.bf16.gmra.mxu1 %v2683_v20 }
 0x2b6   : > { %4215 = vmatpush1.bf16.msra.mxu0 %v6212_v44  ;;  %4278 = vmatpush1.bf16.msra.mxu1 %v6248_v42 }
 0x2b7   : > { %4216 = vmatprep.subr.bf16.mxu0 %v6217_v46  ;;  %4279 = vmatprep.subr.bf16.mxu1 %v6256_v49 }
 0x2ba   : > { %4217 = vmatpush1.bf16.msra.mxu0 %v6215_v32  ;;  %4280 = vmatpush1.bf16.msra.mxu1 %v6254_v40 }
 0x2bb   : > { %4218 = vmatprep.subr.bf16.mxu0 %v6220_v15  ;;  %4281 = vmatprep.subr.bf16.mxu1 %v6262_v50 }
 0x2be   : > { %4219 = vmatpush1.bf16.msra.mxu0 %v6218_v5  ;;  %4282 = vmatpush1.bf16.msra.mxu1 %v6260_v13 }
 0x2bf   : > { %4220 = vmatprep.subr.bf16.mxu0 %v6223_v48  ;;  %4283 = vmatprep.subr.bf16.mxu1 %v6268_v14 }
 0x2c2   : > { %4221 = vmatpush1.bf16.msra.mxu0 %v6221_v39  ;;  %4284 = vmatpush1.bf16.msra.mxu1 %v6266_v3 }
 0x2c3   : > { %4222 = vmatprep.subr.bf16.mxu0 %v6229_v47  ;;  %4299 = vmatprep.subr.bf16.mxu1 %v6274_v4  ;;  %v6281_v4 = vld [vmem:[%s8751_s8 + $0x158] ss:$28 sps:$4 sm:$0xff]  }
 0x2c6   : > { %4223 = vmatpush2.bf16.msra.mxu0 %v6227_v55  ;;  %4300 = vmatpush2.bf16.msra.mxu1 %v6272_v6  ;;  %v6275_v55 = vld [vmem:[%s8751_s8 + $0x190] ss:$28 sps:$4 sm:$0xff]  }
 0x2c7   : > { %4224 = vmatprep.subr.bf16.mxu0 %v6235_v10  ;;  %4332 = vmatprep.subr.bf16.mxu1 %v6277_v8  ;;  %v6278_v10 = vld [vmem:[%s8751_s8 + $0x510] ss:$28 sps:$4 sm:$0xff]  }
 0x2ca   : > { %4225 = vmatpush2.bf16.msra.mxu0 %v6233_v0 }
 0x2cb   : > { %4226 = vmatprep.subr.bf16.mxu0 %v6241_v58 }
 0x2ce   : > { %4227 = vmatpush2.bf16.msra.mxu0 %v6239_v35 }
 0x2cf   : > { %4228 = vmatprep.subr.bf16.mxu0 %v6247_v21 }
 0x2d2   : > { %4229 = vmatpush2.bf16.msra.mxu0 %v6245_v57 }
 0x2d3   : > { %4230 = vmatprep.subr.bf16.mxu0 %v6253_v54  ;;  %v6283_v54 = vld [vmem:[%s8751_s8 + $0x15c] ss:$28 sps:$4 sm:$0xff]  }
 0x2d6   : > { %4231 = vmatpush2.bf16.msra.mxu0 %v6251_v59  ;;  %v6286_v59 = vld [vmem:[%s8751_s8 + $0x4dc] ss:$28 sps:$4 sm:$0xff]  }
 0x2d7   : > { %4232 = vmatprep.subr.bf16.mxu0 %v6259_v61 }
 0x2da   : > { %4233 = vmatpush2.bf16.msra.mxu0 %v6257_v63 }
 0x2db   : > { %4234 = vmatprep.subr.bf16.mxu0 %v6265_v34 }
 0x2de   : > { %4235 = vmatpush2.bf16.msra.mxu0 %v6263_v1 }
 0x2df   : > { %4236 = vmatprep.subr.bf16.mxu0 %v6271_v52 }
 0x2e2   : > { %4237 = vmatpush2.bf16.msra.mxu0 %v6269_v2 }
 0x2e3   : > { %4395 = vmatprep.subr.bf16.mxu0 %v6280_v62 }
 0x364   : > { %v2932_v37 = vpop.f32.mrf.mxu0  ;;  %v2995_v28 = vpop.f32.mrf.mxu1 }
 0x365   : > { %v2933_v31 = vadd.f32 %v2932_v37, %v8034_v60  ;;  %v2996_v22 = vadd.f32 %v2995_v28, %v8037_v24  ;;  %v6289_v37 = vld [vmem:[%s8751_s8 + $0x124] ss:$28 sps:$4 sm:$0xff]  }
 0x366   : > { %v2934_v43 = vpop.f32.mrf.mxu0  ;;  %v2997_v25 = vpop.f32.mrf.mxu1 }
 0x367   : > { %v2935_v33 = vadd.f32 %v2934_v43, %v8028_v11  ;;  %v2998_v53 = vadd.f32 %v2997_v25, %v8031_v9  ;;  %v3024_v40 = vmax.f32 %v2933_v31, 0.0  ;;  %v3026_v15 = vmax.f32 %v2996_v22, 0.0 }
 0x368   : > { %v2936_v18 = vpop.f32.mrf.mxu0  ;;  %v2999_v7 = vpop.f32.mrf.mxu1 }
 0x369   : > { %v2937_v23 = vadd.f32 %v2936_v18, %v8034_v60  ;;  %v3000_v41 = vadd.f32 %v2999_v7, %v8037_v24  ;;  %v3025_v42 = vmax.f32 %v2935_v33, 0.0  ;;  %v3027_v46 = vmax.f32 %v2998_v53, 0.0 }
 0x36a   : > { %v2938_v17 = vpop.f32.mrf.mxu0  ;;  %v3001_v36 = vpop.f32.mrf.mxu1 }
 0x36b   : > { %v2939_v29 = vadd.f32 %v2938_v17, %v8028_v11  ;;  %v3002_v16 = vadd.f32 %v3001_v36, %v8031_v9  ;;  %v3028_v45 = vmax.f32 %v2937_v23, 0.0  ;;  %v3030_v30 = vmax.f32 %v3000_v41, 0.0  ;;  %v6292_v23 = vld [vmem:[%s8751_s8 + $0x4a4] ss:$28 sps:$4 sm:$0xff]  }
 0x36c   : > { %v2942_v20 = vpop.f32.mrf.mxu0  ;;  %v3005_v44 = vpop.f32.mrf.mxu1 }
 0x36d   : > { %v3029_v49 = vmax.f32 %v2939_v29, 0.0  ;;  %v3031_v32 = vmax.f32 %v3002_v16, 0.0  ;;  %v8057_v0 = vpack.c.bf16 %v3028_v45, %v3024_v40  ;;  %v8059_v58 = vpack.c.bf16 %v3030_v30, %v3026_v15  ;;  %v6287_v30 = vld [vmem:[%s8751_s8 + $0x120] ss:$28 sps:$4 sm:$0xff]  }
 0x36e   : > { %v2944_v5 = vpop.f32.mrf.mxu0  ;;  %v3007_v48 = vpop.f32.mrf.mxu1  ;;  %v2943_v13 = vadd.f32 %v2942_v20, %v8034_v60  ;;  %v3006_v1 = vadd.f32 %v3005_v44, %v8037_v24  ;;  %v6290_v20 = vld [vmem:[%s8751_s8 + $0x4a0] ss:$28 sps:$4 sm:$0xff]  }
 0x36f   : > { %v8047_v39 = vpack.c.bf16 %v3029_v49, %v3025_v42  ;;  %v8049_v47 = vpack.c.bf16 %v3031_v32, %v3027_v46  ;;  %v2945_v35 = vadd.f32 %v2944_v5, %v8028_v11  ;;  %v3008_v61 = vadd.f32 %v3007_v48, %v8031_v9  ;;  %v6295_v49 = vld [vmem:[%s8751_s8 + $0xec] ss:$28 sps:$4 sm:$0xff]  }
 0x370   : > { %v2946_v21 = vpop.f32.mrf.mxu0  ;;  %v3009_v57 = vpop.f32.mrf.mxu1  ;;  %v3032_v7 = vmax.f32 %v2943_v13, 0.0  ;;  %v3034_v41 = vmax.f32 %v3006_v1, 0.0  ;;  %v6298_v32 = vld [vmem:[%s8751_s8 + $0x46c] ss:$28 sps:$4 sm:$0xff]  }
 0x371   : > { %v2947_v50 = vadd.f32 %v2946_v21, %v8034_v60  ;;  %v3010_v63 = vadd.f32 %v3009_v57, %v8037_v24  ;;  %4238 = vmatprep.mubr.bf16.mxu0 %v8047_v39  ;;  %5622 = vmatprep.mubr.msk.bf16.mxu1 %vm1747_vm0, %v8049_v47  ;;  %v3033_v2 = vmax.f32 %v2945_v35, 0.0  ;;  %v3035_v28 = vmax.f32 %v3008_v61, 0.0  ;;  %v6293_v57 = vld [vmem:[%s8751_s8 + $0xe8] ss:$28 sps:$4 sm:$0xff]   ;;  %v6304_v61 = vld [vmem:[%s8751_s8 + $0x434] ss:$28 sps:$4 sm:$0xff]  }
 0x372   : > { %v2948_v34 = vpop.f32.mrf.mxu0  ;;  %v3011_v14 = vpop.f32.mrf.mxu1  ;;  %4239 = vmatmul.mubr.bf16.vlgmr.msra.gmra.mxu0 %v8057_v0  ;;  %4302 = vmatmul.mubr.bf16.vlgmr.msra.gmra.mxu1 %v8059_v58  ;;  %v6302_v1 = vld [vmem:[%s8751_s8 + $0x430] ss:$28 sps:$4 sm:$0xff]  }
 0x373   : > { %v2949_v3 = vadd.f32 %v2948_v34, %v8028_v11  ;;  %v3012_v52 = vadd.f32 %v3011_v14, %v8031_v9  ;;  %4333 = vmatpush1.bf16.msra.mxu1 %v6275_v55  ;;  %4396 = vmatpush1.bf16.msra.mxu0 %v6278_v10  ;;  %v3036_v6 = vmax.f32 %v2947_v50, 0.0  ;;  %v3038_v43 = vmax.f32 %v3010_v63, 0.0  ;;  %v6299_v14 = vld [vmem:[%s8751_s8 + $0xb0] ss:$28 sps:$4 sm:$0xff]  }
 0x374   : > { %v2952_v8 = vpop.f32.mrf.mxu0  ;;  %v3015_v62 = vpop.f32.mrf.mxu1  ;;  %4334 = vmatprep.subr.bf16.mxu1 %v6283_v54  ;;  %4397 = vmatprep.subr.bf16.mxu0 %v6286_v59 }
 0x375   : > { %v3037_v25 = vmax.f32 %v2949_v3, 0.0  ;;  %v3039_v18 = vmax.f32 %v3012_v52, 0.0  ;;  %v8096_v17 = vpack.c.bf16 %v3036_v6, %v3032_v7  ;;  %v8106_v44 = vpack.c.bf16 %v3038_v43, %v3034_v41  ;;  %v6305_v6 = vld [vmem:[%s8751_s8 + $0x78] ss:$28 sps:$4 sm:$0xff]   ;;  %v6319_v43 = vld [vmem:[%s8751_s8 + $0xc] ss:$28 sps:$4 sm:$0xff]  }
 0x376   : > { %v2954_v33 = vpop.f32.mrf.mxu0  ;;  %v3017_v53 = vpop.f32.mrf.mxu1  ;;  %v2953_v5 = vadd.f32 %v2952_v8, %v8034_v60  ;;  %v3016_v48 = vadd.f32 %v3015_v62, %v8037_v24  ;;  %v6308_v8 = vld [vmem:[%s8751_s8 + $0x3f8] ss:$28 sps:$4 sm:$0xff]   ;;  %v6313_v62 = vld [vmem:[%s8751_s8 + $0x44] ss:$28 sps:$4 sm:$0xff]  }
 0x377   : > { %v8092_v31 = vpack.c.bf16 %v3037_v25, %v3033_v2  ;;  %v8094_v22 = vpack.c.bf16 %v3039_v18, %v3035_v28  ;;  %4335 = vmatpush1.bf16.msra.mxu1 %v6281_v4  ;;  %v2955_v36 = vadd.f32 %v2954_v33, %v8028_v11  ;;  %v3018_v29 = vadd.f32 %v3017_v53, %v8031_v9  ;;  %v6307_v4 = vld [vmem:[%s8751_s8 + $0x7c] ss:$28 sps:$4 sm:$0xff]   ;;  %v6322_v25 = vld [vmem:[%s8751_s8 + $0x38c] ss:$28 sps:$4 sm:$0xff]   ;;  %v6325_v33 = vld [vmem:[%s8751_s8 + $0x354] ss:$28 sps:$4 sm:$0xff]  }
 0x378   : > { %4398 = vmatpush1.bf16.msra.mxu0 %v6284_v12  ;;  %v2956_v16 = vpop.f32.mrf.mxu0  ;;  %v3019_v45 = vpop.f32.mrf.mxu1  ;;  %4336 = vmatprep.subr.bf16.mxu1 %v6289_v37  ;;  %v3040_v50 = vmax.f32 %v2953_v5, 0.0  ;;  %v3042_v63 = vmax.f32 %v3016_v48, 0.0  ;;  %v6310_v2 = vld [vmem:[%s8751_s8 + $0x3fc] ss:$28 sps:$4 sm:$0xff]   ;;  %v6316_v12 = vld [vmem:[%s8751_s8 + $0x3c4] ss:$28 sps:$4 sm:$0xff]  }
 0x379   : > { %v2957_v42 = vadd.f32 %v2956_v16, %v8034_v60  ;;  %v3020_v46 = vadd.f32 %v3019_v45, %v8037_v24  ;;  %4248 = vmatprep.mubr.bf16.mxu0 %v8092_v31  ;;  %5623 = vmatprep.mubr.msk.bf16.mxu1 %vm1747_vm0, %v8094_v22  ;;  %v3041_v35 = vmax.f32 %v2955_v36, 0.0  ;;  %v3043_v21 = vmax.f32 %v3018_v29, 0.0  ;;  %v6296_v60 = vld [vmem:[%s8751_s8 + $0x468] ss:$28 sps:$4 sm:$0xff]   ;;  %v6311_v37 = vld [vmem:[%s8751_s8 + $0x40] ss:$28 sps:$4 sm:$0xff]  }
 0x37a   : > { %4399 = vmatprep.subr.bf16.mxu0 %v6292_v23  ;;  %v2958_v40 = vpop.f32.mrf.mxu0  ;;  %v3021_v15 = vpop.f32.mrf.mxu1  ;;  %4249 = vmatmul.mubr.bf16.gmra.mxu0 %v8096_v17  ;;  %v6314_v28 = vld [vmem:[%s8751_s8 + $0x3c0] ss:$28 sps:$4 sm:$0xff]   ;;  %v6317_v18 = vld [vmem:[%s8751_s8 + $0x8] ss:$28 sps:$4 sm:$0xff]   ;;  %v6323_v23 = vld [vmem:[%s8751_s8 + $0x350] ss:$28 sps:$4 sm:$0xff]  }
 0x37b   : > { %v2959_v55 = vadd.f32 %v2958_v40, %v8028_v11  ;;  %v3022_v10 = vadd.f32 %v3021_v15, %v8031_v9  ;;  %4312 = vmatmul.mubr.bf16.gmra.mxu1 %v8106_v44  ;;  %v3044_v54 = vmax.f32 %v2957_v42, 0.0  ;;  %v3046_v24 = vmax.f32 %v3020_v46, 0.0  ;;  %v6301_v9 = vld [vmem:[%s8751_s8 + $0xb4] ss:$28 sps:$4 sm:$0xff]   ;;  %v6320_v7 = vld [vmem:[%s8751_s8 + $0x388] ss:$28 sps:$4 sm:$0xff]  }
 0x37c   : > { %4337 = vmatpush1.bf16.msra.mxu1 %v6287_v30  ;;  %4400 = vmatpush1.bf16.msra.mxu0 %v6290_v20  ;;  %v6328_v53 = vld [vmem:[%s8751_s8 + $0x54c] ss:$28 sps:$4 sm:$0xff]   ;;  %v6331_v36 = vld [vmem:[%s8751_s8 + $0x31c] ss:$28 sps:$4 sm:$0xff]   ;;  %v6337_v30 = vld [vmem:[%s8751_s8 + $0x2e4] ss:$28 sps:$4 sm:$0xff]  }
 0x37d   : > { %v3045_v59 = vmax.f32 %v2959_v55, 0.0  ;;  %v3047_v11 = vmax.f32 %v3022_v10, 0.0  ;;  %4338 = vmatprep.subr.bf16.mxu1 %v6295_v49  ;;  %4401 = vmatprep.subr.bf16.mxu0 %v6298_v32  ;;  %v8147_v3 = vpack.c.bf16 %v3044_v54, %v3040_v50  ;;  %v8149_v52 = vpack.c.bf16 %v3046_v24, %v3042_v63  ;;  %v6326_v41 = vld [vmem:[%s8751_s8 + $0x548] ss:$28 sps:$4 sm:$0xff]   ;;  %v6334_v29 = vld [vmem:[%s8751_s8 + $0x19c] ss:$28 sps:$4 sm:$0xff]  }
 0x37e   : > { %v6329_v16 = vld [vmem:[%s8751_s8 + $0x318] ss:$28 sps:$4 sm:$0xff]   ;;  %v6340_v20 = vld [vmem:[%s8751_s8 + $0x164] ss:$28 sps:$4 sm:$0xff]   ;;  %v6343_v49 = vld [vmem:[%s8751_s8 + $0x2ac] ss:$28 sps:$4 sm:$0xff]  }
 0x37f   : > { %v8137_v13 = vpack.c.bf16 %v3045_v59, %v3041_v35  ;;  %v8139_v34 = vpack.c.bf16 %v3047_v11, %v3043_v21  ;;  %v6332_v45 = vld [vmem:[%s8751_s8 + $0x198] ss:$28 sps:$4 sm:$0xff]   ;;  %v6335_v42 = vld [vmem:[%s8751_s8 + $0x2e0] ss:$28 sps:$4 sm:$0xff]   ;;  %v6346_v32 = vld [vmem:[%s8751_s8 + $0x12c] ss:$28 sps:$4 sm:$0xff]  }
 0x380   : > { %4339 = vmatpush1.bf16.msra.mxu1 %v6293_v57  ;;  %4402 = vmatpush1.bf16.msra.mxu0 %v6296_v60  ;;  %v6338_v46 = vld [vmem:[%s8751_s8 + $0x160] ss:$28 sps:$4 sm:$0xff]   ;;  %v6341_v40 = vld [vmem:[%s8751_s8 + $0x2a8] ss:$28 sps:$4 sm:$0xff]   ;;  %v6349_v5 = vld [vmem:[%s8751_s8 + $0x274] ss:$28 sps:$4 sm:$0xff]  }
 0x381   : > { %4258 = vmatprep.mubr.bf16.mxu0 %v8137_v13  ;;  %5624 = vmatprep.mubr.msk.bf16.mxu1 %vm1747_vm0, %v8139_v34  ;;  %v6344_v15 = vld [vmem:[%s8751_s8 + $0x128] ss:$28 sps:$4 sm:$0xff]   ;;  %v6352_v48 = vld [vmem:[%s8751_s8 + $0xf4] ss:$28 sps:$4 sm:$0xff]   ;;  %v6355_v35 = vld [vmem:[%s8751_s8 + $0x23c] ss:$28 sps:$4 sm:$0xff]  }
 0x382   : > { %4340 = vmatprep.subr.bf16.mxu1 %v6301_v9  ;;  %4403 = vmatprep.subr.bf16.mxu0 %v6304_v61  ;;  %v6347_v55 = vld [vmem:[%s8751_s8 + $0x270] ss:$28 sps:$4 sm:$0xff]   ;;  %v6358_v21 = vld [vmem:[%s8751_s8 + $0xbc] ss:$28 sps:$4 sm:$0xff]   ;;  %v6361_v54 = vld [vmem:[%s8751_s8 + $0x204] ss:$28 sps:$4 sm:$0xff]  }
 0x383   : > { %4259 = vmatmul.mubr.bf16.gmra.mxu0 %v8147_v3  ;;  %4322 = vmatmul.mubr.bf16.gmra.mxu1 %v8149_v52  ;;  %v6350_v10 = vld [vmem:[%s8751_s8 + $0xf0] ss:$28 sps:$4 sm:$0xff]   ;;  %v6353_v57 = vld [vmem:[%s8751_s8 + $0x238] ss:$28 sps:$4 sm:$0xff]   ;;  %v6364_v24 = vld [vmem:[%s8751_s8 + $0x84] ss:$28 sps:$4 sm:$0xff]  }
 0x384   : > { %4341 = vmatpush1.bf16.msra.mxu1 %v6299_v14  ;;  %4404 = vmatpush1.bf16.msra.mxu0 %v6302_v1  ;;  %v6356_v60 = vld [vmem:[%s8751_s8 + $0xb8] ss:$28 sps:$4 sm:$0xff]   ;;  %v6359_v59 = vld [vmem:[%s8751_s8 + $0x200] ss:$28 sps:$4 sm:$0xff]   ;;  %v6367_v9 = vld [vmem:[%s8751_s8 + $0x1cc] ss:$28 sps:$4 sm:$0xff]  }
 0x385   : > { %4364 = vmatprep.mubr.bf16.mxu1 %v8047_v39  ;;  %5625 = vmatprep.mubr.msk.bf16.mxu0 %vm1747_vm0, %v8049_v47  ;;  %v6362_v11 = vld [vmem:[%s8751_s8 + $0x80] ss:$28 sps:$4 sm:$0xff]   ;;  %v6370_v61 = vld [vmem:[%s8751_s8 + $0x4c] ss:$28 sps:$4 sm:$0xff]   ;;  %v6373_v1 = vld [vmem:[%s8751_s8 + $0x14] ss:$28 sps:$4 sm:$0xff]  }
 0x386   : > { %4342 = vmatprep.subr.bf16.mxu1 %v6307_v4  ;;  %4405 = vmatprep.subr.bf16.mxu0 %v6310_v2  ;;  %v6365_v50 = vld [vmem:[%s8751_s8 + $0x1c8] ss:$28 sps:$4 sm:$0xff]   ;;  %v6376_v14 = vld [vmem:[%s8751_s8 + $0x51c] ss:$28 sps:$4 sm:$0xff]   ;;  %v6371_v2 = vld [vmem:[%s8751_s8 + $0x10] ss:$28 sps:$4 sm:$0xff]  }
 0x387   : > { %v6368_v63 = vld [vmem:[%s8751_s8 + $0x48] ss:$28 sps:$4 sm:$0xff]   ;;  %v6374_v4 = vld [vmem:[%s8751_s8 + $0x518] ss:$28 sps:$4 sm:$0xff]  }
 0x388   : > { %4343 = vmatpush1.bf16.msra.mxu1 %v6305_v6  ;;  %4406 = vmatpush1.bf16.msra.mxu0 %v6308_v8  ;;  %v6382_v6 = vld [vmem:[%s8751_s8 + $0x4e4] ss:$28 sps:$4 sm:$0xff]   ;;  %v6379_v8 = vld [vmem:[%s8751_s8 + $0x35c] ss:$28 sps:$4 sm:$0xff]  }
 0x389   : > { %4344 = vmatprep.subr.bf16.mxu1 %v6313_v62  ;;  %4407 = vmatprep.subr.bf16.mxu0 %v6316_v12  ;;  %v6380_v62 = vld [vmem:[%s8751_s8 + $0x4e0] ss:$28 sps:$4 sm:$0xff]   ;;  %v6377_v12 = vld [vmem:[%s8751_s8 + $0x358] ss:$28 sps:$4 sm:$0xff]  }
 0x38c   : > { %4345 = vmatpush1.bf16.msra.mxu1 %v6311_v37  ;;  %4408 = vmatpush1.bf16.msra.mxu0 %v6314_v28  ;;  %v6388_v37 = vld [vmem:[%s8751_s8 + $0x4ac] ss:$28 sps:$4 sm:$0xff]   ;;  %v6385_v28 = vld [vmem:[%s8751_s8 + $0x324] ss:$28 sps:$4 sm:$0xff]  }
 0x38d   : > { %4346 = vmatprep.subr.bf16.mxu1 %v6319_v43  ;;  %4409 = vmatprep.subr.bf16.mxu0 %v6322_v25  ;;  %v6386_v43 = vld [vmem:[%s8751_s8 + $0x4a8] ss:$28 sps:$4 sm:$0xff]   ;;  %v6383_v25 = vld [vmem:[%s8751_s8 + $0x320] ss:$28 sps:$4 sm:$0xff]  }
 0x390   : > { %4347 = vmatpush1.bf16.msra.mxu1 %v6317_v18  ;;  %4410 = vmatpush1.bf16.msra.mxu0 %v6320_v7  ;;  %v6394_v18 = vld [vmem:[%s8751_s8 + $0x474] ss:$28 sps:$4 sm:$0xff]   ;;  %v6391_v7 = vld [vmem:[%s8751_s8 + $0x2ec] ss:$28 sps:$4 sm:$0xff]  }
 0x391   : > { %4348 = vmatprep.subr.bf16.mxu1 %v6325_v33  ;;  %4425 = vmatprep.subr.bf16.mxu0 %v6328_v53  ;;  %v6392_v33 = vld [vmem:[%s8751_s8 + $0x470] ss:$28 sps:$4 sm:$0xff]   ;;  %v6389_v53 = vld [vmem:[%s8751_s8 + $0x2e8] ss:$28 sps:$4 sm:$0xff]  }
 0x394   : > { %4349 = vmatpush2.bf16.msra.mxu1 %v6323_v23  ;;  %4426 = vmatpush2.bf16.msra.mxu0 %v6326_v41  ;;  %v6400_v23 = vld [vmem:[%s8751_s8 + $0x43c] ss:$28 sps:$4 sm:$0xff]   ;;  %v6397_v41 = vld [vmem:[%s8751_s8 + $0x2b4] ss:$28 sps:$4 sm:$0xff]  }
 0x395   : > { %4350 = vmatprep.subr.bf16.mxu1 %v6331_v36  ;;  %4458 = vmatprep.subr.bf16.mxu0 %v6334_v29  ;;  %v6398_v36 = vld [vmem:[%s8751_s8 + $0x438] ss:$28 sps:$4 sm:$0xff]   ;;  %v6395_v29 = vld [vmem:[%s8751_s8 + $0x2b0] ss:$28 sps:$4 sm:$0xff]  }
 0x397   : > { %4428 = vmatmul.mubr.bf16.vlgmr.msra.gmra.mxu0 %v8059_v58 }
 0x398   : > { %4351 = vmatpush2.bf16.msra.mxu1 %v6329_v16  ;;  %5626 = vmatprep.mubr.msk.bf16.mxu0 %vm1747_vm0, %v8094_v22  ;;  %v6406_v16 = vld [vmem:[%s8751_s8 + $0x404] ss:$28 sps:$4 sm:$0xff]  }
 0x399   : > { %4459 = vmatpush1.bf16.msra.mxu0 %v6332_v45  ;;  %4352 = vmatprep.subr.bf16.mxu1 %v6337_v30  ;;  %v6403_v45 = vld [vmem:[%s8751_s8 + $0x27c] ss:$28 sps:$4 sm:$0xff]  }
 0x39a   : > { %4460 = vmatprep.subr.bf16.mxu0 %v6340_v20  ;;  %v6404_v30 = vld [vmem:[%s8751_s8 + $0x400] ss:$28 sps:$4 sm:$0xff]   ;;  %v6401_v20 = vld [vmem:[%s8751_s8 + $0x278] ss:$28 sps:$4 sm:$0xff]  }
 0x39c   : > { %4353 = vmatpush2.bf16.msra.mxu1 %v6335_v42  ;;  %v6412_v42 = vld [vmem:[%s8751_s8 + $0x3cc] ss:$28 sps:$4 sm:$0xff]  }
 0x39d   : > { %4461 = vmatpush1.bf16.msra.mxu0 %v6338_v46  ;;  %4354 = vmatprep.subr.bf16.mxu1 %v6343_v49  ;;  %v6409_v46 = vld [vmem:[%s8751_s8 + $0x244] ss:$28 sps:$4 sm:$0xff]  }
 0x39e   : > { %4462 = vmatprep.subr.bf16.mxu0 %v6346_v32  ;;  %v6410_v49 = vld [vmem:[%s8751_s8 + $0x3c8] ss:$28 sps:$4 sm:$0xff]   ;;  %v6407_v32 = vld [vmem:[%s8751_s8 + $0x240] ss:$28 sps:$4 sm:$0xff]  }
 0x39f   : > { %4438 = vmatmul.mubr.bf16.gmra.mxu0 %v8106_v44 }
 0x3a0   : > { %4355 = vmatpush2.bf16.msra.mxu1 %v6341_v40  ;;  %5627 = vmatprep.mubr.msk.bf16.mxu0 %vm1747_vm0, %v8139_v34  ;;  %v6418_v40 = vld [vmem:[%s8751_s8 + $0x394] ss:$28 sps:$4 sm:$0xff]  }
 0x3a1   : > { %4463 = vmatpush1.bf16.msra.mxu0 %v6344_v15  ;;  %4356 = vmatprep.subr.bf16.mxu1 %v6349_v5  ;;  %v6415_v15 = vld [vmem:[%s8751_s8 + $0x20c] ss:$28 sps:$4 sm:$0xff]  }
 0x3a2   : > { %4464 = vmatprep.subr.bf16.mxu0 %v6352_v48  ;;  %v6416_v5 = vld [vmem:[%s8751_s8 + $0x390] ss:$28 sps:$4 sm:$0xff]   ;;  %v6413_v48 = vld [vmem:[%s8751_s8 + $0x208] ss:$28 sps:$4 sm:$0xff]  }
 0x3a4   : > { %4357 = vmatpush2.bf16.msra.mxu1 %v6347_v55  ;;  %v6424_v55 = vld [vmem:[%s8751_s8 + $0x554] ss:$28 sps:$4 sm:$0xff]  }
 0x3a5   : > { %4465 = vmatpush1.bf16.msra.mxu0 %v6350_v10  ;;  %4358 = vmatprep.subr.bf16.mxu1 %v6355_v35  ;;  %v6421_v10 = vld [vmem:[%s8751_s8 + $0x1d4] ss:$28 sps:$4 sm:$0xff]  }
 0x3a6   : > { %4466 = vmatprep.subr.bf16.mxu0 %v6358_v21  ;;  %v6422_v35 = vld [vmem:[%s8751_s8 + $0x550] ss:$28 sps:$4 sm:$0xff]  }
 0x3a7   : > { %4448 = vmatmul.mubr.bf16.gmra.mxu0 %v8149_v52  ;;  %v6419_v21 = vld [vmem:[%s8751_s8 + $0x1d0] ss:$28 sps:$4 sm:$0xff]  }
 0x3a8   : > { %4359 = vmatpush2.bf16.msra.mxu1 %v6353_v57  ;;  %4490 = vmatprep.mubr.bf16.mxu0 %v8047_v39  ;;  %v6425_v57 = vld [vmem:[%s8751_s8 + $0x360] ss:$28 sps:$4 sm:$0xff]  }
 0x3a9   : > { %4467 = vmatpush1.bf16.msra.mxu0 %v6356_v60  ;;  %4360 = vmatprep.subr.bf16.mxu1 %v6361_v54  ;;  %v6426_v60 = vld [vmem:[%s8751_s8 + $0x1a0] ss:$28 sps:$4 sm:$0xff]  }
 0x3aa   : > { %4468 = vmatprep.subr.bf16.mxu0 %v6364_v24  ;;  %v8424_v54 = vld [vmem:[%s8751_s8 + $0x520] ss:$28 sps:$4 sm:$0xff]   ;;  %v6428_v24 = vld [vmem:[%s8751_s8 + $0x328] ss:$28 sps:$4 sm:$0xff]  }
 0x3ac   : > { %4361 = vmatpush2.bf16.msra.mxu1 %v6359_v59  ;;  %v6429_v59 = vld [vmem:[%s8751_s8 + $0x168] ss:$28 sps:$4 sm:$0xff]  }
 0x3ad   : > { %4469 = vmatpush1.bf16.msra.mxu0 %v6362_v11  ;;  %4362 = vmatprep.subr.bf16.mxu1 %v6367_v9  ;;  %v6430_v11 = vld [vmem:[%s8751_s8 + $0x4e8] ss:$28 sps:$4 sm:$0xff]   ;;  %v6431_v9 = vld [vmem:[%s8751_s8 + $0x2f0] ss:$28 sps:$4 sm:$0xff]  }
 0x3ae   : > { %4470 = vmatprep.subr.bf16.mxu0 %v6370_v61  ;;  %v6432_v61 = vld [vmem:[%s8751_s8 + $0x130] ss:$28 sps:$4 sm:$0xff]  }
 0x3b0   : > { %4363 = vmatpush2.bf16.msra.mxu1 %v6365_v50  ;;  %v6433_v50 = vld [vmem:[%s8751_s8 + $0x4b0] ss:$28 sps:$4 sm:$0xff]  }
 0x3b1   : > { %4471 = vmatpush1.bf16.msra.mxu0 %v6368_v63  ;;  %4521 = vmatprep.subr.bf16.mxu1 %v6376_v14  ;;  %v6434_v63 = vld [vmem:[%s8751_s8 + $0x2b8] ss:$28 sps:$4 sm:$0xff]  }
 0x3b2   : > { %4472 = vmatprep.subr.bf16.mxu0 %v6373_v1  ;;  %v6435_v14 = vld [vmem:[%s8751_s8 + $0xf8] ss:$28 sps:$4 sm:$0xff]  }
 0x3b3   : > { %4365 = vmatmul.mubr.bf16.vlgmr.msra.gmra.mxu1 %v8057_v0  ;;  %v6436_v1 = vld [vmem:[%s8751_s8 + $0x478] ss:$28 sps:$4 sm:$0xff]  }
 0x3b4   : > { %4374 = vmatprep.mubr.bf16.mxu1 %v8092_v31  ;;  %4522 = vmatpush1.bf16.msra.mxu1 %v6374_v4  ;;  %v6437_v4 = vld [vmem:[%s8751_s8 + $0x280] ss:$28 sps:$4 sm:$0xff]  }
 0x3b5   : > { %4473 = vmatpush1.bf16.msra.mxu0 %v6371_v2  ;;  %4523 = vmatprep.subr.bf16.mxu1 %v6382_v6  ;;  %v6438_v2 = vld [vmem:[%s8751_s8 + $0xc0] ss:$28 sps:$4 sm:$0xff]  }
 0x3b6   : > { %4474 = vmatprep.subr.bf16.mxu0 %v6379_v8  ;;  %v6439_v6 = vld [vmem:[%s8751_s8 + $0x440] ss:$28 sps:$4 sm:$0xff]   ;;  %v6440_v8 = vld [vmem:[%s8751_s8 + $0x248] ss:$28 sps:$4 sm:$0xff]  }
 0x3b8   : > { %4524 = vmatpush1.bf16.msra.mxu1 %v6380_v62  ;;  %v6441_v62 = vld [vmem:[%s8751_s8 + $0x88] ss:$28 sps:$4 sm:$0xff]  }
 0x3b9   : > { %4475 = vmatpush2.bf16.msra.mxu0 %v6377_v12  ;;  %4525 = vmatprep.subr.bf16.mxu1 %v6388_v37  ;;  %v6442_v12 = vld [vmem:[%s8751_s8 + $0x408] ss:$28 sps:$4 sm:$0xff]   ;;  %v6443_v37 = vld [vmem:[%s8751_s8 + $0x210] ss:$28 sps:$4 sm:$0xff]  }
 0x3ba   : > { %4476 = vmatprep.subr.bf16.mxu0 %v6385_v28  ;;  %v6446_v28 = vld [vmem:[%s8751_s8 + $0x1d8] ss:$28 sps:$4 sm:$0xff]  }
 0x3bb   : > { %4375 = vmatmul.mubr.bf16.gmra.mxu1 %v8096_v17 }
 0x3bc   : > { %4384 = vmatprep.mubr.bf16.mxu1 %v8137_v13  ;;  %4526 = vmatpush1.bf16.msra.mxu1 %v6386_v43  ;;  %v6447_v43 = vld [vmem:[%s8751_s8 + $0x18] ss:$28 sps:$4 sm:$0xff]  }
 0x3bd   : > { %4477 = vmatpush2.bf16.msra.mxu0 %v6383_v25  ;;  %4527 = vmatprep.subr.bf16.mxu1 %v6394_v18  ;;  %v6448_v25 = vld [vmem:[%s8751_s8 + $0x398] ss:$28 sps:$4 sm:$0xff]  }
 0x3be   : > { %4478 = vmatprep.subr.bf16.mxu0 %v6391_v7  ;;  %v6449_v18 = vld [vmem:[%s8751_s8 + $0x558] ss:$28 sps:$4 sm:$0xff]  }
 0x3c0   : > { %4528 = vmatpush1.bf16.msra.mxu1 %v6392_v33 }
 0x3c1   : > { %4479 = vmatpush2.bf16.msra.mxu0 %v6389_v53  ;;  %4529 = vmatprep.subr.bf16.mxu1 %v6400_v23 }
 0x3c2   : > { %4480 = vmatprep.subr.bf16.mxu0 %v6397_v41 }
 0x3c3   : > { %4385 = vmatmul.mubr.bf16.gmra.mxu1 %v8147_v3 }
 0x3c4   : > { %4530 = vmatpush1.bf16.msra.mxu1 %v6398_v36  ;;  %5628 = vmatprep.mubr.msk.bf16.mxu1 %vm1747_vm0, %v8049_v47 }
 0x3c5   : > { %4481 = vmatpush2.bf16.msra.mxu0 %v6395_v29  ;;  %4531 = vmatprep.subr.bf16.mxu1 %v6406_v16 }
 0x3c6   : > { %4482 = vmatprep.subr.bf16.mxu0 %v6403_v45 }
 0x3c8   : > { %4532 = vmatpush1.bf16.msra.mxu1 %v6404_v30 }
 0x3c9   : > { %4483 = vmatpush2.bf16.msra.mxu0 %v6401_v20  ;;  %4533 = vmatprep.subr.bf16.mxu1 %v6412_v42 }
 0x3ca   : > { %4484 = vmatprep.subr.bf16.mxu0 %v6409_v46 }
 0x3cc   : > { %4534 = vmatpush1.bf16.msra.mxu1 %v6410_v49 }
 0x3cd   : > { %4485 = vmatpush2.bf16.msra.mxu0 %v6407_v32  ;;  %4535 = vmatprep.subr.bf16.mxu1 %v6418_v40 }
 0x3ce   : > { %4486 = vmatprep.subr.bf16.mxu0 %v6415_v15 }
 0x3d0   : > { %4536 = vmatpush1.bf16.msra.mxu1 %v6416_v5 }
 0x3d1   : > { %4487 = vmatpush2.bf16.msra.mxu0 %v6413_v48  ;;  %4551 = vmatprep.subr.bf16.mxu1 %v6424_v55 }
 0x3d2   : > { %4488 = vmatprep.subr.bf16.mxu0 %v6421_v10 }
 0x3d4   : > { %4552 = vmatpush2.bf16.msra.mxu1 %v6422_v35 }
 0x3d5   : > { %4489 = vmatpush2.bf16.msra.mxu0 %v6419_v21  ;;  %5729 = vmatprep.subr.bf16.mxu1 %v6425_v57 }
 0x3d6   : > { %4641 = vmatprep.subr.bf16.mxu0 %v6638_v51 }
 0x3d7   : > { %4554 = vmatmul.mubr.bf16.vlgmr.msra.gmra.mxu1 %v8059_v58 }
 0x3d8   : > { %4491 = vmatmul.mubr.bf16.vlgmr.msra.gmra.mxu0 %v8057_v0  ;;  %5629 = vmatprep.mubr.msk.bf16.mxu1 %vm1747_vm0, %v8094_v22 }
 0x3d9   : > { %4500 = vmatprep.mubr.bf16.mxu0 %v8092_v31  ;;  %5730 = vmatpush3.bf16.msra.mxu1 %v6426_v60 }
 0x3da   : > { %4642 = vmatpush1.bf16.msra.mxu0 %v8424_v54  ;;  %5731 = vmatprep.subr.bf16.mxu1 %v6428_v24 }
 0x3db   : > { %4643 = vmatprep.subr.bf16.mxu0 %v6638_v51 }
 0x3dd   : > { %5732 = vmatpush3.bf16.msra.mxu1 %v6429_v59 }
 0x3de   : > { %4644 = vmatpush1.bf16.msra.mxu0 %v6430_v11  ;;  %5733 = vmatprep.subr.bf16.mxu1 %v6431_v9 }
 0x3df   : > { %4564 = vmatmul.mubr.bf16.gmra.mxu1 %v8106_v44  ;;  %4645 = vmatprep.subr.bf16.mxu0 %v6638_v51 }
 0x3e0   : > { %4501 = vmatmul.mubr.bf16.gmra.mxu0 %v8096_v17  ;;  %5630 = vmatprep.mubr.msk.bf16.mxu1 %vm1747_vm0, %v8139_v34 }
 0x3e1   : > { %4510 = vmatprep.mubr.bf16.mxu0 %v8137_v13  ;;  %5734 = vmatpush3.bf16.msra.mxu1 %v6432_v61 }
 0x3e2   : > { %4646 = vmatpush1.bf16.msra.mxu0 %v6433_v50  ;;  %5735 = vmatprep.subr.bf16.mxu1 %v6434_v63 }
 0x3e3   : > { %4647 = vmatprep.subr.bf16.mxu0 %v6638_v51 }
 0x3e5   : > { %5736 = vmatpush3.bf16.msra.mxu1 %v6435_v14 }
 0x3e6   : > { %4648 = vmatpush1.bf16.msra.mxu0 %v6436_v1  ;;  %5737 = vmatprep.subr.bf16.mxu1 %v6437_v4 }
 0x3e7   : > { %4574 = vmatmul.mubr.bf16.gmra.mxu1 %v8149_v52  ;;  %4649 = vmatprep.subr.bf16.mxu0 %v6638_v51 }
 0x3e8   : > { %4511 = vmatmul.mubr.bf16.gmra.mxu0 %v8147_v3  ;;  %4616 = vmatprep.mubr.bf16.mxu1 %v8047_v39  ;;  %v6444_v39 = vld [vmem:[%s8751_s8 + $0x50] ss:$28 sps:$4 sm:$0xff]  }
 0x3e9   : > { %5738 = vmatpush3.bf16.msra.mxu1 %v6438_v2  ;;  %5631 = vmatprep.mubr.msk.bf16.mxu0 %vm1747_vm0, %v8049_v47  ;;  %v6445_v47 = vld [vmem:[%s8751_s8 + $0x3d0] ss:$28 sps:$4 sm:$0xff]  }
 0x3ea   : > { %4650 = vmatpush1.bf16.msra.mxu0 %v6439_v6  ;;  %5739 = vmatprep.subr.bf16.mxu1 %v6440_v8 }
 0x3eb   : > { %4651 = vmatprep.subr.bf16.mxu0 %v6638_v51 }
 0x3ed   : > { %5740 = vmatpush3.bf16.msra.mxu1 %v6441_v62 }
 0x3ee   : > { %4652 = vmatpush1.bf16.msra.mxu0 %v6442_v12  ;;  %5741 = vmatprep.subr.bf16.mxu1 %v6443_v37 }
 0x3ef   : > { %4653 = vmatprep.subr.bf16.mxu0 %v6638_v51 }
 0x3f1   : > { %5742 = vmatpush3.bf16.msra.mxu1 %v6444_v39 }
 0x3f2   : > { %4654 = vmatpush1.bf16.msra.mxu0 %v6445_v47  ;;  %5743 = vmatprep.subr.bf16.mxu1 %v6446_v28 }
 0x3f3   : > { %4655 = vmatprep.subr.bf16.mxu0 %v6638_v51 }
 0x3f5   : > { %5744 = vmatpush3.bf16.msra.mxu1 %v6447_v43 }
 0x3f6   : > { %4656 = vmatpush1.bf16.msra.mxu0 %v6448_v25  ;;  %5763 = vmatprep.subr.bf16.mxu1 %v6638_v51 }
 0x3f7   : > { %4671 = vmatprep.subr.bf16.mxu0 %v6638_v51 }
 0x3f8   : > { %4617 = vmatmul.mubr.bf16.vlgmr.msra.gmra.mxu1 %v8057_v0  ;;  %v8541_v0 = vld [vmem:[%s8752_s9] sm:$0x7f] }
 0x3f9   : > { %4624 = vmatprep.mubr.bf16.mxu1 %v8092_v31  ;;  %5772 = vmatpush1.bf16.msra.mxu1 %v8424_v54  ;;  %v8549_v31 = vrot.slane %v8541_v0, %v7604_v26 }
 0x3fa   : > { %4672 = vmatpush2.bf16.msra.mxu0 %v6449_v18  ;;  %5764 = vmatprep.subr.bf16.mxu1 %v6638_v51 }
 0x3fd   : > { %4674 = vmatmul.mubr.bf16.vlgmr.msra.gmra.mxu0 %v8059_v58  ;;  %5773 = vmatpush1.bf16.msra.mxu1 %v6430_v11  ;;  %v8545_v58 = vrot.slane %v8541_v0, %v7607_v27 }
 0x3fe   : > { %5632 = vmatprep.mubr.msk.bf16.mxu0 %vm1747_vm0, %v8094_v22  ;;  %5765 = vmatprep.subr.bf16.mxu1 %v6638_v51 }
 0x400   : > { %4625 = vmatmul.mubr.bf16.gmra.mxu1 %v8096_v17 }
 0x401   : > { %4632 = vmatprep.mubr.bf16.mxu1 %v8137_v13  ;;  %5774 = vmatpush1.bf16.msra.mxu1 %v6433_v50 }
 0x402   : > { %5766 = vmatprep.subr.bf16.mxu1 %v6638_v51 }
 0x405   : > { %4682 = vmatmul.mubr.bf16.gmra.mxu0 %v8106_v44  ;;  %5775 = vmatpush1.bf16.msra.mxu1 %v6436_v1 }
 0x406   : > { %5767 = vmatprep.subr.bf16.mxu1 %v6638_v51 }
 0x408   : > { %4633 = vmatmul.mubr.bf16.gmra.mxu1 %v8147_v3 }
 0x409   : > { %5776 = vmatpush1.bf16.msra.mxu1 %v6439_v6  ;;  %5633 = vmatprep.mubr.msk.bf16.mxu1 %vm1747_vm0, %v8139_v34 }
 0x40a   : > { %5768 = vmatprep.subr.bf16.mxu1 %v6638_v51 }
 0x40d   : > { %5777 = vmatpush1.bf16.msra.mxu1 %v6442_v12 }
 0x40e   : > { %5769 = vmatprep.subr.bf16.mxu1 %v6638_v51 }
 0x411   : > { %5778 = vmatpush1.bf16.msra.mxu1 %v6445_v47 }
 0x412   : > { %5770 = vmatprep.subr.bf16.mxu1 %v6638_v51 }
 0x415   : > { %5779 = vmatpush1.bf16.msra.mxu1 %v6448_v25 }
 0x416   : > { %5771 = vmatprep.subr.bf16.mxu1 %v6638_v51 }
 0x419   : > { %5780 = vmatpush2.bf16.msra.mxu1 %v6449_v18 }
 0x41c   : > { %4690 = vmatmul.mubr.bf16.vlgmr.msra.gmra.mxu1 %v8149_v52 }
 0x432   : > { %v4240_v22 = vpop.f32.mrf.mxu0  ;;  %v4303_v17 = vpop.f32.mrf.mxu1 }
 0x433   : > { %v4241_v51 = vadd.f32 %v4240_v22, %v8545_v58 }
 0x434   : > { %v4242_v44 = vpop.f32.mrf.mxu0  ;;  %v4305_v13 = vpop.f32.mrf.mxu1 }
 0x435   : > { %v4304_v34 = vadd.f32 %v4303_v17, %v4241_v51  ;;  %v4243_v3 = vadd.f32 %v4242_v44, %v8549_v31 }
 0x436   : > { %v4244_v52 = vpop.f32.mrf.mxu0  ;;  %v4307_v7 = vpop.f32.mrf.mxu1 }
 0x437   : > { %v4698_v33 = vmul.f32 0.5, %v4304_v34  ;;  %v4306_v53 = vadd.f32 %v4305_v13, %v4243_v3  ;;  %v4245_v27 = vadd.f32 %v4244_v52, %v8545_v58 }
 0x438   : > { %v4246_v23 = vpop.f32.mrf.mxu0  ;;  %v4309_v41 = vpop.f32.mrf.mxu1 }
 0x439   : > { %6462 = vtanh.f32 %v4698_v33  ;;  %v4699_v26 = vmul.f32 0.5, %v4306_v53  ;;  %v4308_v36 = vadd.f32 %v4307_v7, %v4245_v27  ;;  %v4247_v29 = vadd.f32 %v4246_v23, %v8549_v31 }
 0x43a   : > { %v4250_v16 = vpop.f32.mrf.mxu0 }
 0x43b   : > { %6464 = vtanh.f32 %v4699_v26  ;;  %v4705_v45 = vmul.f32 0.5, %v4308_v36  ;;  %v4310_v30 = vadd.f32 %v4309_v41, %v4247_v29  ;;  %v4251_v20 = vadd.f32 %v4250_v16, %v8545_v58  ;;  %v4313_v42 = vpop.f32.mrf.mxu1 }
 0x43c   : > { %v4252_v46 = vpop.f32.mrf.mxu0 }
 0x43d   : > { %6466 = vtanh.f32 %v4705_v45  ;;  %v4706_v49 = vmul.f32 0.5, %v4310_v30  ;;  %v4314_v32 = vadd.f32 %v4313_v42, %v4251_v20  ;;  %v4253_v40 = vadd.f32 %v4252_v46, %v8549_v31  ;;  %v4315_v15 = vpop.f32.mrf.mxu1 }
 0x43e   : > { %v4254_v5 = vpop.f32.mrf.mxu0 }
 0x43f   : > { %6468 = vtanh.f32 %v4706_v49  ;;  %v4712_v48 = vmul.f32 0.5, %v4314_v32  ;;  %v4316_v55 = vadd.f32 %v4315_v15, %v4253_v40  ;;  %v4255_v10 = vadd.f32 %v4254_v5, %v8545_v58  ;;  %v4317_v35 = vpop.f32.mrf.mxu1 }
 0x440   : > { %v4256_v21 = vpop.f32.mrf.mxu0 }
 0x441   : > { %6470 = vtanh.f32 %v4712_v48  ;;  %v4713_v57 = vmul.f32 0.5, %v4316_v55  ;;  %v4318_v60 = vadd.f32 %v4317_v35, %v4255_v10  ;;  %v4257_v54 = vadd.f32 %v4256_v21, %v8549_v31  ;;  %v4319_v24 = vpop.f32.mrf.mxu1 }
 0x443   : > { %6472 = vtanh.f32 %v4713_v57  ;;  %v4719_v59 = vmul.f32 0.5, %v4318_v60  ;;  %v4320_v11 = vadd.f32 %v4319_v24, %v4257_v54  ;;  %v4260_v9 = vpop.f32.mrf.mxu0  ;;  %v4323_v61 = vpop.f32.mrf.mxu1 }
 0x444   : > { %v4261_v50 = vadd.f32 %v4260_v9, %v8545_v58 }
 0x445   : > { %6474 = vtanh.f32 %v4719_v59  ;;  %v4720_v63 = vmul.f32 0.5, %v4320_v11  ;;  %v4262_v14 = vpop.f32.mrf.mxu0  ;;  %v4325_v1 = vpop.f32.mrf.mxu1 }
 0x446   : > { %v6463_v4 = vpop.eup %6462  ;;  %v4324_v2 = vadd.f32 %v4323_v61, %v4261_v50  ;;  %v4263_v6 = vadd.f32 %v4262_v14, %v8549_v31 }
 0x447   : > { %v4782_v8 = vmul.f32 0.5, %v6463_v4  ;;  %6476 = vtanh.f32 %v4720_v63  ;;  %v4264_v62 = vpop.f32.mrf.mxu0  ;;  %v4327_v12 = vpop.f32.mrf.mxu1 }
 0x448   : > { %v6465_v37 = vpop.eup %6464  ;;  %v4726_v39 = vmul.f32 0.5, %v4324_v2  ;;  %v4326_v47 = vadd.f32 %v4325_v1, %v4263_v6  ;;  %v4265_v28 = vadd.f32 %v4264_v62, %v8545_v58  ;;  %v3273_v6 = vrot.slane %v8541_v0, %v7643_v56 }
 0x449   : > { %v4783_v43 = vmul.f32 0.5, %v6465_v37  ;;  %v4266_v25 = vpop.f32.mrf.mxu0  ;;  %v4824_v44 = vadd.f32 0.5, %v4782_v8  ;;  %v4329_v3 = vpop.f32.mrf.mxu1  ;;  %v8576_v8 = vrot.slane %v8541_v0, %v7640_v38 }
 0x44a   : > { %v6467_v18 = vpop.eup %6466  ;;  %6478 = vtanh.f32 %v4726_v39  ;;  %v4727_v22 = vmul.f32 0.5, %v4326_v47  ;;  %v4328_v17 = vadd.f32 %v4327_v12, %v4265_v28  ;;  %v4267_v51 = vadd.f32 %v4266_v25, %v8549_v31 }
 0x44b   : > { %v4825_v13 = vadd.f32 0.5, %v4783_v43  ;;  %v4789_v34 = vmul.f32 0.5, %v6467_v18 }
 0x44c   : > { %v6469_v52 = vpop.eup %6468  ;;  %6480 = vtanh.f32 %v4727_v22  ;;  %v4733_v7 = vmul.f32 0.5, %v4328_v17  ;;  %v4330_v33 = vadd.f32 %v4329_v3, %v4267_v51 }
 0x44d   : > { %v5670_v53 = vpack.c.bf16 %v4825_v13, %v4824_v44  ;;  %v4790_v27 = vmul.f32 0.5, %v6469_v52  ;;  %v4831_v41 = vadd.f32 0.5, %v4789_v34 }
 0x44e   : > { %v6471_v23 = vpop.eup %6470  ;;  %6482 = vtanh.f32 %v4733_v7  ;;  %v4734_v58 = vmul.f32 0.5, %v4330_v33 }
 0x44f   : > { %4998 = vst [vmem:[%s8564_s25] sm:$0xff] %v5670_v53  ;;  %v4832_v31 = vadd.f32 0.5, %v4790_v27  ;;  %v4796_v26 = vmul.f32 0.5, %v6471_v23 }
 0x450   : > { %v6473_v36 = vpop.eup %6472  ;;  %6484 = vtanh.f32 %v4734_v58 }
 0x451   : > { %v5674_v29 = vpack.c.bf16 %v4832_v31, %v4831_v41  ;;  %v4797_v16 = vmul.f32 0.5, %v6473_v36  ;;  %v4838_v30 = vadd.f32 0.5, %v4796_v26 }
 0x452   : > { %v6475_v45 = vpop.eup %6474 }
 0x453   : > { %5003 = vst [vmem:[%s8564_s25 + $0x1c] sm:$0xff] %v5674_v29  ;;  %v4839_v20 = vadd.f32 0.5, %v4797_v16  ;;  %v4803_v42 = vmul.f32 0.5, %v6475_v45 }
 0x454   : > { %v6477_v46 = vpop.eup %6476 }
 0x455   : > { %v5678_v49 = vpack.c.bf16 %v4839_v20, %v4838_v30  ;;  %v4804_v32 = vmul.f32 0.5, %v6477_v46  ;;  %v4845_v15 = vadd.f32 0.5, %v4803_v42 }
 0x457   : > { %v6479_v40 = vpop.eup %6478  ;;  %5007 = vst [vmem:[%s8564_s25 + $0x38] sm:$0xff] %v5678_v49  ;;  %v4846_v5 = vadd.f32 0.5, %v4804_v32  ;;  %v4429_v50 = vpop.f32.mrf.mxu0 }
 0x458   : > { %v4810_v48 = vmul.f32 0.5, %v6479_v40 }
 0x459   : > { %v6481_v55 = vpop.eup %6480  ;;  %v5682_v10 = vpack.c.bf16 %v4846_v5, %v4845_v15  ;;  %v4431_v14 = vpop.f32.mrf.mxu0 }
 0x45a   : > { %v4811_v35 = vmul.f32 0.5, %v6481_v55  ;;  %v4852_v57 = vadd.f32 0.5, %v4810_v48 }
 0x45b   : > { %v6483_v21 = vpop.eup %6482  ;;  %5011 = vst [vmem:[%s8564_s25 + $0x54] sm:$0xff] %v5682_v10  ;;  %v4433_v1 = vpop.f32.mrf.mxu0 }
 0x45c   : > { %v4853_v60 = vadd.f32 0.5, %v4811_v35  ;;  %v4817_v54 = vmul.f32 0.5, %v6483_v21 }
 0x45d   : > { %v6485_v24 = vpop.eup %6484  ;;  %v4435_v4 = vpop.f32.mrf.mxu0 }
 0x45e   : > { %v5686_v59 = vpack.c.bf16 %v4853_v60, %v4852_v57  ;;  %v4818_v11 = vmul.f32 0.5, %v6485_v24  ;;  %v4859_v9 = vadd.f32 0.5, %v4817_v54 }
 0x45f   : > { %v4439_v2 = vpop.f32.mrf.mxu0 }
 0x460   : > { %5015 = vst [vmem:[%s8564_s25 + $0x70] sm:$0xff] %v5686_v59  ;;  %v4860_v61 = vadd.f32 0.5, %v4818_v11 }
 0x461   : > { %v4441_v12 = vpop.f32.mrf.mxu0 }
 0x462   : > { %v5690_v63 = vpack.c.bf16 %v4860_v61, %v4859_v9 }
 0x463   : > { %v4443_v25 = vpop.f32.mrf.mxu0 }
 0x464   : > { %5019 = vst [vmem:[%s8564_s25 + $0x8c] sm:$0xff] %v5690_v63 }
 0x465   : > { %v4445_v34 = vpop.f32.mrf.mxu0 }
 0x467   : > { %v4449_v41 = vpop.f32.mrf.mxu0 }
 0x469   : > { %v4451_v42 = vpop.f32.mrf.mxu0 }
 0x46b   : > { %v4453_v35 = vpop.f32.mrf.mxu0 }
 0x473   : > { %v4366_v62 = vpop.f32.mrf.mxu1 }
 0x474   : > { %v4367_v37 = vadd.f32 %v4366_v62, %v3273_v6 }
 0x475   : > { %v4368_v39 = vpop.f32.mrf.mxu1 }
 0x476   : > { %v4430_v47 = vadd.f32 %v4429_v50, %v4367_v37  ;;  %v4369_v28 = vadd.f32 %v4368_v39, %v8576_v8 }
 0x477   : > { %v4370_v43 = vpop.f32.mrf.mxu1 }
 0x478   : > { %v4700_v18 = vmul.f32 0.5, %v4430_v47  ;;  %v4432_v22 = vadd.f32 %v4431_v14, %v4369_v28  ;;  %v4371_v17 = vadd.f32 %v4370_v43, %v3273_v6  ;;  %v4455_v14 = vpop.f32.mrf.mxu0 }
 0x479   : > { %v4372_v51 = vpop.f32.mrf.mxu1 }
 0x47a   : > { %6486 = vtanh.f32 %v4700_v18  ;;  %v4701_v44 = vmul.f32 0.5, %v4432_v22  ;;  %v4434_v56 = vadd.f32 %v4433_v1, %v4371_v17  ;;  %v4373_v13 = vadd.f32 %v4372_v51, %v8576_v8 }
 0x47b   : > { %v4376_v38 = vpop.f32.mrf.mxu1 }
 0x47c   : > { %6488 = vtanh.f32 %v4701_v44  ;;  %v4707_v3 = vmul.f32 0.5, %v4434_v56  ;;  %v4436_v52 = vadd.f32 %v4435_v4, %v4373_v13  ;;  %v4377_v7 = vadd.f32 %v4376_v38, %v3273_v6 }
 0x47d   : > { %v4378_v33 = vpop.f32.mrf.mxu1  ;;  %v3284_v56 = vsub.s32 5, %v7601_v19 }
 0x47e   : > { %6490 = vtanh.f32 %v4707_v3  ;;  %v4708_v53 = vmul.f32 0.5, %v4436_v52  ;;  %v4440_v27 = vadd.f32 %v4439_v2, %v4377_v7  ;;  %v4379_v23 = vadd.f32 %v4378_v33, %v8576_v8 }
 0x47f   : > { %v4380_v58 = vpop.f32.mrf.mxu1 }
 0x480   : > { %6492 = vtanh.f32 %v4708_v53  ;;  %v4714_v31 = vmul.f32 0.5, %v4440_v27  ;;  %v4442_v26 = vadd.f32 %v4441_v12, %v4379_v23  ;;  %v4381_v36 = vadd.f32 %v4380_v58, %v3273_v6 }
 0x481   : > { %v4382_v29 = vpop.f32.mrf.mxu1  ;;  %v8592_v23 = vrot.slane %v8541_v0, %v3284_v56 }
 0x482   : > { %6494 = vtanh.f32 %v4714_v31  ;;  %v4715_v16 = vmul.f32 0.5, %v4442_v26  ;;  %v4444_v45 = vadd.f32 %v4443_v25, %v4381_v36  ;;  %v4383_v30 = vadd.f32 %v4382_v29, %v8576_v8 }
 0x483   : > { %v4386_v20 = vpop.f32.mrf.mxu1 }
 0x484   : > { %6496 = vtanh.f32 %v4715_v16  ;;  %v4721_v46 = vmul.f32 0.5, %v4444_v45  ;;  %v4446_v49 = vadd.f32 %v4445_v34, %v4383_v30  ;;  %v4387_v32 = vadd.f32 %v4386_v20, %v3273_v6 }
 0x485   : > { %v4388_v40 = vpop.f32.mrf.mxu1 }
 0x486   : > { %6498 = vtanh.f32 %v4721_v46  ;;  %v4722_v15 = vmul.f32 0.5, %v4446_v49  ;;  %v4450_v5 = vadd.f32 %v4449_v41, %v4387_v32  ;;  %v4389_v48 = vadd.f32 %v4388_v40, %v8576_v8 }
 0x487   : > { %v6487_v55 = vpop.eup %6486  ;;  %v4390_v10 = vpop.f32.mrf.mxu1 }
 0x488   : > { %v4784_v21 = vmul.f32 0.5, %v6487_v55  ;;  %6500 = vtanh.f32 %v4722_v15  ;;  %v4728_v57 = vmul.f32 0.5, %v4450_v5  ;;  %v4452_v60 = vadd.f32 %v4451_v42, %v4389_v48 }
 0x489   : > { %v6489_v54 = vpop.eup %6488  ;;  %v4391_v24 = vadd.f32 %v4390_v10, %v3273_v6  ;;  %v4392_v59 = vpop.f32.mrf.mxu1 }
 0x48a   : > { %v4785_v11 = vmul.f32 0.5, %v6489_v54  ;;  %6502 = vtanh.f32 %v4728_v57  ;;  %v4729_v9 = vmul.f32 0.5, %v4452_v60  ;;  %v4393_v63 = vadd.f32 %v4392_v59, %v8576_v8 }
 0x48b   : > { %v6491_v61 = vpop.eup %6490  ;;  %v4454_v50 = vadd.f32 %v4453_v35, %v4391_v24  ;;  %v4826_v1 = vadd.f32 0.5, %v4784_v21  ;;  %v3280_v8 = vsub.s32 4, %v7601_v19 }
 0x48c   : > { %v4827_v4 = vadd.f32 0.5, %v4785_v11  ;;  %v4791_v2 = vmul.f32 0.5, %v6491_v61  ;;  %6504 = vtanh.f32 %v4729_v9  ;;  %v4456_v37 = vadd.f32 %v4455_v14, %v4393_v63 }
 0x48d   : > { %v6493_v62 = vpop.eup %6492  ;;  %v4735_v12 = vmul.f32 0.5, %v4454_v50  ;;  %v8589_v52 = vrot.slane %v8541_v0, %v3280_v8 }
 0x48e   : > { %v5671_v39 = vpack.c.bf16 %v4827_v4, %v4826_v1  ;;  %v4792_v6 = vmul.f32 0.5, %v6493_v62  ;;  %v4736_v28 = vmul.f32 0.5, %v4456_v37  ;;  %v4833_v43 = vadd.f32 0.5, %v4791_v2 }
 0x48f   : > { %v6495_v47 = vpop.eup %6494  ;;  %6506 = vtanh.f32 %v4735_v12 }
 0x490   : > { %4999 = vst [vmem:[%s8564_s25 + $0x8] sm:$0xff] %v5671_v39  ;;  %v4834_v25 = vadd.f32 0.5, %v4792_v6  ;;  %v4798_v18 = vmul.f32 0.5, %v6495_v47  ;;  %6508 = vtanh.f32 %v4736_v28 }
 0x491   : > { %v6497_v22 = vpop.eup %6496 }
 0x492   : > { %v5675_v17 = vpack.c.bf16 %v4834_v25, %v4833_v43  ;;  %v4799_v51 = vmul.f32 0.5, %v6497_v22  ;;  %v4840_v13 = vadd.f32 0.5, %v4798_v18 }
 0x493   : > { %v6499_v44 = vpop.eup %6498 }
 0x494   : > { %5004 = vst [vmem:[%s8564_s25 + $0x24] sm:$0xff] %v5675_v17  ;;  %v4841_v38 = vadd.f32 0.5, %v4799_v51  ;;  %v4805_v34 = vmul.f32 0.5, %v6499_v44 }
 0x495   : > { %v6501_v3 = vpop.eup %6500 }
 0x496   : > { %v5679_v7 = vpack.c.bf16 %v4841_v38, %v4840_v13  ;;  %v4806_v33 = vmul.f32 0.5, %v6501_v3  ;;  %v4847_v58 = vadd.f32 0.5, %v4805_v34 }
 0x497   : > { %v6503_v53 = vpop.eup %6502  ;;  %v4555_v27 = vpop.f32.mrf.mxu1 }
 0x498   : > { %5008 = vst [vmem:[%s8564_s25 + $0x40] sm:$0xff] %v5679_v7  ;;  %v4848_v41 = vadd.f32 0.5, %v4806_v33  ;;  %v4812_v31 = vmul.f32 0.5, %v6503_v53  ;;  %v4492_v26 = vpop.f32.mrf.mxu0 }
 0x499   : > { %v6505_v36 = vpop.eup %6504  ;;  %v4493_v29 = vadd.f32 %v4492_v26, %v8589_v52  ;;  %v4557_v16 = vpop.f32.mrf.mxu1 }
 0x49a   : > { %v5683_v45 = vpack.c.bf16 %v4848_v41, %v4847_v58  ;;  %v4813_v30 = vmul.f32 0.5, %v6505_v36  ;;  %v4494_v20 = vpop.f32.mrf.mxu0  ;;  %v4854_v40 = vadd.f32 0.5, %v4812_v31 }
 0x49b   : > { %v4556_v42 = vadd.f32 %v4555_v27, %v4493_v29  ;;  %v4495_v46 = vadd.f32 %v4494_v20, %v8592_v23  ;;  %v4559_v49 = vpop.f32.mrf.mxu1 }
 0x49c   : > { %v6507_v32 = vpop.eup %6506  ;;  %5012 = vst [vmem:[%s8564_s25 + $0x5c] sm:$0xff] %v5683_v45  ;;  %v4855_v15 = vadd.f32 0.5, %v4813_v30  ;;  %v4496_v5 = vpop.f32.mrf.mxu0 }
 0x49d   : > { %v4819_v48 = vmul.f32 0.5, %v6507_v32  ;;  %v4702_v55 = vmul.f32 0.5, %v4556_v42  ;;  %v4558_v10 = vadd.f32 %v4557_v16, %v4495_v46  ;;  %v4497_v35 = vadd.f32 %v4496_v5, %v8589_v52  ;;  %v4561_v21 = vpop.f32.mrf.mxu1  ;;  %v6509_v57 = vpop.eup %6508 }
 0x49e   : > { %v5687_v60 = vpack.c.bf16 %v4855_v15, %v4854_v40  ;;  %v4498_v54 = vpop.f32.mrf.mxu0  ;;  %v4820_v24 = vmul.f32 0.5, %v6509_v57 }
 0x49f   : > { %6510 = vtanh.f32 %v4702_v55  ;;  %v4703_v59 = vmul.f32 0.5, %v4558_v10  ;;  %v4565_v11 = vpop.f32.mrf.mxu1  ;;  %v4560_v9 = vadd.f32 %v4559_v49, %v4497_v35  ;;  %v4499_v61 = vadd.f32 %v4498_v54, %v8592_v23 }
 0x4a0   : > { %5016 = vst [vmem:[%s8564_s25 + $0x78] sm:$0xff] %v5687_v60  ;;  %v4502_v50 = vpop.f32.mrf.mxu0  ;;  %v4861_v63 = vadd.f32 0.5, %v4819_v48  ;;  %v4862_v14 = vadd.f32 0.5, %v4820_v24 }
 0x4a1   : > { %6512 = vtanh.f32 %v4703_v59  ;;  %v4503_v1 = vadd.f32 %v4502_v50, %v8589_v52  ;;  %v4567_v4 = vpop.f32.mrf.mxu1  ;;  %v4709_v2 = vmul.f32 0.5, %v4560_v9  ;;  %v4562_v62 = vadd.f32 %v4561_v21, %v4499_v61 }
 0x4a2   : > { %v4504_v12 = vpop.f32.mrf.mxu0  ;;  %v5691_v37 = vpack.c.bf16 %v4862_v14, %v4861_v63 }
 0x4a3   : > { %v4566_v39 = vadd.f32 %v4565_v11, %v4503_v1  ;;  %v4505_v6 = vadd.f32 %v4504_v12, %v8592_v23  ;;  %v4569_v47 = vpop.f32.mrf.mxu1  ;;  %6514 = vtanh.f32 %v4709_v2  ;;  %v4710_v28 = vmul.f32 0.5, %v4562_v62 }
 0x4a4   : > { %v4506_v43 = vpop.f32.mrf.mxu0  ;;  %5020 = vst [vmem:[%s8564_s25 + $0x94] sm:$0xff] %v5691_v37  ;;  %v3288_v11 = vsub.s32 6, %v7601_v19 }
 0x4a5   : > { %v4716_v25 = vmul.f32 0.5, %v4566_v39  ;;  %v4568_v18 = vadd.f32 %v4567_v4, %v4505_v6  ;;  %v4507_v22 = vadd.f32 %v4506_v43, %v8589_v52  ;;  %v4571_v8 = vpop.f32.mrf.mxu1  ;;  %6516 = vtanh.f32 %v4710_v28 }
 0x4a6   : > { %v4508_v17 = vpop.f32.mrf.mxu0  ;;  %v8613_v12 = vrot.slane %v8541_v0, %v3288_v11 }
 0x4a7   : > { %6518 = vtanh.f32 %v4716_v25  ;;  %v4717_v51 = vmul.f32 0.5, %v4568_v18  ;;  %v4570_v44 = vadd.f32 %v4569_v47, %v4507_v22  ;;  %v4509_v56 = vadd.f32 %v4508_v17, %v8592_v23  ;;  %v4575_v13 = vpop.f32.mrf.mxu1 }
 0x4a8   : > { %v4512_v38 = vpop.f32.mrf.mxu0 }
 0x4a9   : > { %6520 = vtanh.f32 %v4717_v51  ;;  %v4723_v34 = vmul.f32 0.5, %v4570_v44  ;;  %v4572_v3 = vadd.f32 %v4571_v8, %v4509_v56  ;;  %v4513_v7 = vadd.f32 %v4512_v38, %v8589_v52  ;;  %v4577_v33 = vpop.f32.mrf.mxu1 }
 0x4aa   : > { %v4514_v53 = vpop.f32.mrf.mxu0 }
 0x4ab   : > { %6522 = vtanh.f32 %v4723_v34  ;;  %v4724_v27 = vmul.f32 0.5, %v4572_v3  ;;  %v4576_v58 = vadd.f32 %v4575_v13, %v4513_v7  ;;  %v4515_v41 = vadd.f32 %v4514_v53, %v8592_v23  ;;  %v4579_v45 = vpop.f32.mrf.mxu1 }
 0x4ac   : > { %v6511_v31 = vpop.eup %6510  ;;  %v4516_v26 = vpop.f32.mrf.mxu0 }
 0x4ad   : > { %v4786_v36 = vmul.f32 0.5, %v6511_v31  ;;  %6524 = vtanh.f32 %v4724_v27  ;;  %v4730_v29 = vmul.f32 0.5, %v4576_v58  ;;  %v4578_v16 = vadd.f32 %v4577_v33, %v4515_v41  ;;  %v4581_v55 = vpop.f32.mrf.mxu1 }
 0x4ae   : > { %v6513_v30 = vpop.eup %6512  ;;  %v4517_v20 = vadd.f32 %v4516_v26, %v8589_v52  ;;  %v4518_v42 = vpop.f32.mrf.mxu0 }
 0x4af   : > { %v4787_v46 = vmul.f32 0.5, %v6513_v30  ;;  %6526 = vtanh.f32 %v4730_v29  ;;  %v4731_v49 = vmul.f32 0.5, %v4578_v16  ;;  %v4519_v40 = vadd.f32 %v4518_v42, %v8592_v23 }
 0x4b0   : > { %v4580_v32 = vadd.f32 %v4579_v45, %v4517_v20  ;;  %v6515_v15 = vpop.eup %6514  ;;  %v4828_v5 = vadd.f32 0.5, %v4786_v36 }
 0x4b1   : > { %v4829_v48 = vadd.f32 0.5, %v4787_v46  ;;  %6528 = vtanh.f32 %v4731_v49  ;;  %v4793_v10 = vmul.f32 0.5, %v6515_v15  ;;  %v4582_v21 = vadd.f32 %v4581_v55, %v4519_v40 }
 0x4b2   : > { %v4737_v35 = vmul.f32 0.5, %v4580_v32  ;;  %v6517_v57 = vpop.eup %6516 }
 0x4b3   : > { %v5672_v60 = vpack.c.bf16 %v4829_v48, %v4828_v5  ;;  %v4794_v52 = vmul.f32 0.5, %v6517_v57  ;;  %v4738_v24 = vmul.f32 0.5, %v4582_v21  ;;  %v4835_v9 = vadd.f32 0.5, %v4793_v10 }
 0x4b4   : > { %v6519_v54 = vpop.eup %6518  ;;  %6530 = vtanh.f32 %v4737_v35 }
 0x4b5   : > { %5000 = vst [vmem:[%s8564_s25 + $0x10] sm:$0xff] %v5672_v60  ;;  %v4800_v59 = vmul.f32 0.5, %v6519_v54  ;;  %v4836_v61 = vadd.f32 0.5, %v4794_v52  ;;  %6532 = vtanh.f32 %v4738_v24 }
 0x4b6   : > { %v6521_v23 = vpop.eup %6520 }
 0x4b7   : > { %v4801_v50 = vmul.f32 0.5, %v6521_v23  ;;  %v5676_v14 = vpack.c.bf16 %v4836_v61, %v4835_v9  ;;  %v4842_v4 = vadd.f32 0.5, %v4800_v59 }
 0x4b8   : > { %v6523_v63 = vpop.eup %6522  ;;  %v5745_v1 = vpop.f32.mrf.mxu1 }
 0x4b9   : > { %v4843_v2 = vadd.f32 0.5, %v4801_v50  ;;  %v4807_v62 = vmul.f32 0.5, %v6523_v63  ;;  %5005 = vst [vmem:[%s8564_s25 + $0x2c] sm:$0xff] %v5676_v14 }
 0x4ba   : > { %v6525_v37 = vpop.eup %6524  ;;  %v5746_v39 = vpop.f32.mrf.mxu1 }
 0x4bb   : > { %v5680_v6 = vpack.c.bf16 %v4843_v2, %v4842_v4  ;;  %v4808_v19 = vmul.f32 0.5, %v6525_v37  ;;  %v5747_v47 = vadd.f32 %v5746_v39, %v5745_v1  ;;  %v4849_v25 = vadd.f32 0.5, %v4807_v62 }
 0x4bc   : > { %v6527_v28 = vpop.eup %6526  ;;  %v5748_v43 = vpop.f32.mrf.mxu1 }
 0x4bd   : > { %5009 = vst [vmem:[%s8564_s25 + $0x48] sm:$0xff] %v5680_v6  ;;  %v4850_v18 = vadd.f32 0.5, %v4808_v19  ;;  %v4814_v22 = vmul.f32 0.5, %v6527_v28  ;;  %v4619_v8 = vadd.f32 %v5747_v47, %v8613_v12  ;;  %v4675_v17 = vpop.f32.mrf.mxu0 }
 0x4be   : > { %v6529_v51 = vpop.eup %6528  ;;  %v5749_v44 = vpop.f32.mrf.mxu1 }
 0x4bf   : > { %v5684_v0 = vpack.c.bf16 %v4850_v18, %v4849_v25  ;;  %v4815_v56 = vmul.f32 0.5, %v6529_v51  ;;  %v4676_v13 = vadd.f32 %v4675_v17, %v4619_v8  ;;  %v4677_v38 = vpop.f32.mrf.mxu0  ;;  %v5750_v34 = vadd.f32 %v5749_v44, %v5748_v43 }
 0x4c0   : > { %v5751_v3 = vpop.f32.mrf.mxu1  ;;  %v4856_v33 = vadd.f32 0.5, %v4814_v22 }
 0x4c1   : > { %v6531_v7 = vpop.eup %6530  ;;  %5013 = vst [vmem:[%s8564_s25 + $0x64] sm:$0xff] %v5684_v0  ;;  %v4857_v53 = vadd.f32 0.5, %v4815_v56  ;;  %v4704_v27 = vmul.f32 0.5, %v4676_v13  ;;  %v4678_v58 = vpop.f32.mrf.mxu0  ;;  %v4622_v31 = vadd.f32 %v5750_v34, %v8613_v12 }
 0x4c2   : > { %v4821_v41 = vmul.f32 0.5, %v6531_v7  ;;  %v5752_v26 = vpop.f32.mrf.mxu1  ;;  %v6533_v36 = vpop.eup %6532 }
 0x4c3   : > { %v5688_v29 = vpack.c.bf16 %v4857_v53, %v4856_v33  ;;  %6534 = vtanh.f32 %v4704_v27  ;;  %v5753_v16 = vadd.f32 %v5752_v26, %v5751_v3  ;;  %v4680_v45 = vpop.f32.mrf.mxu0  ;;  %v4822_v30 = vmul.f32 0.5, %v6533_v36 }
 0x4c4   : > { %v4679_v20 = vadd.f32 %v4678_v58, %v4622_v31  ;;  %v5754_v42 = vpop.f32.mrf.mxu1  ;;  %v4863_v32 = vadd.f32 0.5, %v4821_v41 }
 0x4c5   : > { %5017 = vst [vmem:[%s8564_s25 + $0x80] sm:$0xff] %v5688_v29  ;;  %v4627_v46 = vadd.f32 %v5753_v16, %v8613_v12  ;;  %v4683_v49 = vpop.f32.mrf.mxu0  ;;  %v4864_v40 = vadd.f32 0.5, %v4822_v30 }
 0x4c6   : > { %v4711_v15 = vmul.f32 0.5, %v4679_v20  ;;  %v5755_v5 = vpop.f32.mrf.mxu1 }
 0x4c7   : > { %v4684_v48 = vadd.f32 %v4683_v49, %v4627_v46  ;;  %v5756_v55 = vadd.f32 %v5755_v5, %v5754_v42  ;;  %v4685_v10 = vpop.f32.mrf.mxu0  ;;  %v5692_v35 = vpack.c.bf16 %v4864_v40, %v4863_v32 }
 0x4c8   : > { %6536 = vtanh.f32 %v4711_v15  ;;  %v5757_v24 = vpop.f32.mrf.mxu1 }
 0x4c9   : > { %v4718_v21 = vmul.f32 0.5, %v4684_v48  ;;  %v4630_v57 = vadd.f32 %v5756_v55, %v8613_v12  ;;  %v4686_v60 = vpop.f32.mrf.mxu0  ;;  %5021 = vst [vmem:[%s8564_s25 + $0x9c] sm:$0xff] %v5692_v35 }
 0x4ca   : > { %v5758_v23 = vpop.f32.mrf.mxu1 }
 0x4cb   : > { %6538 = vtanh.f32 %v4718_v21  ;;  %v4687_v54 = vadd.f32 %v4686_v60, %v4630_v57  ;;  %v4688_v52 = vpop.f32.mrf.mxu0  ;;  %v5759_v4 = vadd.f32 %v5758_v23, %v5757_v24 }
 0x4cc   : > { %v5760_v50 = vpop.f32.mrf.mxu1 }
 0x4cd   : > { %v4725_v59 = vmul.f32 0.5, %v4687_v54  ;;  %v4635_v28 = vadd.f32 %v5759_v4, %v8613_v12 }
 0x4ce   : > { %v5761_v37 = vpop.f32.mrf.mxu1 }
 0x4cf   : > { %6540 = vtanh.f32 %v4725_v59  ;;  %v5762_v47 = vadd.f32 %v5761_v37, %v5760_v50 }
 0x4d0   : > { %v6535_v11 = vpop.eup %6534 }
 0x4d1   : > { %v4788_v9 = vmul.f32 0.5, %v6535_v11  ;;  %v4638_v0 = vadd.f32 %v5762_v47, %v8613_v12 }
 0x4d3   : > { %v4830_v61 = vadd.f32 0.5, %v4788_v9 }
 0x4d5   : > { %v6537_v63 = vpop.eup %6536  ;;  %v5673_v14 = vpack.c.bf16 %v4830_v61, %v4830_v61 }
 0x4d6   : > { %v4795_v1 = vmul.f32 0.5, %v6537_v63 }
 0x4d7   : > { %5002 = vst.msk [vmem:[%s8564_s25 + $0x18] sm:$0xf] %vm5001_vm5, %v5673_v14 }
 0x4d8   : > { %v6539_v2 = vpop.eup %6538  ;;  %v4837_v62 = vadd.f32 0.5, %v4795_v1 }
 0x4d9   : > { %v4802_v39 = vmul.f32 0.5, %v6539_v2 }
 0x4da   : > { %v5677_v6 = vpack.c.bf16 %v4837_v62, %v4837_v62 }
 0x4db   : > { %v4844_v19 = vadd.f32 0.5, %v4802_v39 }
 0x4dc   : > { %v6541_v43 = vpop.eup %6540  ;;  %5006 = vst.msk [vmem:[%s8564_s25 + $0x34] sm:$0xf] %vm5001_vm5, %v5677_v6  ;;  %v4691_v25 = vpop.f32.mrf.mxu1 }
 0x4dd   : > { %v5681_v18 = vpack.c.bf16 %v4844_v19, %v4844_v19  ;;  %v4809_v22 = vmul.f32 0.5, %v6541_v43  ;;  %v4692_v8 = vadd.f32 %v4691_v25, %v4635_v28 }
 0x4de   : > { %v4693_v17 = vpop.f32.mrf.mxu1 }
 0x4df   : > { %5010 = vst.msk [vmem:[%s8564_s25 + $0x50] sm:$0xf] %vm5001_vm5, %v5681_v18  ;;  %v4851_v51 = vadd.f32 0.5, %v4809_v22  ;;  %v4732_v44 = vmul.f32 0.5, %v4692_v8 }
 0x4e0   : > { %v4694_v56 = vpop.f32.mrf.mxu1 }
 0x4e1   : > { %v5685_v13 = vpack.c.bf16 %v4851_v51, %v4851_v51  ;;  %6542 = vtanh.f32 %v4732_v44  ;;  %v4695_v38 = vadd.f32 %v4694_v56, %v4638_v0 }
 0x4e2   : > { %v4696_v34 = vpop.f32.mrf.mxu1 }
 0x4e3   : > { %5014 = vst.msk [vmem:[%s8564_s25 + $0x6c] sm:$0xf] %vm5001_vm5, %v5685_v13  ;;  %v4739_v3 = vmul.f32 0.5, %v4695_v38 }
 0x4e5   : > { %6544 = vtanh.f32 %v4739_v3 }
 0x4ee   : > { %v6543_v7 = vpop.eup %6542 }
 0x4ef   : > { %v4816_v33 = vmul.f32 0.5, %v6543_v7 }
 0x4f1   : > { %v4858_v53 = vadd.f32 0.5, %v4816_v33 }
 0x4f2   : > { %v6545_v27 = vpop.eup %6544 }
 0x4f3   : > { %v5689_v58 = vpack.c.bf16 %v4858_v53, %v4858_v53  ;;  %v4823_v41 = vmul.f32 0.5, %v6545_v27 }
 0x4f5   : > { %5018 = vst.msk [vmem:[%s8564_s25 + $0x88] sm:$0xf] %vm5001_vm5, %v5689_v58  ;;  %v4865_v12 = vadd.f32 0.5, %v4823_v41  ;;  %5035 = sbr.rel (!%p6743_p5) target bundleno = 1303 (0x517), region = 64 }
 0x4f7   : > { %v5693_v31 = vpack.c.bf16 %v4865_v12, %v4865_v12 }
 0x4f9   : > { %5022 = vst.msk [vmem:[%s8564_s25 + $0xa4] sm:$0xf] %vm5001_vm5, %v5693_v31 }
 0x4fa   : > { %s8780_s24 = smov (!%p5038_p11, %s5037_s24), 6 }
 0x4fb   : > { %s8643_s28 = smul.u32 448, %s8780_s24 }
 0x4fd   : > { %s5043_s12 = ssub.s32 2688, %s8643_s28 }
 0x4fe   : > { %5044 = vsyncadd %s8759_s29, %s5043_s12  ;;  %p5660_p12 = scmp.ne.s32.totalorder %s8643_s28, 0  ;;  %s5794_s19 = smul.u32 2688, %s6726_s21 }
 0x4ff   : > { %s5050_s15 = sshll.u32 %s8564_s25, 4  ;;  %s6639_s12 = smov [#allocation2]   ;;  %s8656_s15 = int_to_ptr.vmem [resolvable:$true] %s5050_s15 }
 0x500   : > { %s8654_s13 = scalar_lea.hbm %s8753_s10, %s5794_s19  ;;  %s6546_s24 = scalar_lea.vmem %s8656_s15, %s8643_s28 }
 0x501   : > { %p6547_p13 = scmp.ne.s32.totalorder %s8656_s15, %s6546_s24  ;;  %s6550_s30 = sshll.u32 %s6639_s12, 4  ;;  %s6551_s30 = int_to_ptr.vmem [resolvable:$false] %s6550_s30 }
 0x502   : > { %s6552_s29 = scalar_lea.vmem %s6551_s30, 5376  ;;  %p6553_p2 = scmp.lt.s32.totalorder %s8656_s15, %s6551_s30 }
 0x503   : > { %p6548_p0 = pnand %p6547_p13, %p5660_p12  ;;  %p6554_p3 = scmp.lt.s32.totalorder %s6552_s29, %s6546_s24 }
 0x505   : > { %p6549_p1 = pneg %p6548_p0  ;;  %p6555_p4 = por %p6554_p3, %p6553_p2 }
 0x507   : > { %p6556_p7 = pnand %p6555_p4, %p6549_p1 }
 0x509   : > { %6559 = shalt.err (!%p6556_p7)
}
 0x50a   : > { %s6560_s25 = scalar_lea.hbm %s8654_s13, %s8643_s28  ;;  %s6564_s22 = scalar_lea.hbm %s8753_s10, 4480 }
 0x50b   : > { %p6561_p8 = scmp.ne.s32.totalorder %s8654_s13, %s6560_s25  ;;  %p6565_p11 = scmp.lt.s32.totalorder %s8654_s13, %s8753_s10 }
 0x50c   : > { %p6566_p13 = scmp.lt.s32.totalorder %s6564_s22, %s6560_s25 }
 0x50d   : > { %p6562_p9 = pnand %p6561_p8, %p5660_p12 }
 0x50e   : > { %p6567_p0 = por %p6566_p13, %p6565_p11 }
 0x50f   : > { %p6563_p10 = pneg %p6562_p9 }
 0x511   : > { %p6568_p1 = pnand %p6567_p0, %p6563_p10 }
 0x513   : > { %6571 = shalt.err (!%p6568_p1)
}
 0x514   : > { %s6640_s29 = smov 448   ;;  %s6641_s24 = smov 28  }
 0x515   : > { %s8770_s0 = scalar_lea.sflag [#allocation3], %s7766_s26 }
 0x516   : > { %5056 = dma.vmem_to_hbm [thread:$0]  (%p5660_p12), %s8656_s15, %s8643_s28, %s8654_s13, %s8770_s0, %s6640_s29, %s6640_s29, %s6641_s24  }
 0x517 PF: > { %5059 = sbr.rel (!%p6743_p5) target bundleno = 1336 (0x538), region = 68  ;;  %s5061_s25 = ssub.s32 (%p6743_p5), 10, %s6838_s16 }
 0x518   : > { %p5062_p2 = scmp.lt.s32.totalorder (%p6743_p5), %s5061_s25, 6  ;;  %s8771_s22 = scalar_lea.sflag (%p6743_p5), [#allocation5], %s7766_s26 }
 0x51c   : > { %s8782_s25 = smov (!%p5062_p2, %s5061_s25), 6 }
 0x51d   : > { %s8686_s19 = sshll.u32 %s8782_s25, 7 }
 0x51e   : > { %s5066_s23 = ssub.s32 768, %s8686_s19 }
 0x51f   : > { %5067 = vsyncadd %s8771_s22, %s5066_s23  ;;  %p5664_p12 = scmp.ne.s32.totalorder %s8686_s19, 0  ;;  %s5694_s0 = smul.u32 768, %s6726_s21 }
 0x520   : > { %s5072_s27 = sshll.u32 %s7807_s14, 4  ;;  %s6642_s12 = smov [#allocation4]   ;;  %s8699_s27 = int_to_ptr.vmem [resolvable:$true] %s5072_s27 }
 0x521   : > { %s8697_s16 = scalar_lea.hbm %s8754_s11, %s5694_s0  ;;  %s6572_s13 = scalar_lea.vmem %s8699_s27, %s8686_s19 }
 0x522   : > { %p6573_p5 = scmp.ne.s32.totalorder %s8699_s27, %s6572_s13  ;;  %s6576_s30 = sshll.u32 %s6642_s12, 4  ;;  %s6577_s30 = int_to_ptr.vmem [resolvable:$false] %s6576_s30 }
 0x523   : > { %s6578_s21 = scalar_lea.vmem %s6577_s30, 1536  ;;  %p6579_p7 = scmp.lt.s32.totalorder %s8699_s27, %s6577_s30 }
 0x524   : > { %p6574_p3 = pnand %p6573_p5, %p5664_p12  ;;  %p6580_p8 = scmp.lt.s32.totalorder %s6578_s21, %s6572_s13 }
 0x526   : > { %p6575_p4 = pneg %p6574_p3  ;;  %p6581_p9 = por %p6580_p8, %p6579_p7 }
 0x528   : > { %p6582_p10 = pnand %p6581_p9, %p6575_p4 }
 0x52a   : > { %6585 = shalt.err (!%p6582_p10)
}
 0x52b   : > { %s6586_s14 = scalar_lea.hbm %s8697_s16, %s8686_s19  ;;  %s6590_s25 = scalar_lea.hbm %s8754_s11, 1280 }
 0x52c   : > { %p6587_p11 = scmp.ne.s32.totalorder %s8697_s16, %s6586_s14  ;;  %p6591_p1 = scmp.lt.s32.totalorder %s8697_s16, %s8754_s11 }
 0x52d   : > { %p6592_p2 = scmp.lt.s32.totalorder %s6590_s25, %s6586_s14 }
 0x52e   : > { %p6588_p13 = pnand %p6587_p11, %p5664_p12 }
 0x52f   : > { %p6593_p5 = por %p6592_p2, %p6591_p1 }
 0x530   : > { %p6589_p0 = pneg %p6588_p13 }
 0x532   : > { %p6594_p3 = pnand %p6593_p5, %p6589_p0 }
 0x534   : > { %6597 = shalt.err (!%p6594_p3)
}
 0x535   : > { %s6643_s0 = smov 128   ;;  %s6644_s28 = smov 8  }
 0x536   : > { %s8772_s15 = scalar_lea.sflag [#allocation5], %s7766_s26 }
 0x537   : > { %5078 = dma.vmem_to_hbm [thread:$0]  (%p5664_p12), %s8699_s27, %s8686_s19, %s8697_s16, %s8772_s15, %s6643_s0, %s6643_s0, %s6644_s28  }
 0x538 PF: > { %p5795_p4 = scmp.ge.s32.totalorder %s6636_s20, 2  ;;  %s5087_s12 = sand.u32 1, %s6624_s17  }
 0x539   : > { %s5088_s30 = scalar_lea.sflag [#allocation3], %s5087_s12 }
 0x53a   : > { %p5788_p7 = pnand %p5795_p4, %p6747_p6 }
 0x53c   : > { %p5789_p8 = pneg %p5788_p7 }
 0x53e   : > { %6615 = dma.done.wait (%p5789_p8), %s5088_s30, 2688  }
 0x53f   : > { %6617 = vsyncadd (%p5789_p8), %s5088_s30, 4294964608  ;;  %s5097_s21 = scalar_lea.sflag [#allocation5], %s5087_s12 }
 0x540   : > { %6619 = dma.done.wait (%p5789_p8), %s5097_s21, 768  }
 0x541   : > { %6621 = vsyncadd (%p5789_p8), %s5097_s21, 4294966528  ;;  %s8774_s20 = sld [smem:[#allocation9_spill]]  ;;  %s8777_s17 = smov %s6628_s18 }
 0x542   : > { %s8775_s26 = sld [smem:[#allocation8_spill]] }
 0x543   : > { %s8776_s19 = sld [smem:[#allocation10_spill]] }
 0x547   : > { %p25_p12 = scmp.ge.s32.totalorder %s8774_s20, 4  }
 0x548   : > { %s8778_s18 = smov %s8775_s26 }
 0x549   :  { %27 = sbr.rel (!%p25_p12) target bundleno = 7 (0x7), region = 115 }
 0x54e   :  { %5102 = vsyncpa [#allocation3], 1 }
 0x54f   :  { %5104 = vsyncpa [#allocation3 + $0x1], 1 }
 0x550   :  { %5105 = vsyncpa [#allocation5], 1 }
 0x551   :  { %5107 = vsyncpa [#allocation5 + $0x1], 1 }

</bundles_post_ra>
